<compile_context>
chip_gen: v7x
topology: tpu7x:2x2x1
jax: 0.10.0
libtpu: 0.0.40
codegen_flags: <defaults>
</compile_context>

<pallas_src>
import jax
import jax.numpy as jnp
from jax.experimental import pallas as pl
from jax.experimental.pallas import tpu as pltpu

# ---------------------------- model hyper-params -----------------------------
B, C, IMG, P = 2, 4, 16, 4          # batch, channels, image size, patch size
N = (IMG // P) ** 2                 # 16 patches
PATCH_DIM = C * P * P               # 64
D = 32                              # embed dim
HEADS = 4
HEAD_DIM = D // HEADS               # 8
MLP_HIDDEN = 64
LAYERS = 2
NUM_CLASSES = 10
S = N + 1                           # 17 tokens (CLS + patches)
S_PAD = 24                          # token axis padded to a sublane multiple
R = B * S_PAD                       # 48 resident rows (batch fused into rows)
EPS = 1e-5
NEG_INF = -1e30


def _vmem():
    # whole array resident in VMEM (everything here is tiny)
    return pl.BlockSpec(memory_space=pltpu.MemorySpace.VMEM)


# --------------------- shared in-kernel numerics helpers ----------------------
def _layernorm(x, g, b):
    mu = jnp.mean(x, axis=-1, keepdims=True)
    var = jnp.mean((x - mu) ** 2, axis=-1, keepdims=True)
    return (x - mu) * jax.lax.rsqrt(var + EPS) * g + b


def _gelu(x):
    # TODO(synk): PyTorch nn.GELU default is exact erf; tanh approximation used here.
    c = jnp.sqrt(jnp.float32(2.0 / jnp.pi))
    return 0.5 * x * (1.0 + jnp.tanh(c * (x + 0.044715 * x * x * x)))


# ------------------------------ fused ViT kernel ------------------------------
def _vit_kernel(xp_ref, mask_ref, embed_w_ref, seq_bias_ref,
                ln1g_ref, ln1b_ref, wq_ref, wk_ref, wv_ref,
                bq_ref, bk_ref, bv_ref, wo_ref, bo_ref,
                ln2g_ref, ln2b_ref, w1_ref, b1_ref, w2_ref, b2_ref,
                hg_ref, hb_ref, hw_ref, hbias_ref,
                o_ref,
                q_sc, k_sc, v_sc):
    # --- patch embedding; CLS token / positional emb / conv bias are folded
    #     into the additive seq_bias term (padded rows stay zero) ---
    x = (jnp.dot(xp_ref[...], embed_w_ref[...],
                 preferred_element_type=jnp.float32) + seq_bias_ref[...])   # (R, D)

    mask = mask_ref[...]                                   # (R, R) block-diag + key-pad mask
    scale = jnp.float32(1.0 / (HEAD_DIM ** 0.5))

    for l in range(LAYERS):                                # static unroll (2 layers)
        # ---------------- multi-head self-attention (pre-norm) ----------------
        xn = _layernorm(x, ln1g_ref[l], ln1b_ref[l])       # (R, D)
        wq_l, wk_l, wv_l = wq_ref[l], wk_ref[l], wv_ref[l]  # (HEADS, D, HEAD_DIM)
        for h in range(HEADS):                             # tiny per-head GEMMs, static
            q_sc[h] = jnp.dot(xn, wq_l[h], preferred_element_type=jnp.float32)
            k_sc[h] = jnp.dot(xn, wk_l[h], preferred_element_type=jnp.float32)
            v_sc[h] = jnp.dot(xn, wv_l[h], preferred_element_type=jnp.float32)
        q = q_sc[...] + bq_ref[l]                          # (HEADS, R, HEAD_DIM)
        k = k_sc[...] + bk_ref[l]
        v = v_sc[...] + bv_ref[l]

        # batched over heads; cross-batch & padded keys masked out
        s = jnp.einsum('hre,hse->hrs', q, k,
                       preferred_element_type=jnp.float32) * scale + mask   # (HEADS, R, R)
        s = s - jnp.max(s, axis=-1, keepdims=True)
        p = jnp.exp(s)
        p = p * pl.reciprocal(jnp.sum(p, axis=-1, keepdims=True), approx=True)
        ctx = jnp.einsum('hrs,hse->hre', p, v,
                         preferred_element_type=jnp.float32)                # (HEADS, R, HEAD_DIM)
        # per-head output projection summed over heads == concat(ctx) @ W_o
        proj = jnp.einsum('hre,hef->hrf', ctx, wo_ref[l],
                          preferred_element_type=jnp.float32)               # (HEADS, R, D)
        x = x + jnp.sum(proj, axis=0) + bo_ref[l]

        # -------------------------- MLP block (pre-norm) ----------------------
        xn2 = _layernorm(x, ln2g_ref[l], ln2b_ref[l])
        hdn = _gelu(jnp.dot(xn2, w1_ref[l], preferred_element_type=jnp.float32)
                    + b1_ref[l])
        x = x + jnp.dot(hdn, w2_ref[l], preferred_element_type=jnp.float32) + b2_ref[l]

    # ------------------------- MLP head on CLS rows ---------------------------
    hg, hb = hg_ref[...], hb_ref[...]
    hw, hbias = hw_ref[...], hbias_ref[...]
    for b in range(B):                                     # CLS row of batch b is row b*S_PAD
        cls_b = _layernorm(x[b * S_PAD:b * S_PAD + 1, :], hg, hb)           # (1, D)
        o_ref[b:b + 1, :] = (jnp.dot(cls_b, hw, preferred_element_type=jnp.float32)
                             + hbias)


# ------------------------------ parameter init --------------------------------
def _build_attn_mask():
    r = jnp.arange(R)
    same_batch = (r[:, None] // S_PAD) == (r[None, :] // S_PAD)
    key_valid = (r[None, :] % S_PAD) < S
    return jnp.where(same_batch & key_valid, 0.0, NEG_INF).astype(jnp.float32)


def init_params(key):
    def nrm(k, shape, scale=0.02):
        return (scale * jax.random.normal(k, shape)).astype(jnp.float32)

    keys = iter(jax.random.split(key, 4 + 4 * LAYERS))

    # patch-embed weight stored as [C*P*P, D]; patch vector flattened in
    # (c, ph, pw) order, matching a Conv2d(kernel=P, stride=P) unrolled.
    embed_w = nrm(next(keys), (PATCH_DIM, D))
    embed_b = jnp.zeros((D,), jnp.float32)
    cls = nrm(next(keys), (D,))
    pos = nrm(next(keys), (S, D))
    head_w = nrm(next(keys), (D, NUM_CLASSES))

    # fold CLS token + pos emb + conv bias into one additive per-row term over
    # the padded (B, S_PAD, D) token layout (padded rows stay zero)
    seq_bias = jnp.zeros((B, S_PAD, D), jnp.float32)
    seq_bias = seq_bias.at[:, 0, :].set(cls + pos[0])
    seq_bias = seq_bias.at[:, 1:S, :].set(pos[1:] + embed_b[None, :])
    seq_bias = seq_bias.reshape(R, D)

    def per_head(w):     # (D, D) -> (HEADS, D, HEAD_DIM)
        return w.reshape(D, HEADS, HEAD_DIM).transpose(1, 0, 2)

    wq_l, wk_l, wv_l, wo_l, w1_l, w2_l = [], [], [], [], [], []
    for _ in range(LAYERS):
        wqkv = nrm(next(keys), (D, 3 * D))
        wo = nrm(next(keys), (D, D))
        w1 = nrm(next(keys), (D, MLP_HIDDEN))
        w2 = nrm(next(keys), (MLP_HIDDEN, D))
        wq_l.append(per_head(wqkv[:, 0 * D:1 * D]))
        wk_l.append(per_head(wqkv[:, 1 * D:2 * D]))
        wv_l.append(per_head(wqkv[:, 2 * D:3 * D]))
        wo_l.append(wo.reshape(HEADS, HEAD_DIM, D))
        w1_l.append(w1)
        w2_l.append(w2)

    return {
        "embed_w": embed_w,
        "seq_bias": seq_bias,
        "attn_mask": _build_attn_mask(),
        "ln1_g": jnp.ones((LAYERS, 1, D), jnp.float32),
        "ln1_b": jnp.zeros((LAYERS, 1, D), jnp.float32),
        "wq": jnp.stack(wq_l), "wk": jnp.stack(wk_l), "wv": jnp.stack(wv_l),
        "bq": jnp.zeros((LAYERS, HEADS, 1, HEAD_DIM), jnp.float32),
        "bk": jnp.zeros((LAYERS, HEADS, 1, HEAD_DIM), jnp.float32),
        "bv": jnp.zeros((LAYERS, HEADS, 1, HEAD_DIM), jnp.float32),
        "wo": jnp.stack(wo_l),
        "bo": jnp.zeros((LAYERS, 1, D), jnp.float32),
        "ln2_g": jnp.ones((LAYERS, 1, D), jnp.float32),
        "ln2_b": jnp.zeros((LAYERS, 1, D), jnp.float32),
        "w1": jnp.stack(w1_l),
        "b1": jnp.zeros((LAYERS, 1, MLP_HIDDEN), jnp.float32),
        "w2": jnp.stack(w2_l),
        "b2": jnp.zeros((LAYERS, 1, D), jnp.float32),
        "head_g": jnp.ones((1, D), jnp.float32),
        "head_b": jnp.zeros((1, D), jnp.float32),
        "head_w": head_w,
        "head_bias": jnp.zeros((1, NUM_CLASSES), jnp.float32),
    }


# --------------------------------- forward ------------------------------------
def vit_forward(x, params):
    # patchify NCHW -> (B, N, C*P*P), then zero-pad into the resident
    # (B, S_PAD) token layout (pure data movement, plain JAX glue)
    xp = x.reshape(B, C, IMG // P, P, IMG // P, P)
    xp = xp.transpose(0, 2, 4, 1, 3, 5).reshape(B, N, PATCH_DIM)
    xp_pad = jnp.zeros((B, S_PAD, PATCH_DIM), jnp.float32).at[:, 1:S, :].set(xp)
    xp_pad = xp_pad.reshape(R, PATCH_DIM)

    args = (xp_pad, params["attn_mask"], params["embed_w"], params["seq_bias"],
            params["ln1_g"], params["ln1_b"],
            params["wq"], params["wk"], params["wv"],
            params["bq"], params["bk"], params["bv"],
            params["wo"], params["bo"],
            params["ln2_g"], params["ln2_b"],
            params["w1"], params["b1"], params["w2"], params["b2"],
            params["head_g"], params["head_b"], params["head_w"], params["head_bias"])

    return pl.pallas_call(
        _vit_kernel,
        out_shape=jax.ShapeDtypeStruct((B, NUM_CLASSES), jnp.float32),
        in_specs=[_vmem()] * len(args),
        out_specs=_vmem(),
        scratch_shapes=[pltpu.VMEM((HEADS, R, HEAD_DIM), jnp.float32)] * 3,
    )(*args)


if __name__ == "__main__":
    key = jax.random.PRNGKey(0)
    k_x, k_p = jax.random.split(key)
    x = jax.random.normal(k_x, (B, C, IMG, IMG), dtype=jnp.float32)  # NCHW input
    params = init_params(k_p)

    logits = vit_forward(x, params)
    jax.block_until_ready(logits)
    assert logits.shape == (B, NUM_CLASSES), logits.shape
    assert bool(jnp.all(jnp.isfinite(logits)))
    print("KERNEL_OK")
</pallas_src>

<mosaic_0001>
module attributes {stable_mosaic.version = 11 : i64} {
  func.func @_vit_kernel(%arg0: memref<48x64xf32, #tpu.memory_space<vmem>>, %arg1: memref<48x48xf32, #tpu.memory_space<vmem>>, %arg2: memref<64x32xf32, #tpu.memory_space<vmem>>, %arg3: memref<48x32xf32, #tpu.memory_space<vmem>>, %arg4: memref<2x1x32xf32, #tpu.memory_space<vmem>>, %arg5: memref<2x1x32xf32, #tpu.memory_space<vmem>>, %arg6: memref<2x4x32x8xf32, #tpu.memory_space<vmem>>, %arg7: memref<2x4x32x8xf32, #tpu.memory_space<vmem>>, %arg8: memref<2x4x32x8xf32, #tpu.memory_space<vmem>>, %arg9: memref<2x4x1x8xf32, #tpu.memory_space<vmem>>, %arg10: memref<2x4x1x8xf32, #tpu.memory_space<vmem>>, %arg11: memref<2x4x1x8xf32, #tpu.memory_space<vmem>>, %arg12: memref<2x4x8x32xf32, #tpu.memory_space<vmem>>, %arg13: memref<2x1x32xf32, #tpu.memory_space<vmem>>, %arg14: memref<2x1x32xf32, #tpu.memory_space<vmem>>, %arg15: memref<2x1x32xf32, #tpu.memory_space<vmem>>, %arg16: memref<2x32x64xf32, #tpu.memory_space<vmem>>, %arg17: memref<2x1x64xf32, #tpu.memory_space<vmem>>, %arg18: memref<2x64x32xf32, #tpu.memory_space<vmem>>, %arg19: memref<2x1x32xf32, #tpu.memory_space<vmem>>, %arg20: memref<1x32xf32, #tpu.memory_space<vmem>>, %arg21: memref<1x32xf32, #tpu.memory_space<vmem>>, %arg22: memref<32x10xf32, #tpu.memory_space<vmem>>, %arg23: memref<1x10xf32, #tpu.memory_space<vmem>>, %arg24: memref<2x10xf32, #tpu.memory_space<vmem>>, %arg25: memref<4x48x8xf32, #tpu.memory_space<vmem>>, %arg26: memref<4x48x8xf32, #tpu.memory_space<vmem>>, %arg27: memref<4x48x8xf32, #tpu.memory_space<vmem>>) attributes {dimension_semantics = [], scalar_prefetch = 0 : i64, scratch_operands = 3 : i64, tpu.core_type = #tpu.core_type<tc>} {
    %c0 = arith.constant 0 : index
    %c0_0 = arith.constant 0 : index
    %0 = vector.load %arg0[%c0, %c0_0] : memref<48x64xf32, #tpu.memory_space<vmem>>, vector<48x64xf32>
    %c0_1 = arith.constant 0 : index
    %c0_2 = arith.constant 0 : index
    %1 = vector.load %arg2[%c0_1, %c0_2] : memref<64x32xf32, #tpu.memory_space<vmem>>, vector<64x32xf32>
    %cst = arith.constant dense<0.000000e+00> : vector<48x32xf32>
    %2 = tpu.matmul %0, %1, %cst {dimension_numbers = #tpu.dot_dimension_numbers<[1], [0], [0], [1], [0, 0, 1, 1], [], []>} : vector<48x64xf32>, vector<64x32xf32>, vector<48x32xf32> -> vector<48x32xf32>
    %c0_3 = arith.constant 0 : index
    %c0_4 = arith.constant 0 : index
    %3 = vector.load %arg3[%c0_3, %c0_4] : memref<48x32xf32, #tpu.memory_space<vmem>>, vector<48x32xf32>
    %4 = arith.addf %2, %3 : vector<48x32xf32>
    %c0_5 = arith.constant 0 : index
    %c0_6 = arith.constant 0 : index
    %5 = vector.load %arg1[%c0_5, %c0_6] : memref<48x48xf32, #tpu.memory_space<vmem>>, vector<48x48xf32>
    %c0_7 = arith.constant 0 : index
    %c0_8 = arith.constant 0 : index
    %c0_9 = arith.constant 0 : index
    %6 = vector.load %arg4[%c0_7, %c0_8, %c0_9] : memref<2x1x32xf32, #tpu.memory_space<vmem>>, vector<1x1x32xf32>
    %7 = vector.shape_cast %6 : vector<1x1x32xf32> to vector<1x32xf32>
    %c0_10 = arith.constant 0 : index
    %c0_11 = arith.constant 0 : index
    %c0_12 = arith.constant 0 : index
    %8 = vector.load %arg5[%c0_10, %c0_11, %c0_12] : memref<2x1x32xf32, #tpu.memory_space<vmem>>, vector<1x1x32xf32>
    %9 = vector.shape_cast %8 : vector<1x1x32xf32> to vector<1x32xf32>
    %cst_13 = arith.constant dense<0.000000e+00> : vector<48xf32>
    %10 = vector.multi_reduction <add>, %4, %cst_13 [1] : vector<48x32xf32> to vector<48xf32>
    %11 = vector.shape_cast %10 : vector<48xf32> to vector<48x1xf32>
    %cst_14 = arith.constant 3.200000e+01 : f32
    %12 = vector.broadcast %cst_14 : f32 to vector<48x1xf32>
    %13 = arith.divf %11, %12 : vector<48x1xf32>
    %14 = vector.broadcast %13 : vector<48x1xf32> to vector<48x32xf32>
    %15 = arith.subf %4, %14 : vector<48x32xf32>
    %16 = arith.mulf %15, %15 : vector<48x32xf32>
    %cst_15 = arith.constant dense<0.000000e+00> : vector<48xf32>
    %17 = vector.multi_reduction <add>, %16, %cst_15 [1] : vector<48x32xf32> to vector<48xf32>
    %18 = vector.shape_cast %17 : vector<48xf32> to vector<48x1xf32>
    %cst_16 = arith.constant 3.200000e+01 : f32
    %19 = vector.broadcast %cst_16 : f32 to vector<48x1xf32>
    %20 = arith.divf %18, %19 : vector<48x1xf32>
    %21 = vector.broadcast %13 : vector<48x1xf32> to vector<48x32xf32>
    %22 = arith.subf %4, %21 : vector<48x32xf32>
    %cst_17 = arith.constant 9.99999974E-6 : f32
    %23 = vector.broadcast %cst_17 : f32 to vector<48x1xf32>
    %24 = arith.addf %20, %23 : vector<48x1xf32>
    %25 = math.rsqrt %24 : vector<48x1xf32>
    %26 = vector.broadcast %25 : vector<48x1xf32> to vector<48x32xf32>
    %27 = arith.mulf %22, %26 : vector<48x32xf32>
    %28 = vector.broadcast %7 : vector<1x32xf32> to vector<48x32xf32>
    %29 = arith.mulf %27, %28 : vector<48x32xf32>
    %30 = vector.broadcast %9 : vector<1x32xf32> to vector<48x32xf32>
    %31 = arith.addf %29, %30 : vector<48x32xf32>
    %c0_18 = arith.constant 0 : index
    %c0_19 = arith.constant 0 : index
    %c0_20 = arith.constant 0 : index
    %c0_21 = arith.constant 0 : index
    %32 = vector.load %arg6[%c0_18, %c0_19, %c0_20, %c0_21] : memref<2x4x32x8xf32, #tpu.memory_space<vmem>>, vector<1x4x32x8xf32>
    %33 = vector.shape_cast %32 : vector<1x4x32x8xf32> to vector<4x32x8xf32>
    %c0_22 = arith.constant 0 : index
    %c0_23 = arith.constant 0 : index
    %c0_24 = arith.constant 0 : index
    %c0_25 = arith.constant 0 : index
    %34 = vector.load %arg7[%c0_22, %c0_23, %c0_24, %c0_25] : memref<2x4x32x8xf32, #tpu.memory_space<vmem>>, vector<1x4x32x8xf32>
    %35 = vector.shape_cast %34 : vector<1x4x32x8xf32> to vector<4x32x8xf32>
    %c0_26 = arith.constant 0 : index
    %c0_27 = arith.constant 0 : index
    %c0_28 = arith.constant 0 : index
    %c0_29 = arith.constant 0 : index
    %36 = vector.load %arg8[%c0_26, %c0_27, %c0_28, %c0_29] : memref<2x4x32x8xf32, #tpu.memory_space<vmem>>, vector<1x4x32x8xf32>
    %37 = vector.shape_cast %36 : vector<1x4x32x8xf32> to vector<4x32x8xf32>
    %38 = vector.extract_strided_slice %33 {offsets = [0, 0, 0], sizes = [1, 32, 8], strides = [1, 1, 1]} : vector<4x32x8xf32> to vector<1x32x8xf32>
    %39 = vector.shape_cast %38 : vector<1x32x8xf32> to vector<32x8xf32>
    %cst_30 = arith.constant dense<0.000000e+00> : vector<48x8xf32>
    %40 = tpu.matmul %31, %39, %cst_30 {dimension_numbers = #tpu.dot_dimension_numbers<[1], [0], [0], [1], [0, 0, 1, 1], [], []>} : vector<48x32xf32>, vector<32x8xf32>, vector<48x8xf32> -> vector<48x8xf32>
    %c0_31 = arith.constant 0 : index
    %c0_32 = arith.constant 0 : index
    %c0_33 = arith.constant 0 : index
    %41 = vector.load %arg25[%c0_31, %c0_32, %c0_33] : memref<4x48x8xf32, #tpu.memory_space<vmem>>, vector<1x48x8xf32>
    %42 = vector.shape_cast %41 : vector<1x48x8xf32> to vector<48x8xf32>
    %43 = vector.shape_cast %40 : vector<48x8xf32> to vector<1x48x8xf32>
    tpu.vector_store %arg25[%c0_31, %c0_32, %c0_33], %43 {strides = array<i32>} : memref<4x48x8xf32, #tpu.memory_space<vmem>>, vector<1x48x8xf32>,
    %44 = vector.extract_strided_slice %35 {offsets = [0, 0, 0], sizes = [1, 32, 8], strides = [1, 1, 1]} : vector<4x32x8xf32> to vector<1x32x8xf32>
    %45 = vector.shape_cast %44 : vector<1x32x8xf32> to vector<32x8xf32>
    %cst_34 = arith.constant dense<0.000000e+00> : vector<48x8xf32>
    %46 = tpu.matmul %31, %45, %cst_34 {dimension_numbers = #tpu.dot_dimension_numbers<[1], [0], [0], [1], [0, 0, 1, 1], [], []>} : vector<48x32xf32>, vector<32x8xf32>, vector<48x8xf32> -> vector<48x8xf32>
    %c0_35 = arith.constant 0 : index
    %c0_36 = arith.constant 0 : index
    %c0_37 = arith.constant 0 : index
    %47 = vector.load %arg26[%c0_35, %c0_36, %c0_37] : memref<4x48x8xf32, #tpu.memory_space<vmem>>, vector<1x48x8xf32>
    %48 = vector.shape_cast %47 : vector<1x48x8xf32> to vector<48x8xf32>
    %49 = vector.shape_cast %46 : vector<48x8xf32> to vector<1x48x8xf32>
    tpu.vector_store %arg26[%c0_35, %c0_36, %c0_37], %49 {strides = array<i32>} : memref<4x48x8xf32, #tpu.memory_space<vmem>>, vector<1x48x8xf32>,
    %50 = vector.extract_strided_slice %37 {offsets = [0, 0, 0], sizes = [1, 32, 8], strides = [1, 1, 1]} : vector<4x32x8xf32> to vector<1x32x8xf32>
    %51 = vector.shape_cast %50 : vector<1x32x8xf32> to vector<32x8xf32>
    %cst_38 = arith.constant dense<0.000000e+00> : vector<48x8xf32>
    %52 = tpu.matmul %31, %51, %cst_38 {dimension_numbers = #tpu.dot_dimension_numbers<[1], [0], [0], [1], [0, 0, 1, 1], [], []>} : vector<48x32xf32>, vector<32x8xf32>, vector<48x8xf32> -> vector<48x8xf32>
    %c0_39 = arith.constant 0 : index
    %c0_40 = arith.constant 0 : index
    %c0_41 = arith.constant 0 : index
    %53 = vector.load %arg27[%c0_39, %c0_40, %c0_41] : memref<4x48x8xf32, #tpu.memory_space<vmem>>, vector<1x48x8xf32>
    %54 = vector.shape_cast %53 : vector<1x48x8xf32> to vector<48x8xf32>
    %55 = vector.shape_cast %52 : vector<48x8xf32> to vector<1x48x8xf32>
    tpu.vector_store %arg27[%c0_39, %c0_40, %c0_41], %55 {strides = array<i32>} : memref<4x48x8xf32, #tpu.memory_space<vmem>>, vector<1x48x8xf32>,
    %56 = vector.extract_strided_slice %33 {offsets = [1, 0, 0], sizes = [1, 32, 8], strides = [1, 1, 1]} : vector<4x32x8xf32> to vector<1x32x8xf32>
    %57 = vector.shape_cast %56 : vector<1x32x8xf32> to vector<32x8xf32>
    %cst_42 = arith.constant dense<0.000000e+00> : vector<48x8xf32>
    %58 = tpu.matmul %31, %57, %cst_42 {dimension_numbers = #tpu.dot_dimension_numbers<[1], [0], [0], [1], [0, 0, 1, 1], [], []>} : vector<48x32xf32>, vector<32x8xf32>, vector<48x8xf32> -> vector<48x8xf32>
    %c1 = arith.constant 1 : index
    %c0_43 = arith.constant 0 : index
    %c0_44 = arith.constant 0 : index
    %59 = vector.load %arg25[%c1, %c0_43, %c0_44] : memref<4x48x8xf32, #tpu.memory_space<vmem>>, vector<1x48x8xf32>
    %60 = vector.shape_cast %59 : vector<1x48x8xf32> to vector<48x8xf32>
    %61 = vector.shape_cast %58 : vector<48x8xf32> to vector<1x48x8xf32>
    tpu.vector_store %arg25[%c1, %c0_43, %c0_44], %61 {strides = array<i32>} : memref<4x48x8xf32, #tpu.memory_space<vmem>>, vector<1x48x8xf32>,
    %62 = vector.extract_strided_slice %35 {offsets = [1, 0, 0], sizes = [1, 32, 8], strides = [1, 1, 1]} : vector<4x32x8xf32> to vector<1x32x8xf32>
    %63 = vector.shape_cast %62 : vector<1x32x8xf32> to vector<32x8xf32>
    %cst_45 = arith.constant dense<0.000000e+00> : vector<48x8xf32>
    %64 = tpu.matmul %31, %63, %cst_45 {dimension_numbers = #tpu.dot_dimension_numbers<[1], [0], [0], [1], [0, 0, 1, 1], [], []>} : vector<48x32xf32>, vector<32x8xf32>, vector<48x8xf32> -> vector<48x8xf32>
    %c1_46 = arith.constant 1 : index
    %c0_47 = arith.constant 0 : index
    %c0_48 = arith.constant 0 : index
    %65 = vector.load %arg26[%c1_46, %c0_47, %c0_48] : memref<4x48x8xf32, #tpu.memory_space<vmem>>, vector<1x48x8xf32>
    %66 = vector.shape_cast %65 : vector<1x48x8xf32> to vector<48x8xf32>
    %67 = vector.shape_cast %64 : vector<48x8xf32> to vector<1x48x8xf32>
    tpu.vector_store %arg26[%c1_46, %c0_47, %c0_48], %67 {strides = array<i32>} : memref<4x48x8xf32, #tpu.memory_space<vmem>>, vector<1x48x8xf32>,
    %68 = vector.extract_strided_slice %37 {offsets = [1, 0, 0], sizes = [1, 32, 8], strides = [1, 1, 1]} : vector<4x32x8xf32> to vector<1x32x8xf32>
    %69 = vector.shape_cast %68 : vector<1x32x8xf32> to vector<32x8xf32>
    %cst_49 = arith.constant dense<0.000000e+00> : vector<48x8xf32>
    %70 = tpu.matmul %31, %69, %cst_49 {dimension_numbers = #tpu.dot_dimension_numbers<[1], [0], [0], [1], [0, 0, 1, 1], [], []>} : vector<48x32xf32>, vector<32x8xf32>, vector<48x8xf32> -> vector<48x8xf32>
    %c1_50 = arith.constant 1 : index
    %c0_51 = arith.constant 0 : index
    %c0_52 = arith.constant 0 : index
    %71 = vector.load %arg27[%c1_50, %c0_51, %c0_52] : memref<4x48x8xf32, #tpu.memory_space<vmem>>, vector<1x48x8xf32>
    %72 = vector.shape_cast %71 : vector<1x48x8xf32> to vector<48x8xf32>
    %73 = vector.shape_cast %70 : vector<48x8xf32> to vector<1x48x8xf32>
    tpu.vector_store %arg27[%c1_50, %c0_51, %c0_52], %73 {strides = array<i32>} : memref<4x48x8xf32, #tpu.memory_space<vmem>>, vector<1x48x8xf32>,
    %74 = vector.extract_strided_slice %33 {offsets = [2, 0, 0], sizes = [1, 32, 8], strides = [1, 1, 1]} : vector<4x32x8xf32> to vector<1x32x8xf32>
    %75 = vector.shape_cast %74 : vector<1x32x8xf32> to vector<32x8xf32>
    %cst_53 = arith.constant dense<0.000000e+00> : vector<48x8xf32>
    %76 = tpu.matmul %31, %75, %cst_53 {dimension_numbers = #tpu.dot_dimension_numbers<[1], [0], [0], [1], [0, 0, 1, 1], [], []>} : vector<48x32xf32>, vector<32x8xf32>, vector<48x8xf32> -> vector<48x8xf32>
    %c2 = arith.constant 2 : index
    %c0_54 = arith.constant 0 : index
    %c0_55 = arith.constant 0 : index
    %77 = vector.load %arg25[%c2, %c0_54, %c0_55] : memref<4x48x8xf32, #tpu.memory_space<vmem>>, vector<1x48x8xf32>
    %78 = vector.shape_cast %77 : vector<1x48x8xf32> to vector<48x8xf32>
    %79 = vector.shape_cast %76 : vector<48x8xf32> to vector<1x48x8xf32>
    tpu.vector_store %arg25[%c2, %c0_54, %c0_55], %79 {strides = array<i32>} : memref<4x48x8xf32, #tpu.memory_space<vmem>>, vector<1x48x8xf32>,
    %80 = vector.extract_strided_slice %35 {offsets = [2, 0, 0], sizes = [1, 32, 8], strides = [1, 1, 1]} : vector<4x32x8xf32> to vector<1x32x8xf32>
    %81 = vector.shape_cast %80 : vector<1x32x8xf32> to vector<32x8xf32>
    %cst_56 = arith.constant dense<0.000000e+00> : vector<48x8xf32>
    %82 = tpu.matmul %31, %81, %cst_56 {dimension_numbers = #tpu.dot_dimension_numbers<[1], [0], [0], [1], [0, 0, 1, 1], [], []>} : vector<48x32xf32>, vector<32x8xf32>, vector<48x8xf32> -> vector<48x8xf32>
    %c2_57 = arith.constant 2 : index
    %c0_58 = arith.constant 0 : index
    %c0_59 = arith.constant 0 : index
    %83 = vector.load %arg26[%c2_57, %c0_58, %c0_59] : memref<4x48x8xf32, #tpu.memory_space<vmem>>, vector<1x48x8xf32>
    %84 = vector.shape_cast %83 : vector<1x48x8xf32> to vector<48x8xf32>
    %85 = vector.shape_cast %82 : vector<48x8xf32> to vector<1x48x8xf32>
    tpu.vector_store %arg26[%c2_57, %c0_58, %c0_59], %85 {strides = array<i32>} : memref<4x48x8xf32, #tpu.memory_space<vmem>>, vector<1x48x8xf32>,
    %86 = vector.extract_strided_slice %37 {offsets = [2, 0, 0], sizes = [1, 32, 8], strides = [1, 1, 1]} : vector<4x32x8xf32> to vector<1x32x8xf32>
    %87 = vector.shape_cast %86 : vector<1x32x8xf32> to vector<32x8xf32>
    %cst_60 = arith.constant dense<0.000000e+00> : vector<48x8xf32>
    %88 = tpu.matmul %31, %87, %cst_60 {dimension_numbers = #tpu.dot_dimension_numbers<[1], [0], [0], [1], [0, 0, 1, 1], [], []>} : vector<48x32xf32>, vector<32x8xf32>, vector<48x8xf32> -> vector<48x8xf32>
    %c2_61 = arith.constant 2 : index
    %c0_62 = arith.constant 0 : index
    %c0_63 = arith.constant 0 : index
    %89 = vector.load %arg27[%c2_61, %c0_62, %c0_63] : memref<4x48x8xf32, #tpu.memory_space<vmem>>, vector<1x48x8xf32>
    %90 = vector.shape_cast %89 : vector<1x48x8xf32> to vector<48x8xf32>
    %91 = vector.shape_cast %88 : vector<48x8xf32> to vector<1x48x8xf32>
    tpu.vector_store %arg27[%c2_61, %c0_62, %c0_63], %91 {strides = array<i32>} : memref<4x48x8xf32, #tpu.memory_space<vmem>>, vector<1x48x8xf32>,
    %92 = vector.extract_strided_slice %33 {offsets = [3, 0, 0], sizes = [1, 32, 8], strides = [1, 1, 1]} : vector<4x32x8xf32> to vector<1x32x8xf32>
    %93 = vector.shape_cast %92 : vector<1x32x8xf32> to vector<32x8xf32>
    %cst_64 = arith.constant dense<0.000000e+00> : vector<48x8xf32>
    %94 = tpu.matmul %31, %93, %cst_64 {dimension_numbers = #tpu.dot_dimension_numbers<[1], [0], [0], [1], [0, 0, 1, 1], [], []>} : vector<48x32xf32>, vector<32x8xf32>, vector<48x8xf32> -> vector<48x8xf32>
    %c3 = arith.constant 3 : index
    %c0_65 = arith.constant 0 : index
    %c0_66 = arith.constant 0 : index
    %95 = vector.load %arg25[%c3, %c0_65, %c0_66] : memref<4x48x8xf32, #tpu.memory_space<vmem>>, vector<1x48x8xf32>
    %96 = vector.shape_cast %95 : vector<1x48x8xf32> to vector<48x8xf32>
    %97 = vector.shape_cast %94 : vector<48x8xf32> to vector<1x48x8xf32>
    tpu.vector_store %arg25[%c3, %c0_65, %c0_66], %97 {strides = array<i32>} : memref<4x48x8xf32, #tpu.memory_space<vmem>>, vector<1x48x8xf32>,
    %98 = vector.extract_strided_slice %35 {offsets = [3, 0, 0], sizes = [1, 32, 8], strides = [1, 1, 1]} : vector<4x32x8xf32> to vector<1x32x8xf32>
    %99 = vector.shape_cast %98 : vector<1x32x8xf32> to vector<32x8xf32>
    %cst_67 = arith.constant dense<0.000000e+00> : vector<48x8xf32>
    %100 = tpu.matmul %31, %99, %cst_67 {dimension_numbers = #tpu.dot_dimension_numbers<[1], [0], [0], [1], [0, 0, 1, 1], [], []>} : vector<48x32xf32>, vector<32x8xf32>, vector<48x8xf32> -> vector<48x8xf32>
    %c3_68 = arith.constant 3 : index
    %c0_69 = arith.constant 0 : index
    %c0_70 = arith.constant 0 : index
    %101 = vector.load %arg26[%c3_68, %c0_69, %c0_70] : memref<4x48x8xf32, #tpu.memory_space<vmem>>, vector<1x48x8xf32>
    %102 = vector.shape_cast %101 : vector<1x48x8xf32> to vector<48x8xf32>
    %103 = vector.shape_cast %100 : vector<48x8xf32> to vector<1x48x8xf32>
    tpu.vector_store %arg26[%c3_68, %c0_69, %c0_70], %103 {strides = array<i32>} : memref<4x48x8xf32, #tpu.memory_space<vmem>>, vector<1x48x8xf32>,
    %104 = vector.extract_strided_slice %37 {offsets = [3, 0, 0], sizes = [1, 32, 8], strides = [1, 1, 1]} : vector<4x32x8xf32> to vector<1x32x8xf32>
    %105 = vector.shape_cast %104 : vector<1x32x8xf32> to vector<32x8xf32>
    %cst_71 = arith.constant dense<0.000000e+00> : vector<48x8xf32>
    %106 = tpu.matmul %31, %105, %cst_71 {dimension_numbers = #tpu.dot_dimension_numbers<[1], [0], [0], [1], [0, 0, 1, 1], [], []>} : vector<48x32xf32>, vector<32x8xf32>, vector<48x8xf32> -> vector<48x8xf32>
    %c3_72 = arith.constant 3 : index
    %c0_73 = arith.constant 0 : index
    %c0_74 = arith.constant 0 : index
    %107 = vector.load %arg27[%c3_72, %c0_73, %c0_74] : memref<4x48x8xf32, #tpu.memory_space<vmem>>, vector<1x48x8xf32>
    %108 = vector.shape_cast %107 : vector<1x48x8xf32> to vector<48x8xf32>
    %109 = vector.shape_cast %106 : vector<48x8xf32> to vector<1x48x8xf32>
    tpu.vector_store %arg27[%c3_72, %c0_73, %c0_74], %109 {strides = array<i32>} : memref<4x48x8xf32, #tpu.memory_space<vmem>>, vector<1x48x8xf32>,
    %c0_75 = arith.constant 0 : index
    %c0_76 = arith.constant 0 : index
    %c0_77 = arith.constant 0 : index
    %110 = vector.load %arg25[%c0_75, %c0_76, %c0_77] : memref<4x48x8xf32, #tpu.memory_space<vmem>>, vector<4x48x8xf32>
    %c0_78 = arith.constant 0 : index
    %c0_79 = arith.constant 0 : index
    %c0_80 = arith.constant 0 : index
    %c0_81 = arith.constant 0 : index
    %111 = vector.load %arg9[%c0_78, %c0_79, %c0_80, %c0_81] : memref<2x4x1x8xf32, #tpu.memory_space<vmem>>, vector<1x4x1x8xf32>
    %112 = vector.shape_cast %111 : vector<1x4x1x8xf32> to vector<4x1x8xf32>
    %113 = vector.broadcast %112 : vector<4x1x8xf32> to vector<4x48x8xf32>
    %114 = arith.addf %110, %113 : vector<4x48x8xf32>
    %c0_82 = arith.constant 0 : index
    %c0_83 = arith.constant 0 : index
    %c0_84 = arith.constant 0 : index
    %115 = vector.load %arg26[%c0_82, %c0_83, %c0_84] : memref<4x48x8xf32, #tpu.memory_space<vmem>>, vector<4x48x8xf32>
    %c0_85 = arith.constant 0 : index
    %c0_86 = arith.constant 0 : index
    %c0_87 = arith.constant 0 : index
    %c0_88 = arith.constant 0 : index
    %116 = vector.load %arg10[%c0_85, %c0_86, %c0_87, %c0_88] : memref<2x4x1x8xf32, #tpu.memory_space<vmem>>, vector<1x4x1x8xf32>
    %117 = vector.shape_cast %116 : vector<1x4x1x8xf32> to vector<4x1x8xf32>
    %118 = vector.broadcast %117 : vector<4x1x8xf32> to vector<4x48x8xf32>
    %119 = arith.addf %115, %118 : vector<4x48x8xf32>
    %c0_89 = arith.constant 0 : index
    %c0_90 = arith.constant 0 : index
    %c0_91 = arith.constant 0 : index
    %120 = vector.load %arg27[%c0_89, %c0_90, %c0_91] : memref<4x48x8xf32, #tpu.memory_space<vmem>>, vector<4x48x8xf32>
    %c0_92 = arith.constant 0 : index
    %c0_93 = arith.constant 0 : index
    %c0_94 = arith.constant 0 : index
    %c0_95 = arith.constant 0 : index
    %121 = vector.load %arg11[%c0_92, %c0_93, %c0_94, %c0_95] : memref<2x4x1x8xf32, #tpu.memory_space<vmem>>, vector<1x4x1x8xf32>
    %122 = vector.shape_cast %121 : vector<1x4x1x8xf32> to vector<4x1x8xf32>
    %123 = vector.broadcast %122 : vector<4x1x8xf32> to vector<4x48x8xf32>
    %124 = arith.addf %120, %123 : vector<4x48x8xf32>
    "tpu.trace_start"() <{level = 10 : i32, message = "hre,hse->hrs"}> : () -> ()
    %cst_96 = arith.constant dense<0.000000e+00> : vector<4x48x48xf32>
    %125 = tpu.matmul %114, %119, %cst_96 {dimension_numbers = #tpu.dot_dimension_numbers<[2], [2], [1], [1], [0, 0, 0, 1, 1, 1], [0], [0]>} : vector<4x48x8xf32>, vector<4x48x8xf32>, vector<4x48x48xf32> -> vector<4x48x48xf32>
    "tpu.trace_stop"() : () -> ()
    %cst_97 = arith.constant 0.353553385 : f32
    %126 = vector.broadcast %cst_97 : f32 to vector<4x48x48xf32>
    %127 = arith.mulf %125, %126 : vector<4x48x48xf32>
    %128 = vector.shape_cast %5 : vector<48x48xf32> to vector<1x48x48xf32>
    %129 = vector.broadcast %128 : vector<1x48x48xf32> to vector<4x48x48xf32>
    %130 = arith.addf %127, %129 : vector<4x48x48xf32>
    %cst_98 = arith.constant dense<0xFF800000> : vector<4x48xf32>
    %131 = vector.multi_reduction <maximumf>, %130, %cst_98 [2] : vector<4x48x48xf32> to vector<4x48xf32>
    %132 = vector.shape_cast %131 : vector<4x48xf32> to vector<4x48x1xf32>
    %133 = vector.broadcast %132 : vector<4x48x1xf32> to vector<4x48x48xf32>
    %134 = arith.subf %130, %133 : vector<4x48x48xf32>
    %135 = math.exp %134 : vector<4x48x48xf32>
    %cst_99 = arith.constant dense<0.000000e+00> : vector<4x48xf32>
    %136 = vector.multi_reduction <add>, %135, %cst_99 [2] : vector<4x48x48xf32> to vector<4x48xf32>
    %137 = vector.shape_cast %136 : vector<4x48xf32> to vector<4x48x1xf32>
    %138 = tpu.reciprocal %137 {approx = true} : vector<4x48x1xf32> -> vector<4x48x1xf32>
    %139 = vector.broadcast %138 : vector<4x48x1xf32> to vector<4x48x48xf32>
    %140 = arith.mulf %135, %139 : vector<4x48x48xf32>
    "tpu.trace_start"() <{level = 10 : i32, message = "hrs,hse->hre"}> : () -> ()
    %cst_100 = arith.constant dense<0.000000e+00> : vector<4x48x8xf32>
    %141 = tpu.matmul %140, %124, %cst_100 {dimension_numbers = #tpu.dot_dimension_numbers<[2], [1], [1], [2], [0, 0, 0, 1, 1, 2], [0], [0]>} : vector<4x48x48xf32>, vector<4x48x8xf32>, vector<4x48x8xf32> -> vector<4x48x8xf32>
    "tpu.trace_stop"() : () -> ()
    %c0_101 = arith.constant 0 : index
    %c0_102 = arith.constant 0 : index
    %c0_103 = arith.constant 0 : index
    %c0_104 = arith.constant 0 : index
    %142 = vector.load %arg12[%c0_101, %c0_102, %c0_103, %c0_104] : memref<2x4x8x32xf32, #tpu.memory_space<vmem>>, vector<1x4x8x32xf32>
    %143 = vector.shape_cast %142 : vector<1x4x8x32xf32> to vector<4x8x32xf32>
    "tpu.trace_start"() <{level = 10 : i32, message = "hre,hef->hrf"}> : () -> ()
    %cst_105 = arith.constant dense<0.000000e+00> : vector<4x48x32xf32>
    %144 = tpu.matmul %141, %143, %cst_105 {dimension_numbers = #tpu.dot_dimension_numbers<[2], [1], [1], [2], [0, 0, 0, 1, 1, 2], [0], [0]>} : vector<4x48x8xf32>, vector<4x8x32xf32>, vector<4x48x32xf32> -> vector<4x48x32xf32>
    "tpu.trace_stop"() : () -> ()
    %cst_106 = arith.constant dense<0.000000e+00> : vector<48x32xf32>
    %145 = vector.multi_reduction <add>, %144, %cst_106 [0] : vector<4x48x32xf32> to vector<48x32xf32>
    %146 = arith.addf %4, %145 : vector<48x32xf32>
    %c0_107 = arith.constant 0 : index
    %c0_108 = arith.constant 0 : index
    %c0_109 = arith.constant 0 : index
    %147 = vector.load %arg13[%c0_107, %c0_108, %c0_109] : memref<2x1x32xf32, #tpu.memory_space<vmem>>, vector<1x1x32xf32>
    %148 = vector.shape_cast %147 : vector<1x1x32xf32> to vector<1x32xf32>
    %149 = vector.broadcast %148 : vector<1x32xf32> to vector<48x32xf32>
    %150 = arith.addf %146, %149 : vector<48x32xf32>
    %c0_110 = arith.constant 0 : index
    %c0_111 = arith.constant 0 : index
    %c0_112 = arith.constant 0 : index
    %151 = vector.load %arg14[%c0_110, %c0_111, %c0_112] : memref<2x1x32xf32, #tpu.memory_space<vmem>>, vector<1x1x32xf32>
    %152 = vector.shape_cast %151 : vector<1x1x32xf32> to vector<1x32xf32>
    %c0_113 = arith.constant 0 : index
    %c0_114 = arith.constant 0 : index
    %c0_115 = arith.constant 0 : index
    %153 = vector.load %arg15[%c0_113, %c0_114, %c0_115] : memref<2x1x32xf32, #tpu.memory_space<vmem>>, vector<1x1x32xf32>
    %154 = vector.shape_cast %153 : vector<1x1x32xf32> to vector<1x32xf32>
    %cst_116 = arith.constant dense<0.000000e+00> : vector<48xf32>
    %155 = vector.multi_reduction <add>, %150, %cst_116 [1] : vector<48x32xf32> to vector<48xf32>
    %156 = vector.shape_cast %155 : vector<48xf32> to vector<48x1xf32>
    %cst_117 = arith.constant 3.200000e+01 : f32
    %157 = vector.broadcast %cst_117 : f32 to vector<48x1xf32>
    %158 = arith.divf %156, %157 : vector<48x1xf32>
    %159 = vector.broadcast %158 : vector<48x1xf32> to vector<48x32xf32>
    %160 = arith.subf %150, %159 : vector<48x32xf32>
    %161 = arith.mulf %160, %160 : vector<48x32xf32>
    %cst_118 = arith.constant dense<0.000000e+00> : vector<48xf32>
    %162 = vector.multi_reduction <add>, %161, %cst_118 [1] : vector<48x32xf32> to vector<48xf32>
    %163 = vector.shape_cast %162 : vector<48xf32> to vector<48x1xf32>
    %cst_119 = arith.constant 3.200000e+01 : f32
    %164 = vector.broadcast %cst_119 : f32 to vector<48x1xf32>
    %165 = arith.divf %163, %164 : vector<48x1xf32>
    %166 = vector.broadcast %158 : vector<48x1xf32> to vector<48x32xf32>
    %167 = arith.subf %150, %166 : vector<48x32xf32>
    %cst_120 = arith.constant 9.99999974E-6 : f32
    %168 = vector.broadcast %cst_120 : f32 to vector<48x1xf32>
    %169 = arith.addf %165, %168 : vector<48x1xf32>
    %170 = math.rsqrt %169 : vector<48x1xf32>
    %171 = vector.broadcast %170 : vector<48x1xf32> to vector<48x32xf32>
    %172 = arith.mulf %167, %171 : vector<48x32xf32>
    %173 = vector.broadcast %152 : vector<1x32xf32> to vector<48x32xf32>
    %174 = arith.mulf %172, %173 : vector<48x32xf32>
    %175 = vector.broadcast %154 : vector<1x32xf32> to vector<48x32xf32>
    %176 = arith.addf %174, %175 : vector<48x32xf32>
    %c0_121 = arith.constant 0 : index
    %c0_122 = arith.constant 0 : index
    %c0_123 = arith.constant 0 : index
    %177 = vector.load %arg16[%c0_121, %c0_122, %c0_123] : memref<2x32x64xf32, #tpu.memory_space<vmem>>, vector<1x32x64xf32>
    %178 = vector.shape_cast %177 : vector<1x32x64xf32> to vector<32x64xf32>
    %cst_124 = arith.constant dense<0.000000e+00> : vector<48x64xf32>
    %179 = tpu.matmul %176, %178, %cst_124 {dimension_numbers = #tpu.dot_dimension_numbers<[1], [0], [0], [1], [0, 0, 1, 1], [], []>} : vector<48x32xf32>, vector<32x64xf32>, vector<48x64xf32> -> vector<48x64xf32>
    %c0_125 = arith.constant 0 : index
    %c0_126 = arith.constant 0 : index
    %c0_127 = arith.constant 0 : index
    %180 = vector.load %arg17[%c0_125, %c0_126, %c0_127] : memref<2x1x64xf32, #tpu.memory_space<vmem>>, vector<1x1x64xf32>
    %181 = vector.shape_cast %180 : vector<1x1x64xf32> to vector<1x64xf32>
    %182 = vector.broadcast %181 : vector<1x64xf32> to vector<48x64xf32>
    %183 = arith.addf %179, %182 : vector<48x64xf32>
    %cst_128 = arith.constant 0.636619746 : f32
    %184 = math.sqrt %cst_128 : f32
    %cst_129 = arith.constant 5.000000e-01 : f32
    %185 = vector.broadcast %cst_129 : f32 to vector<48x64xf32>
    %186 = arith.mulf %185, %183 : vector<48x64xf32>
    %cst_130 = arith.constant 4.471500e-02 : f32
    %187 = vector.broadcast %cst_130 : f32 to vector<48x64xf32>
    %188 = arith.mulf %187, %183 : vector<48x64xf32>
    %189 = arith.mulf %188, %183 : vector<48x64xf32>
    %190 = arith.mulf %189, %183 : vector<48x64xf32>
    %191 = arith.addf %183, %190 : vector<48x64xf32>
    %192 = vector.broadcast %184 : f32 to vector<48x64xf32>
    %193 = arith.mulf %192, %191 : vector<48x64xf32>
    %194 = math.tanh %193 : vector<48x64xf32>
    %cst_131 = arith.constant 1.000000e+00 : f32
    %195 = vector.broadcast %cst_131 : f32 to vector<48x64xf32>
    %196 = arith.addf %195, %194 : vector<48x64xf32>
    %197 = arith.mulf %186, %196 : vector<48x64xf32>
    %c0_132 = arith.constant 0 : index
    %c0_133 = arith.constant 0 : index
    %c0_134 = arith.constant 0 : index
    %198 = vector.load %arg18[%c0_132, %c0_133, %c0_134] : memref<2x64x32xf32, #tpu.memory_space<vmem>>, vector<1x64x32xf32>
    %199 = vector.shape_cast %198 : vector<1x64x32xf32> to vector<64x32xf32>
    %cst_135 = arith.constant dense<0.000000e+00> : vector<48x32xf32>
    %200 = tpu.matmul %197, %199, %cst_135 {dimension_numbers = #tpu.dot_dimension_numbers<[1], [0], [0], [1], [0, 0, 1, 1], [], []>} : vector<48x64xf32>, vector<64x32xf32>, vector<48x32xf32> -> vector<48x32xf32>
    %201 = arith.addf %150, %200 : vector<48x32xf32>
    %c0_136 = arith.constant 0 : index
    %c0_137 = arith.constant 0 : index
    %c0_138 = arith.constant 0 : index
    %202 = vector.load %arg19[%c0_136, %c0_137, %c0_138] : memref<2x1x32xf32, #tpu.memory_space<vmem>>, vector<1x1x32xf32>
    %203 = vector.shape_cast %202 : vector<1x1x32xf32> to vector<1x32xf32>
    %204 = vector.broadcast %203 : vector<1x32xf32> to vector<48x32xf32>
    %205 = arith.addf %201, %204 : vector<48x32xf32>
    %c1_139 = arith.constant 1 : index
    %c0_140 = arith.constant 0 : index
    %c0_141 = arith.constant 0 : index
    %206 = vector.load %arg4[%c1_139, %c0_140, %c0_141] : memref<2x1x32xf32, #tpu.memory_space<vmem>>, vector<1x1x32xf32>
    %207 = vector.shape_cast %206 : vector<1x1x32xf32> to vector<1x32xf32>
    %c1_142 = arith.constant 1 : index
    %c0_143 = arith.constant 0 : index
    %c0_144 = arith.constant 0 : index
    %208 = vector.load %arg5[%c1_142, %c0_143, %c0_144] : memref<2x1x32xf32, #tpu.memory_space<vmem>>, vector<1x1x32xf32>
    %209 = vector.shape_cast %208 : vector<1x1x32xf32> to vector<1x32xf32>
    %cst_145 = arith.constant dense<0.000000e+00> : vector<48xf32>
    %210 = vector.multi_reduction <add>, %205, %cst_145 [1] : vector<48x32xf32> to vector<48xf32>
    %211 = vector.shape_cast %210 : vector<48xf32> to vector<48x1xf32>
    %cst_146 = arith.constant 3.200000e+01 : f32
    %212 = vector.broadcast %cst_146 : f32 to vector<48x1xf32>
    %213 = arith.divf %211, %212 : vector<48x1xf32>
    %214 = vector.broadcast %213 : vector<48x1xf32> to vector<48x32xf32>
    %215 = arith.subf %205, %214 : vector<48x32xf32>
    %216 = arith.mulf %215, %215 : vector<48x32xf32>
    %cst_147 = arith.constant dense<0.000000e+00> : vector<48xf32>
    %217 = vector.multi_reduction <add>, %216, %cst_147 [1] : vector<48x32xf32> to vector<48xf32>
    %218 = vector.shape_cast %217 : vector<48xf32> to vector<48x1xf32>
    %cst_148 = arith.constant 3.200000e+01 : f32
    %219 = vector.broadcast %cst_148 : f32 to vector<48x1xf32>
    %220 = arith.divf %218, %219 : vector<48x1xf32>
    %221 = vector.broadcast %213 : vector<48x1xf32> to vector<48x32xf32>
    %222 = arith.subf %205, %221 : vector<48x32xf32>
    %cst_149 = arith.constant 9.99999974E-6 : f32
    %223 = vector.broadcast %cst_149 : f32 to vector<48x1xf32>
    %224 = arith.addf %220, %223 : vector<48x1xf32>
    %225 = math.rsqrt %224 : vector<48x1xf32>
    %226 = vector.broadcast %225 : vector<48x1xf32> to vector<48x32xf32>
    %227 = arith.mulf %222, %226 : vector<48x32xf32>
    %228 = vector.broadcast %207 : vector<1x32xf32> to vector<48x32xf32>
    %229 = arith.mulf %227, %228 : vector<48x32xf32>
    %230 = vector.broadcast %209 : vector<1x32xf32> to vector<48x32xf32>
    %231 = arith.addf %229, %230 : vector<48x32xf32>
    %c1_150 = arith.constant 1 : index
    %c0_151 = arith.constant 0 : index
    %c0_152 = arith.constant 0 : index
    %c0_153 = arith.constant 0 : index
    %232 = vector.load %arg6[%c1_150, %c0_151, %c0_152, %c0_153] : memref<2x4x32x8xf32, #tpu.memory_space<vmem>>, vector<1x4x32x8xf32>
    %233 = vector.shape_cast %232 : vector<1x4x32x8xf32> to vector<4x32x8xf32>
    %c1_154 = arith.constant 1 : index
    %c0_155 = arith.constant 0 : index
    %c0_156 = arith.constant 0 : index
    %c0_157 = arith.constant 0 : index
    %234 = vector.load %arg7[%c1_154, %c0_155, %c0_156, %c0_157] : memref<2x4x32x8xf32, #tpu.memory_space<vmem>>, vector<1x4x32x8xf32>
    %235 = vector.shape_cast %234 : vector<1x4x32x8xf32> to vector<4x32x8xf32>
    %c1_158 = arith.constant 1 : index
    %c0_159 = arith.constant 0 : index
    %c0_160 = arith.constant 0 : index
    %c0_161 = arith.constant 0 : index
    %236 = vector.load %arg8[%c1_158, %c0_159, %c0_160, %c0_161] : memref<2x4x32x8xf32, #tpu.memory_space<vmem>>, vector<1x4x32x8xf32>
    %237 = vector.shape_cast %236 : vector<1x4x32x8xf32> to vector<4x32x8xf32>
    %238 = vector.extract_strided_slice %233 {offsets = [0, 0, 0], sizes = [1, 32, 8], strides = [1, 1, 1]} : vector<4x32x8xf32> to vector<1x32x8xf32>
    %239 = vector.shape_cast %238 : vector<1x32x8xf32> to vector<32x8xf32>
    %cst_162 = arith.constant dense<0.000000e+00> : vector<48x8xf32>
    %240 = tpu.matmul %231, %239, %cst_162 {dimension_numbers = #tpu.dot_dimension_numbers<[1], [0], [0], [1], [0, 0, 1, 1], [], []>} : vector<48x32xf32>, vector<32x8xf32>, vector<48x8xf32> -> vector<48x8xf32>
    %c0_163 = arith.constant 0 : index
    %c0_164 = arith.constant 0 : index
    %c0_165 = arith.constant 0 : index
    %241 = vector.load %arg25[%c0_163, %c0_164, %c0_165] : memref<4x48x8xf32, #tpu.memory_space<vmem>>, vector<1x48x8xf32>
    %242 = vector.shape_cast %241 : vector<1x48x8xf32> to vector<48x8xf32>
    %243 = vector.shape_cast %240 : vector<48x8xf32> to vector<1x48x8xf32>
    tpu.vector_store %arg25[%c0_163, %c0_164, %c0_165], %243 {strides = array<i32>} : memref<4x48x8xf32, #tpu.memory_space<vmem>>, vector<1x48x8xf32>,
    %244 = vector.extract_strided_slice %235 {offsets = [0, 0, 0], sizes = [1, 32, 8], strides = [1, 1, 1]} : vector<4x32x8xf32> to vector<1x32x8xf32>
    %245 = vector.shape_cast %244 : vector<1x32x8xf32> to vector<32x8xf32>
    %cst_166 = arith.constant dense<0.000000e+00> : vector<48x8xf32>
    %246 = tpu.matmul %231, %245, %cst_166 {dimension_numbers = #tpu.dot_dimension_numbers<[1], [0], [0], [1], [0, 0, 1, 1], [], []>} : vector<48x32xf32>, vector<32x8xf32>, vector<48x8xf32> -> vector<48x8xf32>
    %c0_167 = arith.constant 0 : index
    %c0_168 = arith.constant 0 : index
    %c0_169 = arith.constant 0 : index
    %247 = vector.load %arg26[%c0_167, %c0_168, %c0_169] : memref<4x48x8xf32, #tpu.memory_space<vmem>>, vector<1x48x8xf32>
    %248 = vector.shape_cast %247 : vector<1x48x8xf32> to vector<48x8xf32>
    %249 = vector.shape_cast %246 : vector<48x8xf32> to vector<1x48x8xf32>
    tpu.vector_store %arg26[%c0_167, %c0_168, %c0_169], %249 {strides = array<i32>} : memref<4x48x8xf32, #tpu.memory_space<vmem>>, vector<1x48x8xf32>,
    %250 = vector.extract_strided_slice %237 {offsets = [0, 0, 0], sizes = [1, 32, 8], strides = [1, 1, 1]} : vector<4x32x8xf32> to vector<1x32x8xf32>
    %251 = vector.shape_cast %250 : vector<1x32x8xf32> to vector<32x8xf32>
    %cst_170 = arith.constant dense<0.000000e+00> : vector<48x8xf32>
    %252 = tpu.matmul %231, %251, %cst_170 {dimension_numbers = #tpu.dot_dimension_numbers<[1], [0], [0], [1], [0, 0, 1, 1], [], []>} : vector<48x32xf32>, vector<32x8xf32>, vector<48x8xf32> -> vector<48x8xf32>
    %c0_171 = arith.constant 0 : index
    %c0_172 = arith.constant 0 : index
    %c0_173 = arith.constant 0 : index
    %253 = vector.load %arg27[%c0_171, %c0_172, %c0_173] : memref<4x48x8xf32, #tpu.memory_space<vmem>>, vector<1x48x8xf32>
    %254 = vector.shape_cast %253 : vector<1x48x8xf32> to vector<48x8xf32>
    %255 = vector.shape_cast %252 : vector<48x8xf32> to vector<1x48x8xf32>
    tpu.vector_store %arg27[%c0_171, %c0_172, %c0_173], %255 {strides = array<i32>} : memref<4x48x8xf32, #tpu.memory_space<vmem>>, vector<1x48x8xf32>,
    %256 = vector.extract_strided_slice %233 {offsets = [1, 0, 0], sizes = [1, 32, 8], strides = [1, 1, 1]} : vector<4x32x8xf32> to vector<1x32x8xf32>
    %257 = vector.shape_cast %256 : vector<1x32x8xf32> to vector<32x8xf32>
    %cst_174 = arith.constant dense<0.000000e+00> : vector<48x8xf32>
    %258 = tpu.matmul %231, %257, %cst_174 {dimension_numbers = #tpu.dot_dimension_numbers<[1], [0], [0], [1], [0, 0, 1, 1], [], []>} : vector<48x32xf32>, vector<32x8xf32>, vector<48x8xf32> -> vector<48x8xf32>
    %c1_175 = arith.constant 1 : index
    %c0_176 = arith.constant 0 : index
    %c0_177 = arith.constant 0 : index
    %259 = vector.load %arg25[%c1_175, %c0_176, %c0_177] : memref<4x48x8xf32, #tpu.memory_space<vmem>>, vector<1x48x8xf32>
    %260 = vector.shape_cast %259 : vector<1x48x8xf32> to vector<48x8xf32>
    %261 = vector.shape_cast %258 : vector<48x8xf32> to vector<1x48x8xf32>
    tpu.vector_store %arg25[%c1_175, %c0_176, %c0_177], %261 {strides = array<i32>} : memref<4x48x8xf32, #tpu.memory_space<vmem>>, vector<1x48x8xf32>,
    %262 = vector.extract_strided_slice %235 {offsets = [1, 0, 0], sizes = [1, 32, 8], strides = [1, 1, 1]} : vector<4x32x8xf32> to vector<1x32x8xf32>
    %263 = vector.shape_cast %262 : vector<1x32x8xf32> to vector<32x8xf32>
    %cst_178 = arith.constant dense<0.000000e+00> : vector<48x8xf32>
    %264 = tpu.matmul %231, %263, %cst_178 {dimension_numbers = #tpu.dot_dimension_numbers<[1], [0], [0], [1], [0, 0, 1, 1], [], []>} : vector<48x32xf32>, vector<32x8xf32>, vector<48x8xf32> -> vector<48x8xf32>
    %c1_179 = arith.constant 1 : index
    %c0_180 = arith.constant 0 : index
    %c0_181 = arith.constant 0 : index
    %265 = vector.load %arg26[%c1_179, %c0_180, %c0_181] : memref<4x48x8xf32, #tpu.memory_space<vmem>>, vector<1x48x8xf32>
    %266 = vector.shape_cast %265 : vector<1x48x8xf32> to vector<48x8xf32>
    %267 = vector.shape_cast %264 : vector<48x8xf32> to vector<1x48x8xf32>
    tpu.vector_store %arg26[%c1_179, %c0_180, %c0_181], %267 {strides = array<i32>} : memref<4x48x8xf32, #tpu.memory_space<vmem>>, vector<1x48x8xf32>,
    %268 = vector.extract_strided_slice %237 {offsets = [1, 0, 0], sizes = [1, 32, 8], strides = [1, 1, 1]} : vector<4x32x8xf32> to vector<1x32x8xf32>
    %269 = vector.shape_cast %268 : vector<1x32x8xf32> to vector<32x8xf32>
    %cst_182 = arith.constant dense<0.000000e+00> : vector<48x8xf32>
    %270 = tpu.matmul %231, %269, %cst_182 {dimension_numbers = #tpu.dot_dimension_numbers<[1], [0], [0], [1], [0, 0, 1, 1], [], []>} : vector<48x32xf32>, vector<32x8xf32>, vector<48x8xf32> -> vector<48x8xf32>
    %c1_183 = arith.constant 1 : index
    %c0_184 = arith.constant 0 : index
    %c0_185 = arith.constant 0 : index
    %271 = vector.load %arg27[%c1_183, %c0_184, %c0_185] : memref<4x48x8xf32, #tpu.memory_space<vmem>>, vector<1x48x8xf32>
    %272 = vector.shape_cast %271 : vector<1x48x8xf32> to vector<48x8xf32>
    %273 = vector.shape_cast %270 : vector<48x8xf32> to vector<1x48x8xf32>
    tpu.vector_store %arg27[%c1_183, %c0_184, %c0_185], %273 {strides = array<i32>} : memref<4x48x8xf32, #tpu.memory_space<vmem>>, vector<1x48x8xf32>,
    %274 = vector.extract_strided_slice %233 {offsets = [2, 0, 0], sizes = [1, 32, 8], strides = [1, 1, 1]} : vector<4x32x8xf32> to vector<1x32x8xf32>
    %275 = vector.shape_cast %274 : vector<1x32x8xf32> to vector<32x8xf32>
    %cst_186 = arith.constant dense<0.000000e+00> : vector<48x8xf32>
    %276 = tpu.matmul %231, %275, %cst_186 {dimension_numbers = #tpu.dot_dimension_numbers<[1], [0], [0], [1], [0, 0, 1, 1], [], []>} : vector<48x32xf32>, vector<32x8xf32>, vector<48x8xf32> -> vector<48x8xf32>
    %c2_187 = arith.constant 2 : index
    %c0_188 = arith.constant 0 : index
    %c0_189 = arith.constant 0 : index
    %277 = vector.load %arg25[%c2_187, %c0_188, %c0_189] : memref<4x48x8xf32, #tpu.memory_space<vmem>>, vector<1x48x8xf32>
    %278 = vector.shape_cast %277 : vector<1x48x8xf32> to vector<48x8xf32>
    %279 = vector.shape_cast %276 : vector<48x8xf32> to vector<1x48x8xf32>
    tpu.vector_store %arg25[%c2_187, %c0_188, %c0_189], %279 {strides = array<i32>} : memref<4x48x8xf32, #tpu.memory_space<vmem>>, vector<1x48x8xf32>,
    %280 = vector.extract_strided_slice %235 {offsets = [2, 0, 0], sizes = [1, 32, 8], strides = [1, 1, 1]} : vector<4x32x8xf32> to vector<1x32x8xf32>
    %281 = vector.shape_cast %280 : vector<1x32x8xf32> to vector<32x8xf32>
    %cst_190 = arith.constant dense<0.000000e+00> : vector<48x8xf32>
    %282 = tpu.matmul %231, %281, %cst_190 {dimension_numbers = #tpu.dot_dimension_numbers<[1], [0], [0], [1], [0, 0, 1, 1], [], []>} : vector<48x32xf32>, vector<32x8xf32>, vector<48x8xf32> -> vector<48x8xf32>
    %c2_191 = arith.constant 2 : index
    %c0_192 = arith.constant 0 : index
    %c0_193 = arith.constant 0 : index
    %283 = vector.load %arg26[%c2_191, %c0_192, %c0_193] : memref<4x48x8xf32, #tpu.memory_space<vmem>>, vector<1x48x8xf32>
    %284 = vector.shape_cast %283 : vector<1x48x8xf32> to vector<48x8xf32>
    %285 = vector.shape_cast %282 : vector<48x8xf32> to vector<1x48x8xf32>
    tpu.vector_store %arg26[%c2_191, %c0_192, %c0_193], %285 {strides = array<i32>} : memref<4x48x8xf32, #tpu.memory_space<vmem>>, vector<1x48x8xf32>,
    %286 = vector.extract_strided_slice %237 {offsets = [2, 0, 0], sizes = [1, 32, 8], strides = [1, 1, 1]} : vector<4x32x8xf32> to vector<1x32x8xf32>
    %287 = vector.shape_cast %286 : vector<1x32x8xf32> to vector<32x8xf32>
    %cst_194 = arith.constant dense<0.000000e+00> : vector<48x8xf32>
    %288 = tpu.matmul %231, %287, %cst_194 {dimension_numbers = #tpu.dot_dimension_numbers<[1], [0], [0], [1], [0, 0, 1, 1], [], []>} : vector<48x32xf32>, vector<32x8xf32>, vector<48x8xf32> -> vector<48x8xf32>
    %c2_195 = arith.constant 2 : index
    %c0_196 = arith.constant 0 : index
    %c0_197 = arith.constant 0 : index
    %289 = vector.load %arg27[%c2_195, %c0_196, %c0_197] : memref<4x48x8xf32, #tpu.memory_space<vmem>>, vector<1x48x8xf32>
    %290 = vector.shape_cast %289 : vector<1x48x8xf32> to vector<48x8xf32>
    %291 = vector.shape_cast %288 : vector<48x8xf32> to vector<1x48x8xf32>
    tpu.vector_store %arg27[%c2_195, %c0_196, %c0_197], %291 {strides = array<i32>} : memref<4x48x8xf32, #tpu.memory_space<vmem>>, vector<1x48x8xf32>,
    %292 = vector.extract_strided_slice %233 {offsets = [3, 0, 0], sizes = [1, 32, 8], strides = [1, 1, 1]} : vector<4x32x8xf32> to vector<1x32x8xf32>
    %293 = vector.shape_cast %292 : vector<1x32x8xf32> to vector<32x8xf32>
    %cst_198 = arith.constant dense<0.000000e+00> : vector<48x8xf32>
    %294 = tpu.matmul %231, %293, %cst_198 {dimension_numbers = #tpu.dot_dimension_numbers<[1], [0], [0], [1], [0, 0, 1, 1], [], []>} : vector<48x32xf32>, vector<32x8xf32>, vector<48x8xf32> -> vector<48x8xf32>
    %c3_199 = arith.constant 3 : index
    %c0_200 = arith.constant 0 : index
    %c0_201 = arith.constant 0 : index
    %295 = vector.load %arg25[%c3_199, %c0_200, %c0_201] : memref<4x48x8xf32, #tpu.memory_space<vmem>>, vector<1x48x8xf32>
    %296 = vector.shape_cast %295 : vector<1x48x8xf32> to vector<48x8xf32>
    %297 = vector.shape_cast %294 : vector<48x8xf32> to vector<1x48x8xf32>
    tpu.vector_store %arg25[%c3_199, %c0_200, %c0_201], %297 {strides = array<i32>} : memref<4x48x8xf32, #tpu.memory_space<vmem>>, vector<1x48x8xf32>,
    %298 = vector.extract_strided_slice %235 {offsets = [3, 0, 0], sizes = [1, 32, 8], strides = [1, 1, 1]} : vector<4x32x8xf32> to vector<1x32x8xf32>
    %299 = vector.shape_cast %298 : vector<1x32x8xf32> to vector<32x8xf32>
    %cst_202 = arith.constant dense<0.000000e+00> : vector<48x8xf32>
    %300 = tpu.matmul %231, %299, %cst_202 {dimension_numbers = #tpu.dot_dimension_numbers<[1], [0], [0], [1], [0, 0, 1, 1], [], []>} : vector<48x32xf32>, vector<32x8xf32>, vector<48x8xf32> -> vector<48x8xf32>
    %c3_203 = arith.constant 3 : index
    %c0_204 = arith.constant 0 : index
    %c0_205 = arith.constant 0 : index
    %301 = vector.load %arg26[%c3_203, %c0_204, %c0_205] : memref<4x48x8xf32, #tpu.memory_space<vmem>>, vector<1x48x8xf32>
    %302 = vector.shape_cast %301 : vector<1x48x8xf32> to vector<48x8xf32>
    %303 = vector.shape_cast %300 : vector<48x8xf32> to vector<1x48x8xf32>
    tpu.vector_store %arg26[%c3_203, %c0_204, %c0_205], %303 {strides = array<i32>} : memref<4x48x8xf32, #tpu.memory_space<vmem>>, vector<1x48x8xf32>,
    %304 = vector.extract_strided_slice %237 {offsets = [3, 0, 0], sizes = [1, 32, 8], strides = [1, 1, 1]} : vector<4x32x8xf32> to vector<1x32x8xf32>
    %305 = vector.shape_cast %304 : vector<1x32x8xf32> to vector<32x8xf32>
    %cst_206 = arith.constant dense<0.000000e+00> : vector<48x8xf32>
    %306 = tpu.matmul %231, %305, %cst_206 {dimension_numbers = #tpu.dot_dimension_numbers<[1], [0], [0], [1], [0, 0, 1, 1], [], []>} : vector<48x32xf32>, vector<32x8xf32>, vector<48x8xf32> -> vector<48x8xf32>
    %c3_207 = arith.constant 3 : index
    %c0_208 = arith.constant 0 : index
    %c0_209 = arith.constant 0 : index
    %307 = vector.load %arg27[%c3_207, %c0_208, %c0_209] : memref<4x48x8xf32, #tpu.memory_space<vmem>>, vector<1x48x8xf32>
    %308 = vector.shape_cast %307 : vector<1x48x8xf32> to vector<48x8xf32>
    %309 = vector.shape_cast %306 : vector<48x8xf32> to vector<1x48x8xf32>
    tpu.vector_store %arg27[%c3_207, %c0_208, %c0_209], %309 {strides = array<i32>} : memref<4x48x8xf32, #tpu.memory_space<vmem>>, vector<1x48x8xf32>,
    %c0_210 = arith.constant 0 : index
    %c0_211 = arith.constant 0 : index
    %c0_212 = arith.constant 0 : index
    %310 = vector.load %arg25[%c0_210, %c0_211, %c0_212] : memref<4x48x8xf32, #tpu.memory_space<vmem>>, vector<4x48x8xf32>
    %c1_213 = arith.constant 1 : index
    %c0_214 = arith.constant 0 : index
    %c0_215 = arith.constant 0 : index
    %c0_216 = arith.constant 0 : index
    %311 = vector.load %arg9[%c1_213, %c0_214, %c0_215, %c0_216] : memref<2x4x1x8xf32, #tpu.memory_space<vmem>>, vector<1x4x1x8xf32>
    %312 = vector.shape_cast %311 : vector<1x4x1x8xf32> to vector<4x1x8xf32>
    %313 = vector.broadcast %312 : vector<4x1x8xf32> to vector<4x48x8xf32>
    %314 = arith.addf %310, %313 : vector<4x48x8xf32>
    %c0_217 = arith.constant 0 : index
    %c0_218 = arith.constant 0 : index
    %c0_219 = arith.constant 0 : index
    %315 = vector.load %arg26[%c0_217, %c0_218, %c0_219] : memref<4x48x8xf32, #tpu.memory_space<vmem>>, vector<4x48x8xf32>
    %c1_220 = arith.constant 1 : index
    %c0_221 = arith.constant 0 : index
    %c0_222 = arith.constant 0 : index
    %c0_223 = arith.constant 0 : index
    %316 = vector.load %arg10[%c1_220, %c0_221, %c0_222, %c0_223] : memref<2x4x1x8xf32, #tpu.memory_space<vmem>>, vector<1x4x1x8xf32>
    %317 = vector.shape_cast %316 : vector<1x4x1x8xf32> to vector<4x1x8xf32>
    %318 = vector.broadcast %317 : vector<4x1x8xf32> to vector<4x48x8xf32>
    %319 = arith.addf %315, %318 : vector<4x48x8xf32>
    %c0_224 = arith.constant 0 : index
    %c0_225 = arith.constant 0 : index
    %c0_226 = arith.constant 0 : index
    %320 = vector.load %arg27[%c0_224, %c0_225, %c0_226] : memref<4x48x8xf32, #tpu.memory_space<vmem>>, vector<4x48x8xf32>
    %c1_227 = arith.constant 1 : index
    %c0_228 = arith.constant 0 : index
    %c0_229 = arith.constant 0 : index
    %c0_230 = arith.constant 0 : index
    %321 = vector.load %arg11[%c1_227, %c0_228, %c0_229, %c0_230] : memref<2x4x1x8xf32, #tpu.memory_space<vmem>>, vector<1x4x1x8xf32>
    %322 = vector.shape_cast %321 : vector<1x4x1x8xf32> to vector<4x1x8xf32>
    %323 = vector.broadcast %322 : vector<4x1x8xf32> to vector<4x48x8xf32>
    %324 = arith.addf %320, %323 : vector<4x48x8xf32>
    "tpu.trace_start"() <{level = 10 : i32, message = "hre,hse->hrs"}> : () -> ()
    %cst_231 = arith.constant dense<0.000000e+00> : vector<4x48x48xf32>
    %325 = tpu.matmul %314, %319, %cst_231 {dimension_numbers = #tpu.dot_dimension_numbers<[2], [2], [1], [1], [0, 0, 0, 1, 1, 1], [0], [0]>} : vector<4x48x8xf32>, vector<4x48x8xf32>, vector<4x48x48xf32> -> vector<4x48x48xf32>
    "tpu.trace_stop"() : () -> ()
    %cst_232 = arith.constant 0.353553385 : f32
    %326 = vector.broadcast %cst_232 : f32 to vector<4x48x48xf32>
    %327 = arith.mulf %325, %326 : vector<4x48x48xf32>
    %328 = vector.shape_cast %5 : vector<48x48xf32> to vector<1x48x48xf32>
    %329 = vector.broadcast %328 : vector<1x48x48xf32> to vector<4x48x48xf32>
    %330 = arith.addf %327, %329 : vector<4x48x48xf32>
    %cst_233 = arith.constant dense<0xFF800000> : vector<4x48xf32>
    %331 = vector.multi_reduction <maximumf>, %330, %cst_233 [2] : vector<4x48x48xf32> to vector<4x48xf32>
    %332 = vector.shape_cast %331 : vector<4x48xf32> to vector<4x48x1xf32>
    %333 = vector.broadcast %332 : vector<4x48x1xf32> to vector<4x48x48xf32>
    %334 = arith.subf %330, %333 : vector<4x48x48xf32>
    %335 = math.exp %334 : vector<4x48x48xf32>
    %cst_234 = arith.constant dense<0.000000e+00> : vector<4x48xf32>
    %336 = vector.multi_reduction <add>, %335, %cst_234 [2] : vector<4x48x48xf32> to vector<4x48xf32>
    %337 = vector.shape_cast %336 : vector<4x48xf32> to vector<4x48x1xf32>
    %338 = tpu.reciprocal %337 {approx = true} : vector<4x48x1xf32> -> vector<4x48x1xf32>
    %339 = vector.broadcast %338 : vector<4x48x1xf32> to vector<4x48x48xf32>
    %340 = arith.mulf %335, %339 : vector<4x48x48xf32>
    "tpu.trace_start"() <{level = 10 : i32, message = "hrs,hse->hre"}> : () -> ()
    %cst_235 = arith.constant dense<0.000000e+00> : vector<4x48x8xf32>
    %341 = tpu.matmul %340, %324, %cst_235 {dimension_numbers = #tpu.dot_dimension_numbers<[2], [1], [1], [2], [0, 0, 0, 1, 1, 2], [0], [0]>} : vector<4x48x48xf32>, vector<4x48x8xf32>, vector<4x48x8xf32> -> vector<4x48x8xf32>
    "tpu.trace_stop"() : () -> ()
    %c1_236 = arith.constant 1 : index
    %c0_237 = arith.constant 0 : index
    %c0_238 = arith.constant 0 : index
    %c0_239 = arith.constant 0 : index
    %342 = vector.load %arg12[%c1_236, %c0_237, %c0_238, %c0_239] : memref<2x4x8x32xf32, #tpu.memory_space<vmem>>, vector<1x4x8x32xf32>
    %343 = vector.shape_cast %342 : vector<1x4x8x32xf32> to vector<4x8x32xf32>
    "tpu.trace_start"() <{level = 10 : i32, message = "hre,hef->hrf"}> : () -> ()
    %cst_240 = arith.constant dense<0.000000e+00> : vector<4x48x32xf32>
    %344 = tpu.matmul %341, %343, %cst_240 {dimension_numbers = #tpu.dot_dimension_numbers<[2], [1], [1], [2], [0, 0, 0, 1, 1, 2], [0], [0]>} : vector<4x48x8xf32>, vector<4x8x32xf32>, vector<4x48x32xf32> -> vector<4x48x32xf32>
    "tpu.trace_stop"() : () -> ()
    %cst_241 = arith.constant dense<0.000000e+00> : vector<48x32xf32>
    %345 = vector.multi_reduction <add>, %344, %cst_241 [0] : vector<4x48x32xf32> to vector<48x32xf32>
    %346 = arith.addf %205, %345 : vector<48x32xf32>
    %c1_242 = arith.constant 1 : index
    %c0_243 = arith.constant 0 : index
    %c0_244 = arith.constant 0 : index
    %347 = vector.load %arg13[%c1_242, %c0_243, %c0_244] : memref<2x1x32xf32, #tpu.memory_space<vmem>>, vector<1x1x32xf32>
    %348 = vector.shape_cast %347 : vector<1x1x32xf32> to vector<1x32xf32>
    %349 = vector.broadcast %348 : vector<1x32xf32> to vector<48x32xf32>
    %350 = arith.addf %346, %349 : vector<48x32xf32>
    %c1_245 = arith.constant 1 : index
    %c0_246 = arith.constant 0 : index
    %c0_247 = arith.constant 0 : index
    %351 = vector.load %arg14[%c1_245, %c0_246, %c0_247] : memref<2x1x32xf32, #tpu.memory_space<vmem>>, vector<1x1x32xf32>
    %352 = vector.shape_cast %351 : vector<1x1x32xf32> to vector<1x32xf32>
    %c1_248 = arith.constant 1 : index
    %c0_249 = arith.constant 0 : index
    %c0_250 = arith.constant 0 : index
    %353 = vector.load %arg15[%c1_248, %c0_249, %c0_250] : memref<2x1x32xf32, #tpu.memory_space<vmem>>, vector<1x1x32xf32>
    %354 = vector.shape_cast %353 : vector<1x1x32xf32> to vector<1x32xf32>
    %cst_251 = arith.constant dense<0.000000e+00> : vector<48xf32>
    %355 = vector.multi_reduction <add>, %350, %cst_251 [1] : vector<48x32xf32> to vector<48xf32>
    %356 = vector.shape_cast %355 : vector<48xf32> to vector<48x1xf32>
    %cst_252 = arith.constant 3.200000e+01 : f32
    %357 = vector.broadcast %cst_252 : f32 to vector<48x1xf32>
    %358 = arith.divf %356, %357 : vector<48x1xf32>
    %359 = vector.broadcast %358 : vector<48x1xf32> to vector<48x32xf32>
    %360 = arith.subf %350, %359 : vector<48x32xf32>
    %361 = arith.mulf %360, %360 : vector<48x32xf32>
    %cst_253 = arith.constant dense<0.000000e+00> : vector<48xf32>
    %362 = vector.multi_reduction <add>, %361, %cst_253 [1] : vector<48x32xf32> to vector<48xf32>
    %363 = vector.shape_cast %362 : vector<48xf32> to vector<48x1xf32>
    %cst_254 = arith.constant 3.200000e+01 : f32
    %364 = vector.broadcast %cst_254 : f32 to vector<48x1xf32>
    %365 = arith.divf %363, %364 : vector<48x1xf32>
    %366 = vector.broadcast %358 : vector<48x1xf32> to vector<48x32xf32>
    %367 = arith.subf %350, %366 : vector<48x32xf32>
    %cst_255 = arith.constant 9.99999974E-6 : f32
    %368 = vector.broadcast %cst_255 : f32 to vector<48x1xf32>
    %369 = arith.addf %365, %368 : vector<48x1xf32>
    %370 = math.rsqrt %369 : vector<48x1xf32>
    %371 = vector.broadcast %370 : vector<48x1xf32> to vector<48x32xf32>
    %372 = arith.mulf %367, %371 : vector<48x32xf32>
    %373 = vector.broadcast %352 : vector<1x32xf32> to vector<48x32xf32>
    %374 = arith.mulf %372, %373 : vector<48x32xf32>
    %375 = vector.broadcast %354 : vector<1x32xf32> to vector<48x32xf32>
    %376 = arith.addf %374, %375 : vector<48x32xf32>
    %c1_256 = arith.constant 1 : index
    %c0_257 = arith.constant 0 : index
    %c0_258 = arith.constant 0 : index
    %377 = vector.load %arg16[%c1_256, %c0_257, %c0_258] : memref<2x32x64xf32, #tpu.memory_space<vmem>>, vector<1x32x64xf32>
    %378 = vector.shape_cast %377 : vector<1x32x64xf32> to vector<32x64xf32>
    %cst_259 = arith.constant dense<0.000000e+00> : vector<48x64xf32>
    %379 = tpu.matmul %376, %378, %cst_259 {dimension_numbers = #tpu.dot_dimension_numbers<[1], [0], [0], [1], [0, 0, 1, 1], [], []>} : vector<48x32xf32>, vector<32x64xf32>, vector<48x64xf32> -> vector<48x64xf32>
    %c1_260 = arith.constant 1 : index
    %c0_261 = arith.constant 0 : index
    %c0_262 = arith.constant 0 : index
    %380 = vector.load %arg17[%c1_260, %c0_261, %c0_262] : memref<2x1x64xf32, #tpu.memory_space<vmem>>, vector<1x1x64xf32>
    %381 = vector.shape_cast %380 : vector<1x1x64xf32> to vector<1x64xf32>
    %382 = vector.broadcast %381 : vector<1x64xf32> to vector<48x64xf32>
    %383 = arith.addf %379, %382 : vector<48x64xf32>
    %cst_263 = arith.constant 0.636619746 : f32
    %384 = math.sqrt %cst_263 : f32
    %cst_264 = arith.constant 5.000000e-01 : f32
    %385 = vector.broadcast %cst_264 : f32 to vector<48x64xf32>
    %386 = arith.mulf %385, %383 : vector<48x64xf32>
    %cst_265 = arith.constant 4.471500e-02 : f32
    %387 = vector.broadcast %cst_265 : f32 to vector<48x64xf32>
    %388 = arith.mulf %387, %383 : vector<48x64xf32>
    %389 = arith.mulf %388, %383 : vector<48x64xf32>
    %390 = arith.mulf %389, %383 : vector<48x64xf32>
    %391 = arith.addf %383, %390 : vector<48x64xf32>
    %392 = vector.broadcast %384 : f32 to vector<48x64xf32>
    %393 = arith.mulf %392, %391 : vector<48x64xf32>
    %394 = math.tanh %393 : vector<48x64xf32>
    %cst_266 = arith.constant 1.000000e+00 : f32
    %395 = vector.broadcast %cst_266 : f32 to vector<48x64xf32>
    %396 = arith.addf %395, %394 : vector<48x64xf32>
    %397 = arith.mulf %386, %396 : vector<48x64xf32>
    %c1_267 = arith.constant 1 : index
    %c0_268 = arith.constant 0 : index
    %c0_269 = arith.constant 0 : index
    %398 = vector.load %arg18[%c1_267, %c0_268, %c0_269] : memref<2x64x32xf32, #tpu.memory_space<vmem>>, vector<1x64x32xf32>
    %399 = vector.shape_cast %398 : vector<1x64x32xf32> to vector<64x32xf32>
    %cst_270 = arith.constant dense<0.000000e+00> : vector<48x32xf32>
    %400 = tpu.matmul %397, %399, %cst_270 {dimension_numbers = #tpu.dot_dimension_numbers<[1], [0], [0], [1], [0, 0, 1, 1], [], []>} : vector<48x64xf32>, vector<64x32xf32>, vector<48x32xf32> -> vector<48x32xf32>
    %401 = arith.addf %350, %400 : vector<48x32xf32>
    %c1_271 = arith.constant 1 : index
    %c0_272 = arith.constant 0 : index
    %c0_273 = arith.constant 0 : index
    %402 = vector.load %arg19[%c1_271, %c0_272, %c0_273] : memref<2x1x32xf32, #tpu.memory_space<vmem>>, vector<1x1x32xf32>
    %403 = vector.shape_cast %402 : vector<1x1x32xf32> to vector<1x32xf32>
    %404 = vector.broadcast %403 : vector<1x32xf32> to vector<48x32xf32>
    %405 = arith.addf %401, %404 : vector<48x32xf32>
    %c0_274 = arith.constant 0 : index
    %c0_275 = arith.constant 0 : index
    %406 = vector.load %arg20[%c0_274, %c0_275] : memref<1x32xf32, #tpu.memory_space<vmem>>, vector<1x32xf32>
    %c0_276 = arith.constant 0 : index
    %c0_277 = arith.constant 0 : index
    %407 = vector.load %arg21[%c0_276, %c0_277] : memref<1x32xf32, #tpu.memory_space<vmem>>, vector<1x32xf32>
    %c0_278 = arith.constant 0 : index
    %c0_279 = arith.constant 0 : index
    %408 = vector.load %arg22[%c0_278, %c0_279] : memref<32x10xf32, #tpu.memory_space<vmem>>, vector<32x10xf32>
    %c0_280 = arith.constant 0 : index
    %c0_281 = arith.constant 0 : index
    %409 = vector.load %arg23[%c0_280, %c0_281] : memref<1x10xf32, #tpu.memory_space<vmem>>, vector<1x10xf32>
    %410 = vector.extract_strided_slice %405 {offsets = [0, 0], sizes = [1, 32], strides = [1, 1]} : vector<48x32xf32> to vector<1x32xf32>
    %cst_282 = arith.constant dense<0.000000e+00> : vector<1xf32>
    %411 = vector.multi_reduction <add>, %410, %cst_282 [1] : vector<1x32xf32> to vector<1xf32>
    %412 = vector.shape_cast %411 : vector<1xf32> to vector<1x1xf32>
    %cst_283 = arith.constant 3.200000e+01 : f32
    %413 = vector.broadcast %cst_283 : f32 to vector<1x1xf32>
    %414 = arith.divf %412, %413 : vector<1x1xf32>
    %415 = vector.broadcast %414 : vector<1x1xf32> to vector<1x32xf32>
    %416 = arith.subf %410, %415 : vector<1x32xf32>
    %417 = arith.mulf %416, %416 : vector<1x32xf32>
    %cst_284 = arith.constant dense<0.000000e+00> : vector<1xf32>
    %418 = vector.multi_reduction <add>, %417, %cst_284 [1] : vector<1x32xf32> to vector<1xf32>
    %419 = vector.shape_cast %418 : vector<1xf32> to vector<1x1xf32>
    %cst_285 = arith.constant 3.200000e+01 : f32
    %420 = vector.broadcast %cst_285 : f32 to vector<1x1xf32>
    %421 = arith.divf %419, %420 : vector<1x1xf32>
    %422 = vector.broadcast %414 : vector<1x1xf32> to vector<1x32xf32>
    %423 = arith.subf %410, %422 : vector<1x32xf32>
    %cst_286 = arith.constant 9.99999974E-6 : f32
    %424 = vector.broadcast %cst_286 : f32 to vector<1x1xf32>
    %425 = arith.addf %421, %424 : vector<1x1xf32>
    %426 = math.rsqrt %425 : vector<1x1xf32>
    %427 = vector.broadcast %426 : vector<1x1xf32> to vector<1x32xf32>
    %428 = arith.mulf %423, %427 : vector<1x32xf32>
    %429 = arith.mulf %428, %406 : vector<1x32xf32>
    %430 = arith.addf %429, %407 : vector<1x32xf32>
    %cst_287 = arith.constant dense<0.000000e+00> : vector<1x10xf32>
    %431 = tpu.matmul %430, %408, %cst_287 {dimension_numbers = #tpu.dot_dimension_numbers<[1], [0], [0], [1], [0, 0, 1, 1], [], []>} : vector<1x32xf32>, vector<32x10xf32>, vector<1x10xf32> -> vector<1x10xf32>
    %432 = arith.addf %431, %409 : vector<1x10xf32>
    %c0_288 = arith.constant 0 : index
    %c0_289 = arith.constant 0 : index
    %433 = vector.load %arg24[%c0_288, %c0_289] : memref<2x10xf32, #tpu.memory_space<vmem>>, vector<1x10xf32>
    tpu.vector_store %arg24[%c0_288, %c0_289], %432 {strides = array<i32>} : memref<2x10xf32, #tpu.memory_space<vmem>>, vector<1x10xf32>,
    %434 = vector.extract_strided_slice %405 {offsets = [24, 0], sizes = [1, 32], strides = [1, 1]} : vector<48x32xf32> to vector<1x32xf32>
    %cst_290 = arith.constant dense<0.000000e+00> : vector<1xf32>
    %435 = vector.multi_reduction <add>, %434, %cst_290 [1] : vector<1x32xf32> to vector<1xf32>
    %436 = vector.shape_cast %435 : vector<1xf32> to vector<1x1xf32>
    %cst_291 = arith.constant 3.200000e+01 : f32
    %437 = vector.broadcast %cst_291 : f32 to vector<1x1xf32>
    %438 = arith.divf %436, %437 : vector<1x1xf32>
    %439 = vector.broadcast %438 : vector<1x1xf32> to vector<1x32xf32>
    %440 = arith.subf %434, %439 : vector<1x32xf32>
    %441 = arith.mulf %440, %440 : vector<1x32xf32>
    %cst_292 = arith.constant dense<0.000000e+00> : vector<1xf32>
    %442 = vector.multi_reduction <add>, %441, %cst_292 [1] : vector<1x32xf32> to vector<1xf32>
    %443 = vector.shape_cast %442 : vector<1xf32> to vector<1x1xf32>
    %cst_293 = arith.constant 3.200000e+01 : f32
    %444 = vector.broadcast %cst_293 : f32 to vector<1x1xf32>
    %445 = arith.divf %443, %444 : vector<1x1xf32>
    %446 = vector.broadcast %438 : vector<1x1xf32> to vector<1x32xf32>
    %447 = arith.subf %434, %446 : vector<1x32xf32>
    %cst_294 = arith.constant 9.99999974E-6 : f32
    %448 = vector.broadcast %cst_294 : f32 to vector<1x1xf32>
    %449 = arith.addf %445, %448 : vector<1x1xf32>
    %450 = math.rsqrt %449 : vector<1x1xf32>
    %451 = vector.broadcast %450 : vector<1x1xf32> to vector<1x32xf32>
    %452 = arith.mulf %447, %451 : vector<1x32xf32>
    %453 = arith.mulf %452, %406 : vector<1x32xf32>
    %454 = arith.addf %453, %407 : vector<1x32xf32>
    %cst_295 = arith.constant dense<0.000000e+00> : vector<1x10xf32>
    %455 = tpu.matmul %454, %408, %cst_295 {dimension_numbers = #tpu.dot_dimension_numbers<[1], [0], [0], [1], [0, 0, 1, 1], [], []>} : vector<1x32xf32>, vector<32x10xf32>, vector<1x10xf32> -> vector<1x10xf32>
    %456 = arith.addf %455, %409 : vector<1x10xf32>
    %c1_296 = arith.constant 1 : index
    %c0_297 = arith.constant 0 : index
    %457 = vector.load %arg24[%c1_296, %c0_297] : memref<2x10xf32, #tpu.memory_space<vmem>>, vector<1x10xf32>
    tpu.vector_store %arg24[%c1_296, %c0_297], %456 {strides = array<i32>} : memref<2x10xf32, #tpu.memory_space<vmem>>, vector<1x10xf32>,
    return
  }
}

</mosaic_0001>

<bundles_post_ra>
// kernel: tpu_custom_call.1
= control target key start
LH: loop header
LB: loop body
LE: loop exit
PB: predicated region body
PF: predicated region fallthrough
CT: control target
= control target key end

     0   :  { %s13443_s0 = inlined_call_operand.vmem [shape: f32[48,64], index: 0, kind: input, shape index: {}]   ;;  %s13444_s1 = inlined_call_operand.vmem [shape: f32[48,48], index: 1, kind: input, shape index: {}]   ;;  %s13445_s2 = inlined_call_operand.vmem [shape: f32[64,32], index: 2, kind: input, shape index: {}]   ;;  %s13446_s3 = inlined_call_operand.vmem [shape: f32[48,32], index: 3, kind: input, shape index: {}]   ;;  %s13447_s4 = inlined_call_operand.vmem [shape: f32[2,1,32], index: 4, kind: input, shape index: {}]   ;;  %s13448_s5 = inlined_call_operand.vmem [shape: f32[2,1,32], index: 5, kind: input, shape index: {}]   ;;  %s13449_s6 = inlined_call_operand.vmem [shape: f32[2,4,32,8], index: 6, kind: input, shape index: {}]   ;;  %s13450_s7 = inlined_call_operand.vmem [shape: f32[2,4,32,8], index: 7, kind: input, shape index: {}]   ;;  %s13451_s8 = inlined_call_operand.vmem [shape: f32[2,4,32,8], index: 8, kind: input, shape index: {}]   ;;  %s13452_s9 = inlined_call_operand.vmem [shape: f32[2,4,1,8], index: 9, kind: input, shape index: {}]   ;;  %s13453_s10 = inlined_call_operand.vmem [shape: f32[2,4,1,8], index: 10, kind: input, shape index: {}]   ;;  %s13454_s11 = inlined_call_operand.vmem [shape: f32[2,4,1,8], index: 11, kind: input, shape index: {}]   ;;  %s13455_s12 = inlined_call_operand.vmem [shape: f32[2,4,8,32], index: 12, kind: input, shape index: {}]   ;;  %s13456_s13 = inlined_call_operand.vmem [shape: f32[2,1,32], index: 13, kind: input, shape index: {}]   ;;  %s13457_s14 = inlined_call_operand.vmem [shape: f32[2,1,32], index: 14, kind: input, shape index: {}]   ;;  %s13458_s15 = inlined_call_operand.vmem [shape: f32[2,1,32], index: 15, kind: input, shape index: {}]   ;;  %s13459_s16 = inlined_call_operand.vmem [shape: f32[2,32,64], index: 16, kind: input, shape index: {}]   ;;  %s13460_s17 = inlined_call_operand.vmem [shape: f32[2,1,64], index: 17, kind: input, shape index: {}]   ;;  %s13461_s18 = inlined_call_operand.vmem [shape: f32[2,64,32], index: 18, kind: input, shape index: {}]   ;;  %s13462_s19 = inlined_call_operand.vmem [shape: f32[2,1,32], index: 19, kind: input, shape index: {}]   ;;  %s13463_s20 = inlined_call_operand.vmem [shape: f32[1,32], index: 20, kind: input, shape index: {}]   ;;  %s13464_s21 = inlined_call_operand.vmem [shape: f32[1,32], index: 21, kind: input, shape index: {}]   ;;  %s13465_s22 = inlined_call_operand.vmem [shape: f32[32,10], index: 22, kind: input, shape index: {}]   ;;  %s13466_s23 = inlined_call_operand.vmem [shape: f32[1,10], index: 23, kind: input, shape index: {}]   ;;  %s13467_s24 = inlined_call_operand.hbm [shape: f32[2,10], index: 24, kind: output, shape index: {}]  }
   0x1   :  { %13477 = sst [smem:[#allocation8_spill]] %s13443_s0 }
   0x2   :  { %13478 = sst [smem:[#allocation9_spill]] %s13444_s1 }
   0x3   :  { %13479 = sst [smem:[#allocation10_spill]] %s13445_s2 }
   0x4   :  { %13480 = sst [smem:[#allocation11_spill]] %s13446_s3 }
   0x5   :  { %13481 = sst [smem:[#allocation12_spill]] %s13447_s4 }
   0x6   :  { %13482 = sst [smem:[#allocation13_spill]] %s13448_s5 }
   0x7   :  { %13483 = sst [smem:[#allocation14_spill]] %s13449_s6 }
   0x8   :  { %13484 = sst [smem:[#allocation15_spill]] %s13450_s7 }
   0x9   :  { %13485 = sst [smem:[#allocation16_spill]] %s13451_s8 }
   0xa   :  { %s13486_s27 = sld [smem:[#allocation10_spill]]  ;;  %vm98_vm0 = vcmask 523264   ;;  %s13487_s5 = sld [smem:[#allocation8_spill]] }
  0x10   :  { %v84_v0 = vld [vmem:[%s13486_s27] sm:$0xff]  ;;  %v85_v1 = vld [vmem:[%s13486_s27 + $0x8] sm:$0xff]  ;;  %v86_v2 = vld [vmem:[%s13486_s27 + $0x10] sm:$0xff] }
  0x11   :  { %v10122_v3 = vpack.c.bf16 %v85_v1, %v84_v0  ;;  %v87_v4 = vld [vmem:[%s13486_s27 + $0x18] sm:$0xff]  ;;  %v88_v6 = vld [vmem:[%s13486_s27 + $0x20] sm:$0xff]  ;;  %v89_v7 = vld [vmem:[%s13486_s27 + $0x28] sm:$0xff] }
  0x12   :  { %v10126_v5 = vpack.c.bf16 %v87_v4, %v86_v2  ;;  %v78_v8 = vld [vmem:[%s13487_s5] sm:$0xff]  ;;  %v10130_v9 = vpack.c.bf16 %v89_v7, %v88_v6 }
  0x13   :  { %10123 = vmatprep.subr.bf16.mxu0 %v10122_v3  ;;  %9175 = vmatprep.mubr.msk.f32.mxu0 %vm98_vm0, %v78_v8 }
  0x14   :  { %10125 = vmatpush3.bf16.msra.mxu0 %v10122_v3 }
  0x15   :  { %10127 = vmatprep.subr.bf16.mxu0 %v10126_v5 }
  0x16   :  { %29 = vsyncpa [#allocation6], 0  ;;  %v90_v10 = vld [vmem:[%s13486_s27 + $0x30] sm:$0xff]  ;;  %v91_v11 = vld [vmem:[%s13486_s27 + $0x38] sm:$0xff]  ;;  %s13488_s6 = sld [smem:[#allocation11_spill]]  ;;  %vm220_vm1 = vcmask 261120  }
  0x17   :  { %v10134_v12 = vpack.c.bf16 %v91_v11, %v90_v10  ;;  %v79_v13 = vld [vmem:[%s13487_s5 + $0x8] sm:$0xff]  ;;  %v80_v14 = vld [vmem:[%s13487_s5 + $0x10] sm:$0xff]  ;;  %v81_v15 = vld [vmem:[%s13487_s5 + $0x18] sm:$0xff]  ;;  %s13489_s26 = sld [smem:[#allocation14_spill]]  ;;  %s13490_s0 = sld [smem:[#allocation16_spill]]  ;;  %vm485_vm2 = vcmask 64512  }
  0x18   :  { %10129 = vmatpush3.bf16.msra.mxu0 %v10126_v5  ;;  %v82_v16 = vld [vmem:[%s13487_s5 + $0x20] sm:$0xff]  ;;  %v83_v17 = vld [vmem:[%s13487_s5 + $0x28] sm:$0xff]  ;;  %s13491_s29 = sld [smem:[#allocation15_spill]]  ;;  %s13492_s1 = sld [smem:[#allocation12_spill]]  ;;  %vm11546_vm3 = vmpackc.low %vm485_vm2, %vm485_vm2  ;;  %vm2412_vm4 = vcmask 392192   ;;  %vm7916_vm5 = vcmask 253952  }
  0x19   :  { %10131 = vmatprep.subr.bf16.mxu0 %v10130_v9  ;;  %s13493_s2 = sld [smem:[#allocation13_spill]]  ;;  %s13496_s28 = sld [smem:[#allocation9_spill]]  ;;  %vm10933_vm6 = vmmov 0   ;;  %vm8005_vm7 = vcmask 73728  }
  0x1c   :  { %10133 = vmatpush3.bf16.msra.mxu0 %v10130_v9  ;;  %v92_v18 = vld [vmem:[%s13488_s6] sm:$0xff]  ;;  %v93_v20 = vld [vmem:[%s13488_s6 + $0x8] sm:$0xff]  ;;  %v94_v23 = vld [vmem:[%s13488_s6 + $0x10] sm:$0xff] }
  0x1d   :  { %10135 = vmatprep.subr.bf16.mxu0 %v10134_v12  ;;  %v95_v27 = vld [vmem:[%s13488_s6 + $0x18] sm:$0xff]  ;;  %v96_v30 = vld [vmem:[%s13488_s6 + $0x20] sm:$0xff]  ;;  %v97_v35 = vld [vmem:[%s13488_s6 + $0x28] sm:$0xff] }
  0x1e   :  { %v324_v8 = vld [vmem:[%s13489_s26] sm:$0xff]  ;;  %v325_v9 = vld [vmem:[%s13489_s26 + $0x8] sm:$0xff] }
  0x1f   :  { %v356_v10 = vld [vmem:[%s13490_s0] sm:$0xff]  ;;  %v10138_v11 = vpack.c.bf16 %v325_v9, %v324_v8 }
  0x20   :  { %10137 = vmatpush3.bf16.msra.mxu0 %v10134_v12  ;;  %v357_v12 = vld [vmem:[%s13490_s0 + $0x8] sm:$0xff] }
  0x21   :  { %10139 = vmatprep.subr.bf16.mxu1 %v10138_v11 }
  0x22   :  { %10141 = vmatpush3.bf16.msra.mxu1 %v10138_v11 }
  0x23   :  { %9176 = vmatmul.mubr.msk.f32.vlgmr.msra.gmra.mrb[0].mxu0 %vm98_vm0, %v79_v13  ;;  %v10154_v13 = vpack.c.bf16 %v357_v12, %v356_v10 }
  0x24   :  { %9178 = vmatprep.mubr.msk.f32.mxu0 %vm98_vm0, %v80_v14  ;;  %v326_v14 = vld [vmem:[%s13489_s26 + $0x10] sm:$0xff] }
  0x25   :  { %10155 = vmatprep.subr.bf16.mxu0 %v10154_v13 }
  0x26   :  { %10157 = vmatpush3.bf16.msra.mxu0 %v10154_v13  ;;  %v328_v13 = vld [vmem:[%s13489_s26 + $0x20] sm:$0xff] }
  0x27   :  { %9179 = vmatmul.mubr.msk.f32.gmra.mrb[2].mxu0 %vm98_vm0, %v81_v15  ;;  %v327_v15 = vld [vmem:[%s13489_s26 + $0x18] sm:$0xff] }
  0x28   :  { %9181 = vmatprep.mubr.msk.f32.mxu0 %vm98_vm0, %v82_v16  ;;  %v358_v16 = vld [vmem:[%s13490_s0 + $0x10] sm:$0xff] }
  0x2b   :  { %9182 = vmatmul.mubr.msk.f32.gmra.mrb[4].mxu0 %vm98_vm0, %v83_v17  ;;  %v10142_v17 = vpack.c.bf16 %v327_v15, %v326_v14  ;;  %v333_v15 = vld [vmem:[%s13489_s26 + $0x48] sm:$0xff] }
  0x2d   :  { %10143 = vmatprep.subr.bf16.mxu1 %v10142_v17 }
  0x2e   :  { %10145 = vmatpush3.bf16.msra.mxu1 %v10142_v17 }
  0xf6   :  { %v9177_v19 = vpop.f32.mrb[0].mxu0 }
  0xf7   :  { %v183_v21 = vpop.f32.mrb[1].mxu0  ;;  %v11120_v24 = vadd.f32 %v9177_v19, %v93_v20  ;;  %v340_v20 = vld [vmem:[%s13491_s29] sm:$0xff] }
  0xf8   :  { %v11115_v22 = vadd.f32 %v183_v21, %v92_v18  ;;  %v359_v18 = vld [vmem:[%s13490_s0 + $0x18] sm:$0xff]  ;;  %v341_v21 = vld [vmem:[%s13491_s29 + $0x8] sm:$0xff] }
  0xf9   :  { %v224_v34 = vsel %vm220_vm1, %v11120_v24, 0.0  ;;  %v10158_v19 = vpack.c.bf16 %v359_v18, %v358_v16 }
  0xfa   :  { %v9180_v25 = vpop.f32.mrb[2].mxu0  ;;  %v221_v26 = vsel %vm220_vm1, %v11115_v22, 0.0 }
  0xfb   :  { %v193_v28 = vpop.f32.mrb[3].mxu0  ;;  %222 = vadd.xlane.f32.xlu0 %v221_v26  ;;  %v11132_v31 = vadd.f32 %v9180_v25, %v95_v27  ;;  %10159 = vmatprep.subr.bf16.mxu0 %v10158_v19  ;;  %v11220_v25 = vpack.c.bf16 %v341_v21, %v340_v20  ;;  %v345_v26 = vld [vmem:[%s13491_s29 + $0x28] sm:$0xff] }
  0xfc   :  { %v11127_v29 = vadd.f32 %v193_v28, %v94_v23  ;;  %10161 = vmatpush3.bf16.msra.mxu0 %v10158_v19  ;;  %v344_v23 = vld [vmem:[%s13491_s29 + $0x20] sm:$0xff] }
  0xfd   :  { %v230_v39 = vsel %vm220_vm1, %v11132_v31, 0.0  ;;  %v11225_v27 = vpack.c.bf16 %v345_v26, %v344_v23  ;;  %10147 = vmatprep.subr.bf16.mxu1 %v11220_v25 }
  0xfe   :  { %v9183_v32 = vpop.f32.mrb[4].mxu0  ;;  %v227_v33 = vsel %vm220_vm1, %v11127_v29, 0.0 }
  0xff   :  { %v203_v36 = vpop.f32.mrb[5].mxu0  ;;  %228 = vadd.xlane.f32.xlu1 %v227_v33  ;;  %225 = vadd.xlane.f32.xlu0 %v224_v34  ;;  %v11143_v38 = vadd.f32 %v9183_v32, %v97_v35 }
 0x100   :  { %v11141_v37 = vadd.f32 %v203_v36, %v96_v30  ;;  %10171 = vmatprep.subr.bf16.mxu0 %v11225_v27 }
 0x101   :  { %v236_v41 = vsel %vm220_vm1, %v11143_v38, 0.0 }
 0x102   :  { %v233_v40 = vsel %vm220_vm1, %v11141_v37, 0.0 }
 0x103   :  { %231 = vadd.xlane.f32.xlu1 %v230_v39  ;;  %234 = vadd.xlane.f32.xlu0 %v233_v40 }
 0x107   :  { %237 = vadd.xlane.f32.xlu1 %v236_v41 }
 0x188   :  { %v223_v42 = vpop.xlane.xlu0 %222 }
 0x189   :  { %v240_v43 = vmul.f32 0.03125, %v223_v42 }
 0x18b   :  { %v11152_v44 = vsub.f32 %v11115_v22, %v240_v43 }
 0x18c   :  { %v229_v45 = vpop.xlane.xlu1 %228  ;;  %v226_v46 = vpop.xlane.xlu0 %225 }
 0x18d   :  { %v242_v47 = vmul.f32 0.03125, %v229_v45  ;;  %v241_v48 = vmul.f32 0.03125, %v226_v46  ;;  %v252_v49 = vmul.f32 %v11152_v44, %v11152_v44 }
 0x18f   :  { %v11157_v50 = vsub.f32 %v11127_v29, %v242_v47  ;;  %v11160_v51 = vsub.f32 %v11120_v24, %v241_v48  ;;  %v258_v52 = vsel %vm220_vm1, %v252_v49, 0.0 }
 0x190   :  { %v232_v53 = vpop.xlane.xlu1 %231  ;;  %259 = vadd.xlane.f32.xlu0 %v258_v52  ;;  %v235_v54 = vpop.xlane.xlu0 %234 }
 0x191   :  { %v243_v55 = vmul.f32 0.03125, %v232_v53  ;;  %v244_v56 = vmul.f32 0.03125, %v235_v54  ;;  %v254_v57 = vmul.f32 %v11157_v50, %v11157_v50  ;;  %v253_v58 = vmul.f32 %v11160_v51, %v11160_v51  ;;  %v8116_v53 = vld [vmem:[%s13492_s1] ss:$0 sm:$0xff] }
 0x193   :  { %v11168_v59 = vsub.f32 %v11132_v31, %v243_v55  ;;  %v11171_v60 = vsub.f32 %v11141_v37, %v244_v56  ;;  %v264_v61 = vsel %vm220_vm1, %v254_v57, 0.0  ;;  %v261_v62 = vsel %vm220_vm1, %v253_v58, 0.0  ;;  %v8117_v56 = vld [vmem:[%s13493_s2] ss:$0 sm:$0xff] }
 0x194   :  { %v238_v63 = vpop.xlane.xlu1 %237  ;;  %265 = vadd.xlane.f32.xlu0 %v264_v61  ;;  %262 = vadd.xlane.f32.xlu1 %v261_v62 }
 0x195   :  { %v245_v0 = vmul.f32 0.03125, %v238_v63  ;;  %v255_v1 = vmul.f32 %v11168_v59, %v11168_v59  ;;  %v256_v2 = vmul.f32 %v11171_v60, %v11171_v60 }
 0x197   :  { %v11180_v3 = vsub.f32 %v11143_v38, %v245_v0  ;;  %v267_v4 = vsel %vm220_vm1, %v255_v1, 0.0  ;;  %v270_v5 = vsel %vm220_vm1, %v256_v2, 0.0  ;;  %v342_v1 = vld [vmem:[%s13491_s29 + $0x10] sm:$0xff] }
 0x198   :  { %268 = vadd.xlane.f32.xlu1 %v267_v4  ;;  %271 = vadd.xlane.f32.xlu0 %v270_v5 }
 0x199   :  { %v257_v6 = vmul.f32 %v11180_v3, %v11180_v3 }
 0x19b   :  { %v273_v7 = vsel %vm220_vm1, %v257_v6, 0.0 }
 0x19c   :  { %274 = vadd.xlane.f32.xlu1 %v273_v7 }
 0x21d   :  { %v260_v28 = vpop.xlane.xlu0 %259 }
 0x21e   :  { %v276_v30 = vmul.f32 0.03125, %v260_v28  ;;  %v334_v28 = vld [vmem:[%s13489_s26 + $0x50] sm:$0xff] }
 0x220   :  { %v282_v32 = vadd.f32 1e-05, %v276_v30  ;;  %v335_v30 = vld [vmem:[%s13489_s26 + $0x58] sm:$0xff] }
 0x221   :  { %v263_v33 = vpop.xlane.xlu1 %262  ;;  %v266_v34 = vpop.xlane.xlu0 %265 }
 0x222   :  { %10634 = vrsqrt.f32 %v282_v32  ;;  %v277_v35 = vmul.f32 0.03125, %v263_v33  ;;  %v278_v36 = vmul.f32 0.03125, %v266_v34  ;;  %v10190_v33 = vpack.c.bf16 %v335_v30, %v334_v28  ;;  %v360_v34 = vld [vmem:[%s13490_s0 + $0x20] sm:$0xff] }
 0x224   :  { %v283_v39 = vadd.f32 1e-05, %v277_v35  ;;  %v284_v40 = vadd.f32 1e-05, %v278_v36  ;;  %v361_v35 = vld [vmem:[%s13490_s0 + $0x28] sm:$0xff]  ;;  %v364_v36 = vld [vmem:[%s13490_s0 + $0x40] sm:$0xff] }
 0x225   :  { %v269_v41 = vpop.xlane.xlu1 %268  ;;  %v272_v42 = vpop.xlane.xlu0 %271 }
 0x226   :  { %10636 = vrsqrt.f32 %v283_v39  ;;  %v279_v43 = vmul.f32 0.03125, %v269_v41  ;;  %v280_v45 = vmul.f32 0.03125, %v272_v42  ;;  %v365_v39 = vld [vmem:[%s13490_s0 + $0x48] sm:$0xff]  ;;  %v362_v42 = vld [vmem:[%s13490_s0 + $0x30] sm:$0xff] }
 0x227   :  { %10638 = vrsqrt.f32 %v284_v40  ;;  %v10178_v40 = vpack.c.bf16 %v361_v35, %v360_v34  ;;  %v10202_v41 = vpack.c.bf16 %v365_v39, %v364_v36  ;;  %v8194_v35 = vld [vmem:[%s13453_s10] ss:$0 sm:$0xff]  ;;  %v8195_v36 = vld [vmem:[%s13453_s10 + $0x1] ss:$0 sm:$0xff] }
 0x228   :  { %v285_v46 = vadd.f32 1e-05, %v279_v43  ;;  %v286_v47 = vadd.f32 1e-05, %v280_v45  ;;  %v363_v43 = vld [vmem:[%s13490_s0 + $0x38] sm:$0xff]  ;;  %v366_v45 = vld [vmem:[%s13490_s0 + $0x50] sm:$0xff] }
 0x229   :  { %v275_v48 = vpop.xlane.xlu1 %274 }
 0x22a   :  { %10640 = vrsqrt.f32 %v285_v46  ;;  %v281_v49 = vmul.f32 0.03125, %v275_v48  ;;  %v367_v46 = vld [vmem:[%s13490_s0 + $0x58] sm:$0xff] }
 0x22b   :  { %10642 = vrsqrt.f32 %v286_v47  ;;  %v10182_v47 = vpack.c.bf16 %v363_v43, %v362_v42  ;;  %v10206_v48 = vpack.c.bf16 %v367_v46, %v366_v45 }
 0x22c   :  { %v10635_v52 = vpop.eup %10634  ;;  %v287_v54 = vadd.f32 1e-05, %v281_v49  ;;  %v348_v49 = vld [vmem:[%s13491_s29 + $0x40] sm:$0xff] }
 0x22d   :  { %v294_v55 = vmul.f32 %v10635_v52, %v11152_v44  ;;  %v343_v44 = vld [vmem:[%s13491_s29 + $0x18] sm:$0xff]  ;;  %v349_v52 = vld [vmem:[%s13491_s29 + $0x48] sm:$0xff] }
 0x22e   :  { %10644 = vrsqrt.f32 %v287_v54  ;;  %v10150_v11 = vpack.c.bf16 %v343_v44, %v342_v1  ;;  %v353_v54 = vld [vmem:[%s13491_s29 + $0x68] sm:$0xff] }
 0x22f   :  { %v306_v57 = vmul.f32 %v8116_v53, %v294_v55  ;;  %v10194_v55 = vpack.c.bf16 %v349_v52, %v348_v49  ;;  %v337_v44 = vld [vmem:[%s13489_s26 + $0x68] sm:$0xff] }
 0x230   :  { %v10637_v58 = vpop.eup %10636 }
 0x231   :  { %v10639_v61 = vpop.eup %10638  ;;  %v11236_v62 = vadd.f32 %v8117_v56, %v306_v57  ;;  %v295_v63 = vmul.f32 %v10637_v58, %v11160_v51  ;;  %v346_v51 = vld [vmem:[%s13491_s29 + $0x30] sm:$0xff]  ;;  %v351_v58 = vld [vmem:[%s13491_s29 + $0x58] sm:$0xff] }
 0x232   :  { %v296_v0 = vmul.f32 %v10639_v61, %v11157_v50  ;;  %v347_v50 = vld [vmem:[%s13491_s29 + $0x38] sm:$0xff]  ;;  %v350_v57 = vld [vmem:[%s13491_s29 + $0x50] sm:$0xff] }
 0x233   :  { %v307_v2 = vmul.f32 %v8116_v53, %v295_v63  ;;  %9192 = vmatprep.mubr.msk.f32.mxu1 %vm220_vm1, %v11236_v62  ;;  %9226 = vmatprep.mubr.msk.f32.mxu0 %vm220_vm1, %v11236_v62  ;;  %v10174_v12 = vpack.c.bf16 %v347_v50, %v346_v51  ;;  %v354_v61 = vld [vmem:[%s13491_s29 + $0x70] sm:$0xff]  ;;  %v355_v63 = vld [vmem:[%s13491_s29 + $0x78] sm:$0xff] }
 0x234   :  { %v10641_v4 = vpop.eup %10640  ;;  %v308_v5 = vmul.f32 %v8116_v53, %v296_v0  ;;  %v10198_v0 = vpack.c.bf16 %v351_v58, %v350_v57  ;;  %v10222_v1 = vpack.c.bf16 %v355_v63, %v354_v61  ;;  %v338_v50 = vld [vmem:[%s13489_s26 + $0x70] sm:$0xff] }
 0x235   :  { %v10643_v6 = vpop.eup %10642  ;;  %v11256_v7 = vadd.f32 %v8117_v56, %v307_v2  ;;  %v297_v8 = vmul.f32 %v10641_v4, %v11168_v59  ;;  %v329_v59 = vld [vmem:[%s13489_s26 + $0x28] sm:$0xff]  ;;  %v336_v2 = vld [vmem:[%s13489_s26 + $0x60] sm:$0xff]  ;;  %v339_v4 = vld [vmem:[%s13489_s26 + $0x78] sm:$0xff] }
 0x236   :  { %v11259_v9 = vadd.f32 %v8117_v56, %v308_v5  ;;  %v298_v10 = vmul.f32 %v10643_v6, %v11171_v60  ;;  %v332_v60 = vld [vmem:[%s13489_s26 + $0x40] sm:$0xff]  ;;  %v10162_v21 = vpack.c.bf16 %v329_v59, %v328_v13  ;;  %v10210_v51 = vpack.c.bf16 %v337_v44, %v336_v2 }
 0x237   :  { %v309_v14 = vmul.f32 %v8116_v53, %v297_v8  ;;  %9193 = vmatmul.mubr.msk.f32.vlgmr.msra.gmra.mrb[0].mxu1 %vm220_vm1, %v11256_v7  ;;  %9227 = vmatmul.mubr.msk.f32.vlgmr.msra.gmra.mrb[6].mxu0 %vm220_vm1, %v11256_v7  ;;  %v10186_v23 = vpack.c.bf16 %v333_v15, %v332_v60  ;;  %v10214_v5 = vpack.c.bf16 %v339_v4, %v338_v50  ;;  %v368_v6 = vld [vmem:[%s13490_s0 + $0x60] sm:$0xff]  ;;  %v369_v8 = vld [vmem:[%s13490_s0 + $0x68] sm:$0xff] }
 0x238   :  { %v10645_v16 = vpop.eup %10644  ;;  %v310_v17 = vmul.f32 %v8116_v53, %v298_v10  ;;  %10149 = vmatpush3.bf16.msra.mxu1 %v11220_v25  ;;  %9195 = vmatprep.mubr.msk.f32.mxu1 %vm220_vm1, %v11259_v9  ;;  %v330_v25 = vld [vmem:[%s13489_s26 + $0x30] sm:$0xff]  ;;  %v10226_v10 = vpack.c.bf16 %v369_v8, %v368_v6 }
 0x239   :  { %v11281_v18 = vadd.f32 %v8117_v56, %v309_v14  ;;  %v299_v19 = vmul.f32 %v10645_v16, %v11180_v3  ;;  %9229 = vmatprep.mubr.msk.f32.mxu0 %vm220_vm1, %v11259_v9  ;;  %10173 = vmatpush3.bf16.msra.mxu0 %v11225_v27  ;;  %v331_v27 = vld [vmem:[%s13489_s26 + $0x38] sm:$0xff] }
 0x23a   :  { %v11287_v20 = vadd.f32 %v8117_v56, %v310_v17  ;;  %10151 = vmatprep.subr.bf16.mxu1 %v10150_v11  ;;  %10175 = vmatprep.subr.bf16.mxu0 %v10174_v12  ;;  %v10166_v32 = vpack.c.bf16 %v331_v27, %v330_v25  ;;  %v11518_v17 = vld [vmem:[%s13452_s9] ss:$0 sm:$0xff] }
 0x23b   :  { %v311_v26 = vmul.f32 %v8116_v53, %v299_v19  ;;  %9196 = vmatmul.mubr.msk.f32.gmra.mrb[2].mxu1 %vm220_vm1, %v11281_v18  ;;  %9230 = vmatmul.mubr.msk.f32.gmra.mrb[8].mxu0 %vm220_vm1, %v11281_v18  ;;  %v352_v53 = vld [vmem:[%s13491_s29 + $0x60] sm:$0xff] }
 0x23c   :  { %9198 = vmatprep.mubr.msk.f32.mxu1 %vm220_vm1, %v11287_v20  ;;  %9232 = vmatprep.mubr.msk.f32.mxu0 %vm220_vm1, %v11287_v20 }
 0x23d   :  { %v11297_v3 = vadd.f32 %v8117_v56, %v311_v26  ;;  %10153 = vmatpush3.bf16.msra.mxu1 %v10150_v11  ;;  %10177 = vmatpush3.bf16.msra.mxu0 %v10174_v12  ;;  %v10218_v56 = vpack.c.bf16 %v353_v54, %v352_v53  ;;  %v370_v11 = vld [vmem:[%s13490_s0 + $0x70] sm:$0xff]  ;;  %v371_v12 = vld [vmem:[%s13490_s0 + $0x78] sm:$0xff] }
 0x23e   :  { %10163 = vmatprep.subr.bf16.mxu1 %v10162_v21  ;;  %10187 = vmatprep.subr.bf16.mxu0 %v10186_v23  ;;  %v10230_v13 = vpack.c.bf16 %v371_v12, %v370_v11 }
 0x23f   :  { %9199 = vmatmul.mubr.msk.f32.gmra.mrb[4].mxu1 %vm220_vm1, %v11297_v3  ;;  %9233 = vmatmul.mubr.msk.f32.gmra.mrb[10].mxu0 %vm220_vm1, %v11297_v3 }
 0x240   :  { %9209 = vmatprep.mubr.msk.f32.mxu1 %vm220_vm1, %v11236_v62  ;;  %9260 = vmatprep.mubr.msk.f32.mxu0 %vm220_vm1, %v11236_v62 }
 0x243   :  { %9210 = vmatmul.mubr.msk.f32.vlgmr.msra.gmra.mrb[6].mxu1 %vm220_vm1, %v11256_v7  ;;  %9261 = vmatmul.mubr.msk.f32.vlgmr.msra.gmra.mrb[12].mxu0 %vm220_vm1, %v11256_v7 }
 0x244   :  { %10165 = vmatpush3.bf16.msra.mxu1 %v10162_v21  ;;  %9212 = vmatprep.mubr.msk.f32.mxu1 %vm220_vm1, %v11259_v9 }
 0x245   :  { %9263 = vmatprep.mubr.msk.f32.mxu0 %vm220_vm1, %v11259_v9  ;;  %10189 = vmatpush3.bf16.msra.mxu0 %v10186_v23 }
 0x246   :  { %10167 = vmatprep.subr.bf16.mxu1 %v10166_v32  ;;  %10191 = vmatprep.subr.bf16.mxu0 %v10190_v33 }
 0x247   :  { %9213 = vmatmul.mubr.msk.f32.gmra.mrb[8].mxu1 %vm220_vm1, %v11281_v18  ;;  %9264 = vmatmul.mubr.msk.f32.gmra.mrb[14].mxu0 %vm220_vm1, %v11281_v18 }
 0x248   :  { %9215 = vmatprep.mubr.msk.f32.mxu1 %vm220_vm1, %v11287_v20  ;;  %9266 = vmatprep.mubr.msk.f32.mxu0 %vm220_vm1, %v11287_v20 }
 0x249   :  { %10169 = vmatpush3.bf16.msra.mxu1 %v10166_v32  ;;  %10193 = vmatpush3.bf16.msra.mxu0 %v10190_v33 }
 0x24a   :  { %10179 = vmatprep.subr.bf16.mxu1 %v10178_v40  ;;  %10203 = vmatprep.subr.bf16.mxu0 %v10202_v41 }
 0x24b   :  { %9216 = vmatmul.mubr.msk.f32.gmra.mrb[10].mxu1 %vm220_vm1, %v11297_v3  ;;  %9267 = vmatmul.mubr.msk.f32.gmra.mrb[16].mxu0 %vm220_vm1, %v11297_v3 }
 0x24c   :  { %9243 = vmatprep.mubr.msk.f32.mxu1 %vm220_vm1, %v11236_v62  ;;  %9294 = vmatprep.mubr.msk.f32.mxu0 %vm220_vm1, %v11236_v62 }
 0x24f   :  { %9244 = vmatmul.mubr.msk.f32.vlgmr.msra.gmra.mrb[12].mxu1 %vm220_vm1, %v11256_v7  ;;  %9295 = vmatmul.mubr.msk.f32.vlgmr.msra.gmra.mrb[18].mxu0 %vm220_vm1, %v11256_v7 }
 0x250   :  { %10181 = vmatpush3.bf16.msra.mxu1 %v10178_v40  ;;  %9246 = vmatprep.mubr.msk.f32.mxu1 %vm220_vm1, %v11259_v9 }
 0x251   :  { %9297 = vmatprep.mubr.msk.f32.mxu0 %vm220_vm1, %v11259_v9  ;;  %10205 = vmatpush3.bf16.msra.mxu0 %v10202_v41 }
 0x252   :  { %10183 = vmatprep.subr.bf16.mxu1 %v10182_v47  ;;  %10207 = vmatprep.subr.bf16.mxu0 %v10206_v48 }
 0x253   :  { %9247 = vmatmul.mubr.msk.f32.gmra.mrb[14].mxu1 %vm220_vm1, %v11281_v18  ;;  %9298 = vmatmul.mubr.msk.f32.gmra.mrb[20].mxu0 %vm220_vm1, %v11281_v18 }
 0x254   :  { %9249 = vmatprep.mubr.msk.f32.mxu1 %vm220_vm1, %v11287_v20  ;;  %9300 = vmatprep.mubr.msk.f32.mxu0 %vm220_vm1, %v11287_v20 }
 0x255   :  { %10185 = vmatpush3.bf16.msra.mxu1 %v10182_v47  ;;  %10209 = vmatpush3.bf16.msra.mxu0 %v10206_v48 }
 0x256   :  { %10195 = vmatprep.subr.bf16.mxu1 %v10194_v55  ;;  %10219 = vmatprep.subr.bf16.mxu0 %v10218_v56 }
 0x257   :  { %9250 = vmatmul.mubr.msk.f32.gmra.mrb[16].mxu1 %vm220_vm1, %v11297_v3  ;;  %9301 = vmatmul.mubr.msk.f32.gmra.mrb[22].mxu0 %vm220_vm1, %v11297_v3 }
 0x258   :  { %9277 = vmatprep.mubr.msk.f32.mxu1 %vm220_vm1, %v11236_v62  ;;  %9328 = vmatprep.mubr.msk.f32.mxu0 %vm220_vm1, %v11236_v62 }
 0x25b   :  { %9278 = vmatmul.mubr.msk.f32.vlgmr.msra.gmra.mrb[18].mxu1 %vm220_vm1, %v11256_v7  ;;  %9329 = vmatmul.mubr.msk.f32.vlgmr.msra.gmra.mrb[24].mxu0 %vm220_vm1, %v11256_v7 }
 0x25c   :  { %10197 = vmatpush3.bf16.msra.mxu1 %v10194_v55  ;;  %9280 = vmatprep.mubr.msk.f32.mxu1 %vm220_vm1, %v11259_v9 }
 0x25d   :  { %9331 = vmatprep.mubr.msk.f32.mxu0 %vm220_vm1, %v11259_v9  ;;  %10221 = vmatpush3.bf16.msra.mxu0 %v10218_v56 }
 0x25e   :  { %10199 = vmatprep.subr.bf16.mxu1 %v10198_v0  ;;  %10223 = vmatprep.subr.bf16.mxu0 %v10222_v1 }
 0x25f   :  { %9281 = vmatmul.mubr.msk.f32.gmra.mrb[20].mxu1 %vm220_vm1, %v11281_v18  ;;  %9332 = vmatmul.mubr.msk.f32.gmra.mrb[26].mxu0 %vm220_vm1, %v11281_v18 }
 0x260   :  { %9283 = vmatprep.mubr.msk.f32.mxu1 %vm220_vm1, %v11287_v20  ;;  %9334 = vmatprep.mubr.msk.f32.mxu0 %vm220_vm1, %v11287_v20 }
 0x261   :  { %10201 = vmatpush3.bf16.msra.mxu1 %v10198_v0  ;;  %10225 = vmatpush3.bf16.msra.mxu0 %v10222_v1 }
 0x262   :  { %10211 = vmatprep.subr.bf16.mxu1 %v10210_v51 }
 0x263   :  { %9284 = vmatmul.mubr.msk.f32.gmra.mrb[22].mxu1 %vm220_vm1, %v11297_v3  ;;  %9335 = vmatmul.mubr.msk.f32.gmra.mrb[28].mxu0 %vm220_vm1, %v11297_v3 }
 0x264   :  { %9311 = vmatprep.mubr.msk.f32.mxu1 %vm220_vm1, %v11236_v62  ;;  %9362 = vmatprep.mubr.msk.f32.mxu0 %vm220_vm1, %v11236_v62 }
 0x267   :  { %9312 = vmatmul.mubr.msk.f32.vlgmr.msra.gmra.mrb[24].mxu1 %vm220_vm1, %v11256_v7  ;;  %9363 = vmatmul.mubr.msk.f32.vlgmr.msra.gmra.mrb[30].mxu0 %vm220_vm1, %v11256_v7 }
 0x268   :  { %9314 = vmatprep.mubr.msk.f32.mxu1 %vm220_vm1, %v11259_v9  ;;  %9365 = vmatprep.mubr.msk.f32.mxu0 %vm220_vm1, %v11259_v9 }
 0x269   :  { %10213 = vmatpush3.bf16.msra.mxu1 %v10210_v51 }
 0x26a   :  { %10215 = vmatprep.subr.bf16.mxu1 %v10214_v5 }
 0x26b   :  { %9315 = vmatmul.mubr.msk.f32.gmra.mrb[26].mxu1 %vm220_vm1, %v11281_v18  ;;  %9366 = vmatmul.mubr.msk.f32.gmra.mrb[32].mxu0 %vm220_vm1, %v11281_v18 }
 0x26c   :  { %9317 = vmatprep.mubr.msk.f32.mxu1 %vm220_vm1, %v11287_v20  ;;  %9368 = vmatprep.mubr.msk.f32.mxu0 %vm220_vm1, %v11287_v20 }
 0x26d   :  { %10217 = vmatpush3.bf16.msra.mxu1 %v10214_v5 }
 0x26e   :  { %10227 = vmatprep.subr.bf16.mxu1 %v10226_v10 }
 0x26f   :  { %9318 = vmatmul.mubr.msk.f32.gmra.mrb[28].mxu1 %vm220_vm1, %v11297_v3  ;;  %9369 = vmatmul.mubr.msk.f32.gmra.mrb[34].mxu0 %vm220_vm1, %v11297_v3 }
 0x270   :  { %9345 = vmatprep.mubr.msk.f32.mxu1 %vm220_vm1, %v11236_v62 }
 0x273   :  { %9346 = vmatmul.mubr.msk.f32.vlgmr.msra.gmra.mrb[30].mxu1 %vm220_vm1, %v11256_v7 }
 0x274   :  { %9348 = vmatprep.mubr.msk.f32.mxu1 %vm220_vm1, %v11259_v9  ;;  %10229 = vmatpush3.bf16.msra.mxu1 %v10226_v10 }
 0x275   :  { %10231 = vmatprep.subr.bf16.mxu1 %v10230_v13 }
 0x277   :  { %9349 = vmatmul.mubr.msk.f32.gmra.mrb[32].mxu1 %vm220_vm1, %v11281_v18 }
 0x278   :  { %9351 = vmatprep.mubr.msk.f32.mxu1 %vm220_vm1, %v11287_v20  ;;  %10233 = vmatpush3.bf16.msra.mxu1 %v10230_v13 }
 0x27b   :  { %9352 = vmatmul.mubr.msk.f32.gmra.mrb[34].mxu1 %vm220_vm1, %v11297_v3 }
 0x27c   :  { %9379 = vmatprep.mubr.msk.f32.mxu1 %vm220_vm1, %v11236_v62 }
 0x27f   :  { %9380 = vmatmul.mubr.msk.f32.vlgmr.msra.gmra.mrb[36].mxu1 %vm220_vm1, %v11256_v7 }
 0x280   :  { %9382 = vmatprep.mubr.msk.f32.mxu1 %vm220_vm1, %v11259_v9 }
 0x283   :  { %9383 = vmatmul.mubr.msk.f32.gmra.mrb[38].mxu1 %vm220_vm1, %v11281_v18 }
 0x284   :  { %9385 = vmatprep.mubr.msk.f32.mxu1 %vm220_vm1, %v11287_v20 }
 0x287   :  { %9386 = vmatmul.mubr.msk.f32.gmra.mrb[40].mxu1 %vm220_vm1, %v11297_v3 }
 0x30a   :  { %v9194_v14 = vpop.f32.mrb[0].mxu1  ;;  %v9228_v59 = vpop.f32.mrb[6].mxu0 }
 0x30b   :  { %487 = vst.msk [vmem:[#allocation2 + $0x8] sm:$0xff] %vm485_vm2, %v9194_v14  ;;  %689 = vst.msk [vmem:[#allocation4 + $0x8] sm:$0xff] %vm485_vm2, %v9228_v59  ;;  %v456_v62 = vpop.f32.mrb[1].mxu1  ;;  %v659_v7 = vpop.f32.mrb[7].mxu0 }
 0x30c   :  { %486 = vst.msk [vmem:[#allocation2] sm:$0xff] %vm485_vm2, %v456_v62  ;;  %688 = vst.msk [vmem:[#allocation4] sm:$0xff] %vm485_vm2, %v659_v7 }
 0x30e   :  { %v9197_v9 = vpop.f32.mrb[2].mxu1  ;;  %v9231_v60 = vpop.f32.mrb[8].mxu0 }
 0x30f   :  { %489 = vst.msk [vmem:[#allocation2 + $0x18] sm:$0xff] %vm485_vm2, %v9197_v9  ;;  %691 = vst.msk [vmem:[#allocation4 + $0x18] sm:$0xff] %vm485_vm2, %v9231_v60  ;;  %v466_v15 = vpop.f32.mrb[3].mxu1  ;;  %v669_v16 = vpop.f32.mrb[9].mxu0 }
 0x310   :  { %488 = vst.msk [vmem:[#allocation2 + $0x10] sm:$0xff] %vm485_vm2, %v466_v15  ;;  %690 = vst.msk [vmem:[#allocation4 + $0x10] sm:$0xff] %vm485_vm2, %v669_v16 }
 0x312   :  { %v9200_v18 = vpop.f32.mrb[4].mxu1  ;;  %v9234_v19 = vpop.f32.mrb[10].mxu0 }
 0x313   :  { %491 = vst.msk [vmem:[#allocation2 + $0x28] sm:$0xff] %vm485_vm2, %v9200_v18  ;;  %693 = vst.msk [vmem:[#allocation4 + $0x28] sm:$0xff] %vm485_vm2, %v9234_v19  ;;  %v476_v20 = vpop.f32.mrb[5].mxu1  ;;  %v679_v21 = vpop.f32.mrb[11].mxu0  ;;  %v1612_v23 = vld [vmem:[#allocation2] sm:$0xff] }
 0x314   :  { %490 = vst.msk [vmem:[#allocation2 + $0x20] sm:$0xff] %vm485_vm2, %v476_v20  ;;  %692 = vst.msk [vmem:[#allocation4 + $0x20] sm:$0xff] %vm485_vm2, %v679_v21  ;;  %v1664_v26 = vadd.f32 %v11518_v17, %v1612_v23  ;;  %v11573_v18 = vld [vmem:[%s13452_s9 + $0x1] ss:$0 sm:$0xff] }
 0x316   :  { %v9211_v3 = vpop.f32.mrb[6].mxu1  ;;  %v9262_v25 = vpop.f32.mrb[12].mxu0  ;;  %9400 = vmatprep.mubr.msk.f32.mxu0 %vm485_vm2, %v1664_v26 }
 0x317   :  { %588 = vst.msk [vmem:[#allocation3 + $0x8] sm:$0xff] %vm485_vm2, %v9211_v3  ;;  %893 = vst.msk [vmem:[#allocation3 + $0x38] sm:$0xff] %vm485_vm2, %v9262_v25  ;;  %v558_v27 = vpop.f32.mrb[7].mxu1  ;;  %v862_v28 = vpop.f32.mrb[13].mxu0 }
 0x318   :  { %587 = vst.msk [vmem:[#allocation3] sm:$0xff] %vm485_vm2, %v558_v27  ;;  %892 = vst.msk [vmem:[#allocation3 + $0x30] sm:$0xff] %vm485_vm2, %v862_v28 }
 0x31a   :  { %v9214_v30 = vpop.f32.mrb[8].mxu1  ;;  %v9265_v32 = vpop.f32.mrb[14].mxu0 }
 0x31b   :  { %590 = vst.msk [vmem:[#allocation3 + $0x18] sm:$0xff] %vm485_vm2, %v9214_v30  ;;  %895 = vst.msk [vmem:[#allocation3 + $0x48] sm:$0xff] %vm485_vm2, %v9265_v32  ;;  %v568_v33 = vpop.f32.mrb[9].mxu1  ;;  %v872_v34 = vpop.f32.mrb[15].mxu0 }
 0x31c   :  { %589 = vst.msk [vmem:[#allocation3 + $0x10] sm:$0xff] %vm485_vm2, %v568_v33  ;;  %894 = vst.msk [vmem:[#allocation3 + $0x40] sm:$0xff] %vm485_vm2, %v872_v34 }
 0x31e   :  { %v9217_v39 = vpop.f32.mrb[10].mxu1  ;;  %v9268_v40 = vpop.f32.mrb[16].mxu0  ;;  %v1689_v41 = vld [vmem:[#allocation3 + $0x8] sm:$0xff]  ;;  %v1695_v42 = vld [vmem:[#allocation3 + $0x38] sm:$0xff] }
 0x31f   :  { %592 = vst.msk [vmem:[#allocation3 + $0x28] sm:$0xff] %vm485_vm2, %v9217_v39  ;;  %897 = vst.msk [vmem:[#allocation3 + $0x58] sm:$0xff] %vm485_vm2, %v9268_v40  ;;  %v578_v43 = vpop.f32.mrb[11].mxu1  ;;  %v882_v45 = vpop.f32.mrb[17].mxu0  ;;  %v1688_v46 = vld [vmem:[#allocation3] sm:$0xff]  ;;  %v1741_v47 = vadd.f32 %v8194_v35, %v1689_v41  ;;  %v1694_v48 = vld [vmem:[#allocation3 + $0x30] sm:$0xff]  ;;  %v1747_v49 = vadd.f32 %v8195_v36, %v1695_v42 }
 0x320   :  { %591 = vst.msk [vmem:[#allocation3 + $0x20] sm:$0xff] %vm485_vm2, %v578_v43  ;;  %896 = vst.msk [vmem:[#allocation3 + $0x50] sm:$0xff] %vm485_vm2, %v882_v45  ;;  %v1740_v52 = vadd.f32 %v8194_v35, %v1688_v46  ;;  %v1746_v53 = vadd.f32 %v8195_v36, %v1694_v48  ;;  %v1613_v45 = vld [vmem:[#allocation2 + $0x8] sm:$0xff] }
 0x322   :  { %v9245_v55 = vpop.f32.mrb[12].mxu1  ;;  %v9296_v56 = vpop.f32.mrb[18].mxu0  ;;  %v10234_v57 = vpack.c.bf16 %v1741_v47, %v1740_v52  ;;  %v10252_v58 = vpack.c.bf16 %v1747_v49, %v1746_v53  ;;  %v1691_v61 = vld [vmem:[#allocation3 + $0x18] sm:$0xff]  ;;  %v1697_v63 = vld [vmem:[#allocation3 + $0x48] sm:$0xff]  ;;  %v1614_v47 = vld [vmem:[#allocation2 + $0x10] sm:$0xff]  ;;  %v1665_v53 = vadd.f32 %v11518_v17, %v1613_v45 }
 0x323   :  { %791 = vst.msk [vmem:[#allocation2 + $0x38] sm:$0xff] %vm485_vm2, %v9245_v55  ;;  %1097 = vst.msk [vmem:[#allocation2 + $0x68] sm:$0xff] %vm485_vm2, %v9296_v56  ;;  %v760_v0 = vpop.f32.mrb[13].mxu1  ;;  %v1066_v1 = vpop.f32.mrb[19].mxu0  ;;  %v1690_v2 = vld [vmem:[#allocation3 + $0x10] sm:$0xff]  ;;  %v1743_v44 = vadd.f32 %v8194_v35, %v1691_v61  ;;  %v1696_v51 = vld [vmem:[#allocation3 + $0x40] sm:$0xff]  ;;  %v1749_v50 = vadd.f32 %v8195_v36, %v1697_v63 }
 0x324   :  { %790 = vst.msk [vmem:[#allocation2 + $0x30] sm:$0xff] %vm485_vm2, %v760_v0  ;;  %1096 = vst.msk [vmem:[#allocation2 + $0x60] sm:$0xff] %vm485_vm2, %v1066_v1  ;;  %10236 = vmatprep.subr.msk.bf16.mxu0 %vm11546_vm3, %v10234_v57  ;;  %10254 = vmatprep.subr.msk.bf16.mxu1 %vm11546_vm3, %v10252_v58  ;;  %v1742_v4 = vadd.f32 %v8194_v35, %v1690_v2  ;;  %v1748_v5 = vadd.f32 %v8195_v36, %v1696_v51  ;;  %v1615_v63 = vld [vmem:[#allocation2 + $0x18] sm:$0xff]  ;;  %v1616_v1 = vld [vmem:[#allocation2 + $0x20] sm:$0xff] }
 0x325   :  { %10239 = vmatpush3.bf16.xpose.msk.msra.mxu0 %vm11546_vm3, %v10234_v57  ;;  %10257 = vmatpush3.bf16.xpose.msk.msra.mxu1 %vm11546_vm3, %v10252_v58  ;;  %v1666_v58 = vadd.f32 %v11518_v17, %v1614_v47 }
 0x326   :  { %v9248_v6 = vpop.f32.mrb[14].mxu1  ;;  %v9299_v8 = vpop.f32.mrb[20].mxu0  ;;  %v10240_v10 = vpack.c.bf16 %v1743_v44, %v1742_v4  ;;  %v10258_v11 = vpack.c.bf16 %v1749_v50, %v1748_v5  ;;  %v1693_v12 = vld [vmem:[#allocation3 + $0x28] sm:$0xff]  ;;  %v1699_v13 = vld [vmem:[#allocation3 + $0x58] sm:$0xff]  ;;  %v1667_v50 = vadd.f32 %v11518_v17, %v1615_v63  ;;  %v11669_v63 = vld [vmem:[%s13452_s9 + $0x3] ss:$0 sm:$0xff] }
 0x327   :  { %793 = vst.msk [vmem:[#allocation2 + $0x48] sm:$0xff] %vm485_vm2, %v9248_v6  ;;  %1099 = vst.msk [vmem:[#allocation2 + $0x78] sm:$0xff] %vm485_vm2, %v9299_v8  ;;  %v770_v14 = vpop.f32.mrb[15].mxu1  ;;  %v1076_v59 = vpop.f32.mrb[21].mxu0  ;;  %v1692_v62 = vld [vmem:[#allocation3 + $0x20] sm:$0xff]  ;;  %v1745_v7 = vadd.f32 %v8194_v35, %v1693_v12  ;;  %v1698_v9 = vld [vmem:[#allocation3 + $0x50] sm:$0xff]  ;;  %v1751_v16 = vadd.f32 %v8195_v36, %v1699_v13  ;;  %v1668_v8 = vadd.f32 %v11518_v17, %v1616_v1 }
 0x328   :  { %792 = vst.msk [vmem:[#allocation2 + $0x40] sm:$0xff] %vm485_vm2, %v770_v14  ;;  %1098 = vst.msk [vmem:[#allocation2 + $0x70] sm:$0xff] %vm485_vm2, %v1076_v59  ;;  %10242 = vmatprep.subr.msk.bf16.mxu0 %vm11546_vm3, %v10240_v10  ;;  %10260 = vmatprep.subr.msk.bf16.mxu1 %vm11546_vm3, %v10258_v11  ;;  %v1744_v60 = vadd.f32 %v8194_v35, %v1692_v62  ;;  %v1750_v15 = vadd.f32 %v8195_v36, %v1698_v9  ;;  %v11626_v13 = vld [vmem:[%s13452_s9 + $0x2] ss:$0 sm:$0xff]  ;;  %v8197_v62 = vld [vmem:[%s13453_s10 + $0x3] ss:$0 sm:$0xff] }
 0x329   :  { %v8196_v59 = vld [vmem:[%s13453_s10 + $0x2] ss:$0 sm:$0xff] }
 0x32a   :  { %v9251_v19 = vpop.f32.mrb[16].mxu1  ;;  %v9302_v20 = vpop.f32.mrb[22].mxu0  ;;  %v10246_v3 = vpack.c.bf16 %v1745_v7, %v1744_v60  ;;  %v10264_v25 = vpack.c.bf16 %v1751_v16, %v1750_v15  ;;  %v1619_v46 = vld [vmem:[#allocation2 + $0x38] sm:$0xff] }
 0x32b   :  { %795 = vst.msk [vmem:[#allocation2 + $0x58] sm:$0xff] %vm485_vm2, %v9251_v19  ;;  %1101 = vst.msk [vmem:[#allocation2 + $0x88] sm:$0xff] %vm485_vm2, %v9302_v20  ;;  %v780_v21 = vpop.f32.mrb[17].mxu1  ;;  %v1086_v23 = vpop.f32.mrb[23].mxu0  ;;  %v1618_v26 = vld [vmem:[#allocation2 + $0x30] sm:$0xff]  ;;  %v1671_v55 = vadd.f32 %v11573_v18, %v1619_v46  ;;  %v1624_v14 = vld [vmem:[#allocation2 + $0x60] sm:$0xff] }
 0x32c   :  { %794 = vst.msk [vmem:[#allocation2 + $0x50] sm:$0xff] %vm485_vm2, %v780_v21  ;;  %1100 = vst.msk [vmem:[#allocation2 + $0x80] sm:$0xff] %vm485_vm2, %v1086_v23  ;;  %v1670_v27 = vadd.f32 %v11573_v18, %v1618_v26  ;;  %v1676_v23 = vadd.f32 %v11626_v13, %v1624_v14 }
 0x32d   :  { %10245 = vmatpush3.bf16.xpose.msk.msra.mxu0 %vm11546_vm3, %v10240_v10  ;;  %10263 = vmatpush3.bf16.xpose.msk.msra.mxu1 %vm11546_vm3, %v10258_v11  ;;  %v1617_v11 = vld [vmem:[#allocation2 + $0x28] sm:$0xff] }
 0x32e   :  { %v9279_v28 = vpop.f32.mrb[18].mxu1  ;;  %v9330_v30 = vpop.f32.mrb[24].mxu0  ;;  %10248 = vmatprep.subr.msk.bf16.mxu0 %vm11546_vm3, %v10246_v3  ;;  %10266 = vmatprep.subr.msk.bf16.mxu1 %vm11546_vm3, %v10264_v25  ;;  %v1621_v0 = vld [vmem:[#allocation2 + $0x48] sm:$0xff]  ;;  %v1669_v60 = vadd.f32 %v11518_v17, %v1617_v11 }
 0x32f   :  { %995 = vst.msk [vmem:[#allocation4 + $0x38] sm:$0xff] %vm485_vm2, %v9279_v28  ;;  %1301 = vst.msk [vmem:[#allocation4 + $0x68] sm:$0xff] %vm485_vm2, %v9330_v30  ;;  %9421 = vmatprep.mubr.msk.f32.mxu1 %vm485_vm2, %v1670_v27  ;;  %v964_v32 = vpop.f32.mrb[19].mxu1  ;;  %v1270_v33 = vpop.f32.mrb[25].mxu0  ;;  %v1620_v48 = vld [vmem:[#allocation2 + $0x40] sm:$0xff]  ;;  %v1673_v4 = vadd.f32 %v11573_v18, %v1621_v0 }
 0x330   :  { %994 = vst.msk [vmem:[#allocation4 + $0x30] sm:$0xff] %vm485_vm2, %v964_v32  ;;  %1300 = vst.msk [vmem:[#allocation4 + $0x60] sm:$0xff] %vm485_vm2, %v1270_v33  ;;  %v1672_v61 = vadd.f32 %v11573_v18, %v1620_v48 }
 0x332   :  { %v9282_v34 = vpop.f32.mrb[20].mxu1  ;;  %v9333_v35 = vpop.f32.mrb[26].mxu0  ;;  %v1623_v12 = vld [vmem:[#allocation2 + $0x58] sm:$0xff] }
 0x333   :  { %997 = vst.msk [vmem:[#allocation4 + $0x48] sm:$0xff] %vm485_vm2, %v9282_v34  ;;  %1303 = vst.msk [vmem:[#allocation4 + $0x78] sm:$0xff] %vm485_vm2, %v9333_v35  ;;  %v974_v36 = vpop.f32.mrb[21].mxu1  ;;  %v1280_v39 = vpop.f32.mrb[27].mxu0  ;;  %v1622_v2 = vld [vmem:[#allocation2 + $0x50] sm:$0xff]  ;;  %v1675_v15 = vadd.f32 %v11573_v18, %v1623_v12 }
 0x334   :  { %996 = vst.msk [vmem:[#allocation4 + $0x40] sm:$0xff] %vm485_vm2, %v974_v36  ;;  %1302 = vst.msk [vmem:[#allocation4 + $0x70] sm:$0xff] %vm485_vm2, %v1280_v39  ;;  %v1674_v10 = vadd.f32 %v11573_v18, %v1622_v2 }
 0x335   :  { %10251 = vmatpush3.bf16.xpose.msk.msra.mxu0 %vm11546_vm3, %v10246_v3  ;;  %10269 = vmatpush3.bf16.xpose.msk.msra.mxu1 %vm11546_vm3, %v10264_v25 }
 0x336   :  { %v9285_v40 = vpop.f32.mrb[22].mxu1  ;;  %v9336_v41 = vpop.f32.mrb[28].mxu0  ;;  %v1771_v11 = vld [vmem:[#allocation4 + $0x38] sm:$0xff] }
 0x337   :  { %999 = vst.msk [vmem:[#allocation4 + $0x58] sm:$0xff] %vm485_vm2, %v9285_v40  ;;  %1305 = vst.msk [vmem:[#allocation4 + $0x88] sm:$0xff] %vm485_vm2, %v9336_v41  ;;  %v984_v42 = vpop.f32.mrb[23].mxu1  ;;  %v1290_v43 = vpop.f32.mrb[29].mxu0 }
 0x338   :  { %998 = vst.msk [vmem:[#allocation4 + $0x50] sm:$0xff] %vm485_vm2, %v984_v42  ;;  %1304 = vst.msk [vmem:[#allocation4 + $0x80] sm:$0xff] %vm485_vm2, %v1290_v43 }
 0x33a   :  { %v9313_v49 = vpop.f32.mrb[24].mxu1  ;;  %v9364_v52 = vpop.f32.mrb[30].mxu0 }
 0x33b   :  { %1199 = vst.msk [vmem:[#allocation3 + $0x68] sm:$0xff] %vm485_vm2, %v9313_v49  ;;  %1505 = vst.msk [vmem:[#allocation3 + $0x98] sm:$0xff] %vm485_vm2, %v9364_v52  ;;  %v1168_v56 = vpop.f32.mrb[25].mxu1  ;;  %v1474_v57 = vpop.f32.mrb[31].mxu0 }
 0x33c   :  { %1198 = vst.msk [vmem:[#allocation3 + $0x60] sm:$0xff] %vm485_vm2, %v1168_v56  ;;  %1504 = vst.msk [vmem:[#allocation3 + $0x90] sm:$0xff] %vm485_vm2, %v1474_v57  ;;  %9401 = vmatmul.mubr.msk.f32.vlgmr.msra.gmra.mrb[36].mxu0 %vm485_vm2, %v1665_v53  ;;  %9422 = vmatmul.mubr.msk.f32.vlgmr.msra.gmra.mrb[42].mxu1 %vm485_vm2, %v1671_v55 }
 0x33d   :  { %9403 = vmatprep.mubr.msk.f32.mxu0 %vm485_vm2, %v1666_v58  ;;  %9424 = vmatprep.mubr.msk.f32.mxu1 %vm485_vm2, %v1672_v61 }
 0x33e   :  { %v9316_v44 = vpop.f32.mrb[26].mxu1  ;;  %v9367_v51 = vpop.f32.mrb[32].mxu0 }
 0x33f   :  { %1201 = vst.msk [vmem:[#allocation3 + $0x78] sm:$0xff] %vm485_vm2, %v9316_v44  ;;  %1507 = vst.msk [vmem:[#allocation3 + $0xa8] sm:$0xff] %vm485_vm2, %v9367_v51  ;;  %v1178_v5 = vpop.f32.mrb[27].mxu1  ;;  %v1484_v6 = vpop.f32.mrb[33].mxu0 }
 0x340   :  { %1200 = vst.msk [vmem:[#allocation3 + $0x70] sm:$0xff] %vm485_vm2, %v1178_v5  ;;  %1506 = vst.msk [vmem:[#allocation3 + $0xa0] sm:$0xff] %vm485_vm2, %v1484_v6  ;;  %9404 = vmatmul.mubr.msk.f32.gmra.mrb[38].mxu0 %vm485_vm2, %v1667_v50  ;;  %9425 = vmatmul.mubr.msk.f32.gmra.mrb[44].mxu1 %vm485_vm2, %v1673_v4  ;;  %v1765_v4 = vld [vmem:[#allocation4 + $0x8] sm:$0xff]  ;;  %v8198_v5 = vld [vmem:[%s13454_s11] ss:$0 sm:$0xff] }
 0x341   :  { %9406 = vmatprep.mubr.msk.f32.mxu0 %vm485_vm2, %v1668_v8  ;;  %9427 = vmatprep.mubr.msk.f32.mxu1 %vm485_vm2, %v1674_v10  ;;  %v11680_v6 = vld [vmem:[%s13454_s11 + $0x1] ss:$0 sm:$0xff]  ;;  %v1770_v10 = vld [vmem:[#allocation4 + $0x30] sm:$0xff] }
 0x342   :  { %v9319_v7 = vpop.f32.mrb[28].mxu1  ;;  %v9370_v9 = vpop.f32.mrb[34].mxu0  ;;  %v1701_v16 = vld [vmem:[#allocation3 + $0x68] sm:$0xff]  ;;  %v1707_v19 = vld [vmem:[#allocation3 + $0x98] sm:$0xff]  ;;  %v1764_v8 = vld [vmem:[#allocation4] sm:$0xff] }
 0x343   :  { %1203 = vst.msk [vmem:[#allocation3 + $0x88] sm:$0xff] %vm485_vm2, %v9319_v7  ;;  %1509 = vst.msk [vmem:[#allocation3 + $0xb8] sm:$0xff] %vm485_vm2, %v9370_v9  ;;  %v1188_v20 = vpop.f32.mrb[29].mxu1  ;;  %v1494_v21 = vpop.f32.mrb[35].mxu0  ;;  %v1700_v26 = vld [vmem:[#allocation3 + $0x60] sm:$0xff]  ;;  %v1753_v3 = vadd.f32 %v8196_v59, %v1701_v16  ;;  %v1706_v25 = vld [vmem:[#allocation3 + $0x90] sm:$0xff]  ;;  %v1759_v27 = vadd.f32 %v8197_v62, %v1707_v19  ;;  %v1822_v7 = vadd.f32 %v11680_v6, %v1770_v10 }
 0x344   :  { %1202 = vst.msk [vmem:[#allocation3 + $0x80] sm:$0xff] %vm485_vm2, %v1188_v20  ;;  %1508 = vst.msk [vmem:[#allocation3 + $0xb0] sm:$0xff] %vm485_vm2, %v1494_v21  ;;  %9407 = vmatmul.mubr.msk.f32.gmra.mrb[40].mxu0 %vm485_vm2, %v1669_v60  ;;  %9428 = vmatmul.mubr.msk.f32.gmra.mrb[46].mxu1 %vm485_vm2, %v1675_v15  ;;  %v1752_v17 = vadd.f32 %v8196_v59, %v1700_v26  ;;  %v1758_v18 = vadd.f32 %v8197_v62, %v1706_v25  ;;  %v1766_v20 = vld [vmem:[#allocation4 + $0x10] sm:$0xff]  ;;  %v1767_v21 = vld [vmem:[#allocation4 + $0x18] sm:$0xff] }
 0x345   :  { %9442 = vmatprep.mubr.msk.f32.mxu0 %vm485_vm2, %v1676_v23  ;;  %v1823_v9 = vadd.f32 %v11680_v6, %v1771_v11  ;;  %v1772_v26 = vld [vmem:[#allocation4 + $0x40] sm:$0xff] }
 0x346   :  { %v9347_v28 = vpop.f32.mrb[30].mxu1  ;;  %v10270_v30 = vpack.c.bf16 %v1753_v3, %v1752_v17  ;;  %v10288_v32 = vpack.c.bf16 %v1759_v27, %v1758_v18  ;;  %v1703_v33 = vld [vmem:[#allocation3 + $0x78] sm:$0xff]  ;;  %v1709_v34 = vld [vmem:[#allocation3 + $0xa8] sm:$0xff]  ;;  %v1626_v18 = vld [vmem:[#allocation2 + $0x70] sm:$0xff] }
 0x347   :  { %1403 = vst.msk [vmem:[#allocation2 + $0x98] sm:$0xff] %vm485_vm2, %v9347_v28  ;;  %v1372_v35 = vpop.f32.mrb[31].mxu1  ;;  %v1702_v36 = vld [vmem:[#allocation3 + $0x70] sm:$0xff]  ;;  %v1755_v39 = vadd.f32 %v8196_v59, %v1703_v33  ;;  %v1708_v40 = vld [vmem:[#allocation3 + $0xa0] sm:$0xff]  ;;  %v1761_v41 = vadd.f32 %v8197_v62, %v1709_v34  ;;  %v10318_v19 = vpack.c.bf16 %v1823_v9, %v1822_v7  ;;  %v1773_v3 = vld [vmem:[#allocation4 + $0x48] sm:$0xff]  ;;  %v1824_v33 = vadd.f32 %v11680_v6, %v1772_v26 }
 0x348   :  { %1402 = vst.msk [vmem:[#allocation2 + $0x90] sm:$0xff] %vm485_vm2, %v1372_v35  ;;  %10272 = vmatprep.subr.msk.bf16.mxu0 %vm11546_vm3, %v10270_v30  ;;  %10290 = vmatprep.subr.msk.bf16.mxu1 %vm11546_vm3, %v10288_v32  ;;  %v1754_v42 = vadd.f32 %v8196_v59, %v1702_v36  ;;  %v1760_v43 = vadd.f32 %v8197_v62, %v1708_v40  ;;  %v1625_v27 = vld [vmem:[#allocation2 + $0x68] sm:$0xff]  ;;  %v1768_v35 = vld [vmem:[#allocation4 + $0x20] sm:$0xff] }
 0x349   :  { %10275 = vmatpush3.bf16.xpose.msk.msra.mxu0 %vm11546_vm3, %v10270_v30  ;;  %10293 = vmatpush3.bf16.xpose.msk.msra.mxu1 %vm11546_vm3, %v10288_v32  ;;  %v1818_v30 = vadd.f32 %v8198_v5, %v1766_v20  ;;  %v1819_v32 = vadd.f32 %v8198_v5, %v1767_v21  ;;  %v1825_v34 = vadd.f32 %v11680_v6, %v1773_v3  ;;  %v1769_v36 = vld [vmem:[#allocation4 + $0x28] sm:$0xff]  ;;  %v11755_v20 = vld [vmem:[%s13496_s28] sm:$0xff] }
 0x34a   :  { %v9350_v45 = vpop.f32.mrb[32].mxu1  ;;  %v10276_v46 = vpack.c.bf16 %v1755_v39, %v1754_v42  ;;  %v10294_v47 = vpack.c.bf16 %v1761_v41, %v1760_v43  ;;  %v1705_v48 = vld [vmem:[#allocation3 + $0x88] sm:$0xff]  ;;  %v1711_v49 = vld [vmem:[#allocation3 + $0xb8] sm:$0xff]  ;;  %v1677_v39 = vadd.f32 %v11626_v13, %v1625_v27  ;;  %v1774_v41 = vld [vmem:[#allocation4 + $0x50] sm:$0xff]  ;;  %v1678_v43 = vadd.f32 %v11626_v13, %v1626_v18 }
 0x34b   :  { %1405 = vst.msk [vmem:[#allocation2 + $0xa8] sm:$0xff] %vm485_vm2, %v9350_v45  ;;  %v1382_v52 = vpop.f32.mrb[33].mxu1  ;;  %v1704_v53 = vld [vmem:[#allocation3 + $0x80] sm:$0xff]  ;;  %v1757_v55 = vadd.f32 %v8196_v59, %v1705_v48  ;;  %v1710_v56 = vld [vmem:[#allocation3 + $0xb0] sm:$0xff]  ;;  %v1763_v61 = vadd.f32 %v8197_v62, %v1711_v49  ;;  %v1775_v42 = vld [vmem:[#allocation4 + $0x58] sm:$0xff]  ;;  %v10310_v48 = vpack.c.bf16 %v1819_v32, %v1818_v30 }
 0x34c   :  { %1404 = vst.msk [vmem:[#allocation2 + $0xa0] sm:$0xff] %vm485_vm2, %v1382_v52  ;;  %10278 = vmatprep.subr.msk.bf16.mxu0 %vm11546_vm3, %v10276_v46  ;;  %10296 = vmatprep.subr.msk.bf16.mxu1 %vm11546_vm3, %v10294_v47  ;;  %v1756_v57 = vadd.f32 %v8196_v59, %v1704_v53  ;;  %v1762_v58 = vadd.f32 %v8197_v62, %v1710_v56  ;;  %v1628_v49 = vld [vmem:[#allocation2 + $0x80] sm:$0xff] }
 0x34d   :  { %v1816_v59 = vadd.f32 %v8198_v5, %v1764_v8  ;;  %v1817_v62 = vadd.f32 %v8198_v5, %v1765_v4  ;;  %v1820_v53 = vadd.f32 %v8198_v5, %v1768_v35  ;;  %v10322_v56 = vpack.c.bf16 %v1825_v34, %v1824_v33  ;;  %v11725_v4 = vld [vmem:[%s13454_s11 + $0x3] ss:$0 sm:$0xff]  ;;  %v1629_v8 = vld [vmem:[#allocation2 + $0x88] sm:$0xff] }
 0x34e   :  { %v9353_v0 = vpop.f32.mrb[34].mxu1  ;;  %v10282_v44 = vpack.c.bf16 %v1757_v55, %v1756_v57  ;;  %v10300_v51 = vpack.c.bf16 %v1763_v61, %v1762_v58  ;;  %v1631_v17 = vld [vmem:[#allocation2 + $0x98] sm:$0xff]  ;;  %v1821_v55 = vadd.f32 %v8198_v5, %v1769_v36  ;;  %v1826_v57 = vadd.f32 %v11680_v6, %v1774_v41  ;;  %v1776_v61 = vld [vmem:[#allocation4 + $0x60] sm:$0xff] }
 0x34f   :  { %1407 = vst.msk [vmem:[#allocation2 + $0xb8] sm:$0xff] %vm485_vm2, %v9353_v0  ;;  %v1392_v1 = vpop.f32.mrb[35].mxu1  ;;  %v1630_v2 = vld [vmem:[#allocation2 + $0x90] sm:$0xff]  ;;  %v10306_v16 = vpack.c.bf16 %v1817_v62, %v1816_v59  ;;  %v1683_v40 = vadd.f32 %v11669_v63, %v1631_v17  ;;  %v1827_v58 = vadd.f32 %v11680_v6, %v1775_v42  ;;  %v1777_v0 = vld [vmem:[#allocation4 + $0x68] sm:$0xff]  ;;  %v1680_v5 = vadd.f32 %v11626_v13, %v1628_v49  ;;  %v11776_v42 = vld [vmem:[%s13496_s28 + $0x18] sm:$0xff] }
 0x350   :  { %1406 = vst.msk [vmem:[#allocation2 + $0xb0] sm:$0xff] %vm485_vm2, %v1392_v1  ;;  %v1682_v50 = vadd.f32 %v11669_v63, %v1630_v2  ;;  %v11718_v1 = vld [vmem:[%s13454_s11 + $0x2] ss:$0 sm:$0xff]  ;;  %v10314_v11 = vpack.c.bf16 %v1821_v55, %v1820_v53  ;;  %v1681_v9 = vadd.f32 %v11626_v13, %v1629_v8 }
 0x351   :  { %10281 = vmatpush3.bf16.xpose.msk.msra.mxu0 %vm11546_vm3, %v10276_v46  ;;  %10299 = vmatpush3.bf16.xpose.msk.msra.mxu1 %vm11546_vm3, %v10294_v47  ;;  %v1627_v46 = vld [vmem:[#allocation2 + $0x78] sm:$0xff]  ;;  %v10326_v59 = vpack.c.bf16 %v1827_v58, %v1826_v57 }
 0x352   :  { %v9381_v12 = vpop.f32.mrb[36].mxu1  ;;  %10284 = vmatprep.subr.msk.bf16.mxu0 %vm11546_vm3, %v10282_v44  ;;  %10302 = vmatprep.subr.msk.bf16.mxu1 %vm11546_vm3, %v10300_v51  ;;  %v1633_v47 = vld [vmem:[#allocation2 + $0xa8] sm:$0xff]  ;;  %v1679_v2 = vadd.f32 %v11626_v13, %v1627_v46 }
 0x353   :  { %1607 = vst.msk [vmem:[#allocation4 + $0x98] sm:$0xff] %vm485_vm2, %v9381_v12  ;;  %9463 = vmatprep.mubr.msk.f32.mxu1 %vm485_vm2, %v1682_v50  ;;  %v1576_v14 = vpop.f32.mrb[37].mxu1  ;;  %v1632_v28 = vld [vmem:[#allocation2 + $0xa0] sm:$0xff]  ;;  %v1828_v12 = vadd.f32 %v11718_v1, %v1776_v61 }
 0x354   :  { %1606 = vst.msk [vmem:[#allocation4 + $0x90] sm:$0xff] %vm485_vm2, %v1576_v14  ;;  %v1684_v45 = vadd.f32 %v11669_v63, %v1632_v28  ;;  %v1829_v14 = vadd.f32 %v11718_v1, %v1777_v0 }
 0x356   :  { %v9384_v60 = vpop.f32.mrb[38].mxu1  ;;  %v1635_v10 = vld [vmem:[#allocation2 + $0xb8] sm:$0xff] }
 0x357   :  { %1609 = vst.msk [vmem:[#allocation4 + $0xa8] sm:$0xff] %vm485_vm2, %v9384_v60  ;;  %v1586_v15 = vpop.f32.mrb[39].mxu1  ;;  %v1634_v52 = vld [vmem:[#allocation2 + $0xb0] sm:$0xff]  ;;  %v1687_v60 = vadd.f32 %v11669_v63, %v1635_v10 }
 0x358   :  { %1608 = vst.msk [vmem:[#allocation4 + $0xa0] sm:$0xff] %vm485_vm2, %v1586_v15  ;;  %v1686_v6 = vadd.f32 %v11669_v63, %v1634_v52  ;;  %v11741_v15 = vpack.c.bf16 %v1829_v14, %v1828_v12 }
 0x359   :  { %10287 = vmatpush3.bf16.xpose.msk.msra.mxu0 %vm11546_vm3, %v10282_v44  ;;  %10305 = vmatpush3.bf16.xpose.msk.msra.mxu1 %vm11546_vm3, %v10300_v51  ;;  %v1685_v44 = vadd.f32 %v11669_v63, %v1633_v47  ;;  %v11750_v63 = vld [vmem:[%s13496_s28 + $0x8] sm:$0xff] }
 0x35a   :  { %v9387_v23 = vpop.f32.mrb[40].mxu1  ;;  %10307 = vmatprep.subr.bf16.mxu0 %v10306_v16  ;;  %10319 = vmatprep.subr.bf16.mxu1 %v10318_v19  ;;  %v1783_v50 = vld [vmem:[#allocation4 + $0x98] sm:$0xff] }
 0x35b   :  { %1611 = vst.msk [vmem:[#allocation4 + $0xb8] sm:$0xff] %vm485_vm2, %v9387_v23  ;;  %v1596_v25 = vpop.f32.mrb[41].mxu1  ;;  %v1782_v51 = vld [vmem:[#allocation4 + $0x90] sm:$0xff]  ;;  %v1835_v7 = vadd.f32 %v11725_v4, %v1783_v50  ;;  %v11806_v50 = vld [vmem:[%s13496_s28 + $0x28] sm:$0xff] }
 0x35c   :  { %1610 = vst.msk [vmem:[#allocation4 + $0xb0] sm:$0xff] %vm485_vm2, %v1596_v25  ;;  %v1834_v62 = vadd.f32 %v11725_v4, %v1782_v51 }
 0x360   :  { %9443 = vmatmul.mubr.msk.f32.vlgmr.msra.gmra.mrb[42].mxu0 %vm485_vm2, %v1677_v39  ;;  %9464 = vmatmul.mubr.msk.f32.vlgmr.msra.gmra.mrb[48].mxu1 %vm485_vm2, %v1683_v40 }
 0x361   :  { %9445 = vmatprep.mubr.msk.f32.mxu0 %vm485_vm2, %v1678_v43  ;;  %9466 = vmatprep.mubr.msk.f32.mxu1 %vm485_vm2, %v1684_v45  ;;  %v11781_v43 = vld [vmem:[%s13496_s28 + $0x10] sm:$0xff] }
 0x362   :  { %10309 = vmatpush3.bf16.msra.mxu0 %v10306_v16  ;;  %10321 = vmatpush3.bf16.msra.mxu1 %v10318_v19  ;;  %v11743_v16 = vpack.c.bf16 %v1835_v7, %v1834_v62 }
 0x363   :  { %10311 = vmatprep.subr.bf16.mxu0 %v10310_v48  ;;  %10323 = vmatprep.subr.bf16.mxu1 %v10322_v56 }
 0x364   :  { %9446 = vmatmul.mubr.msk.f32.gmra.mrb[44].mxu0 %vm485_vm2, %v1679_v2  ;;  %9467 = vmatmul.mubr.msk.f32.gmra.mrb[50].mxu1 %vm485_vm2, %v1685_v44 }
 0x365   :  { %9448 = vmatprep.mubr.msk.f32.mxu0 %vm485_vm2, %v1680_v5  ;;  %9469 = vmatprep.mubr.msk.f32.mxu1 %vm485_vm2, %v1686_v6  ;;  %v11811_v5 = vld [vmem:[%s13496_s28 + $0x20] sm:$0xff] }
 0x366   :  { %10313 = vmatpush3.bf16.msra.mxu0 %v10310_v48  ;;  %10325 = vmatpush3.bf16.msra.mxu1 %v10322_v56 }
 0x367   :  { %10315 = vmatprep.subr.bf16.mxu0 %v10314_v11  ;;  %10327 = vmatprep.subr.bf16.mxu1 %v10326_v59 }
 0x368   :  { %9449 = vmatmul.mubr.msk.f32.gmra.mrb[46].mxu0 %vm485_vm2, %v1681_v9  ;;  %9470 = vmatmul.mubr.msk.f32.gmra.mrb[52].mxu1 %vm485_vm2, %v1687_v60 }
 0x36a   :  { %10317 = vmatpush3.bf16.msra.mxu0 %v10314_v11  ;;  %10329 = vmatpush3.bf16.msra.mxu1 %v10326_v59 }
 0x36b   :  { %10331 = vmatprep.subr.bf16.mxu0 %v11741_v15  ;;  %10343 = vmatprep.subr.bf16.mxu1 %v11743_v16 }
 0x40f   :  { %v9402_v19 = vpop.f32.mrb[36].mxu0  ;;  %v9423_v13 = vpop.f32.mrb[42].mxu1 }
 0x410   :  { %v2365_v21 = vmul.f32 0.35355338, %v9402_v19  ;;  %v2371_v23 = vmul.f32 0.35355338, %v9423_v13  ;;  %v1942_v26 = vpop.f32.mrb[37].mxu0  ;;  %v2073_v3 = vpop.f32.mrb[43].mxu1 }
 0x411   :  { %v2364_v25 = vmul.f32 0.35355338, %v1942_v26  ;;  %v2370_v27 = vmul.f32 0.35355338, %v2073_v3 }
 0x412   :  { %v11758_v17 = vadd.f32 %v2365_v21, %v11750_v63  ;;  %v11764_v34 = vadd.f32 %v2371_v23, %v11750_v63 }
 0x413   :  { %v9405_v18 = vpop.f32.mrb[38].mxu0  ;;  %v9426_v28 = vpop.f32.mrb[44].mxu1  ;;  %v11761_v30 = vadd.f32 %v2364_v25, %v11755_v20  ;;  %v11767_v35 = vadd.f32 %v2370_v27, %v11755_v20 }
 0x414   :  { %v1952_v32 = vpop.f32.mrb[39].mxu0  ;;  %v2083_v33 = vpop.f32.mrb[45].mxu1  ;;  %v2367_v36 = vmul.f32 0.35355338, %v9405_v18  ;;  %v2416_v40 = vsel %vm2412_vm4, %v11758_v17, -inf  ;;  %v2434_v53 = vsel %vm2412_vm4, %v11764_v34, -inf }
 0x415   :  { %v2366_v39 = vmul.f32 0.35355338, %v1952_v32  ;;  %v2413_v41 = vsel %vm2412_vm4, %v11761_v30, -inf  ;;  %2417 = vmax.xlane.f32.xlu1 %v2416_v40  ;;  %v2373_v47 = vmul.f32 0.35355338, %v9426_v28  ;;  %v2431_v55 = vsel %vm2412_vm4, %v11767_v35, -inf }
 0x416   :  { %2414 = vmax.xlane.f32.xlu0 %v2413_v41  ;;  %v2372_v48 = vmul.f32 0.35355338, %v2083_v33  ;;  %v11788_v56 = vadd.f32 %v2367_v36, %v11776_v42 }
 0x417   :  { %v9408_v45 = vpop.f32.mrb[40].mxu0  ;;  %v9429_v46 = vpop.f32.mrb[46].mxu1  ;;  %v11791_v57 = vadd.f32 %v2366_v39, %v11781_v43  ;;  %v11794_v58 = vadd.f32 %v2373_v47, %v11776_v42 }
 0x418   :  { %v1962_v49 = vpop.f32.mrb[41].mxu0  ;;  %v2093_v52 = vpop.f32.mrb[47].mxu1  ;;  %v11797_v61 = vadd.f32 %v2372_v48, %v11781_v43  ;;  %v2369_v0 = vmul.f32 0.35355338, %v9408_v45  ;;  %v2422_v44 = vsel %vm2412_vm4, %v11788_v56, -inf }
 0x419   :  { %2435 = vmax.xlane.f32.xlu1 %v2434_v53  ;;  %v2368_v2 = vmul.f32 0.35355338, %v1962_v49  ;;  %v2419_v51 = vsel %vm2412_vm4, %v11791_v57, -inf  ;;  %v2375_v6 = vmul.f32 0.35355338, %v9429_v46  ;;  %v2440_v10 = vsel %vm2412_vm4, %v11794_v58, -inf }
 0x41a   :  { %2432 = vmax.xlane.f32.xlu0 %v2431_v55  ;;  %v2374_v8 = vmul.f32 0.35355338, %v2093_v52  ;;  %v2437_v11 = vsel %vm2412_vm4, %v11797_v61, -inf  ;;  %v11818_v12 = vadd.f32 %v2369_v0, %v11806_v50 }
 0x41b   :  { %v11821_v14 = vadd.f32 %v2368_v2, %v11811_v5  ;;  %v11828_v7 = vadd.f32 %v2375_v6, %v11806_v50 }
 0x41c   :  { %v2428_v59 = vsel %vm2412_vm4, %v11818_v12, -inf  ;;  %v11831_v9 = vadd.f32 %v2374_v8, %v11811_v5 }
 0x41d   :  { %2423 = vmax.xlane.f32.xlu1 %v2422_v44  ;;  %v2425_v62 = vsel %vm2412_vm4, %v11821_v14, -inf  ;;  %v2446_v60 = vsel %vm2412_vm4, %v11828_v7, -inf }
 0x41e   :  { %2420 = vmax.xlane.f32.xlu0 %v2419_v51  ;;  %v2443_v19 = vsel %vm2412_vm4, %v11831_v9, -inf }
 0x421   :  { %2441 = vmax.xlane.f32.xlu1 %v2440_v10 }
 0x422   :  { %2438 = vmax.xlane.f32.xlu0 %v2437_v11 }
 0x425   :  { %2429 = vmax.xlane.f32.xlu1 %v2428_v59 }
 0x426   :  { %2426 = vmax.xlane.f32.xlu0 %v2425_v62 }
 0x429   :  { %2447 = vmax.xlane.f32.xlu1 %v2446_v60 }
 0x42a   :  { %2444 = vmax.xlane.f32.xlu0 %v2443_v19 }
 0x433   :  { %v9444_v13 = vpop.f32.mrb[42].mxu0  ;;  %v9465_v21 = vpop.f32.mrb[48].mxu1 }
 0x434   :  { %v2377_v23 = vmul.f32 0.35355338, %v9444_v13  ;;  %v2383_v26 = vmul.f32 0.35355338, %v9465_v21  ;;  %v2204_v3 = vpop.f32.mrb[43].mxu0  ;;  %v2335_v25 = vpop.f32.mrb[49].mxu1 }
 0x435   :  { %v2376_v27 = vmul.f32 0.35355338, %v2204_v3  ;;  %v2382_v18 = vmul.f32 0.35355338, %v2335_v25 }
 0x436   :  { %v11838_v28 = vadd.f32 %v2377_v23, %v11750_v63  ;;  %v11844_v41 = vadd.f32 %v2383_v26, %v11750_v63 }
 0x437   :  { %v9447_v32 = vpop.f32.mrb[44].mxu0  ;;  %v9468_v33 = vpop.f32.mrb[50].mxu1  ;;  %v11841_v36 = vadd.f32 %v2376_v27, %v11755_v20  ;;  %v11847_v45 = vadd.f32 %v2382_v18, %v11755_v20 }
 0x438   :  { %v2214_v39 = vpop.f32.mrb[45].mxu0  ;;  %v2345_v40 = vpop.f32.mrb[51].mxu1  ;;  %v2379_v46 = vmul.f32 0.35355338, %v9447_v32  ;;  %v2452_v48 = vsel %vm2412_vm4, %v11838_v28, -inf  ;;  %v2470_v20 = vsel %vm2412_vm4, %v11844_v41, -inf }
 0x439   :  { %v2378_v47 = vmul.f32 0.35355338, %v2214_v39  ;;  %v2449_v49 = vsel %vm2412_vm4, %v11841_v36, -inf  ;;  %2453 = vmax.xlane.f32.xlu1 %v2452_v48  ;;  %v2385_v55 = vmul.f32 0.35355338, %v9468_v33  ;;  %v2467_v44 = vsel %vm2412_vm4, %v11847_v45, -inf }
 0x43a   :  { %2450 = vmax.xlane.f32.xlu0 %v2449_v49  ;;  %v2384_v0 = vmul.f32 0.35355338, %v2345_v40  ;;  %v11858_v51 = vadd.f32 %v2379_v46, %v11776_v42 }
 0x43b   :  { %v9450_v52 = vpop.f32.mrb[46].mxu0  ;;  %v9471_v53 = vpop.f32.mrb[52].mxu1  ;;  %v11861_v6 = vadd.f32 %v2378_v47, %v11781_v43  ;;  %v11864_v8 = vadd.f32 %v2385_v55, %v11776_v42 }
 0x43c   :  { %v2224_v2 = vpop.f32.mrb[47].mxu0  ;;  %v2355_v63 = vpop.f32.mrb[53].mxu1  ;;  %v11867_v10 = vadd.f32 %v2384_v0, %v11781_v43  ;;  %v2381_v11 = vmul.f32 0.35355338, %v9450_v52  ;;  %v2458_v62 = vsel %vm2412_vm4, %v11858_v51, -inf }
 0x43d   :  { %2471 = vmax.xlane.f32.xlu1 %v2470_v20  ;;  %v2380_v59 = vmul.f32 0.35355338, %v2224_v2  ;;  %v2455_v60 = vsel %vm2412_vm4, %v11861_v6, -inf  ;;  %v2387_v19 = vmul.f32 0.35355338, %v9471_v53  ;;  %v2476_v21 = vsel %vm2412_vm4, %v11864_v8, -inf }
 0x43e   :  { %2468 = vmax.xlane.f32.xlu0 %v2467_v44  ;;  %v2386_v13 = vmul.f32 0.35355338, %v2355_v63  ;;  %v2473_v42 = vsel %vm2412_vm4, %v11867_v10, -inf  ;;  %v11878_v43 = vadd.f32 %v2381_v11, %v11806_v50 }
 0x43f   :  { %v11881_v23 = vadd.f32 %v2380_v59, %v11811_v5  ;;  %v11888_v25 = vadd.f32 %v2387_v19, %v11806_v50 }
 0x440   :  { %v2464_v26 = vsel %vm2412_vm4, %v11878_v43, -inf  ;;  %v11891_v27 = vadd.f32 %v2386_v13, %v11811_v5 }
 0x441   :  { %2459 = vmax.xlane.f32.xlu1 %v2458_v62  ;;  %v2461_v3 = vsel %vm2412_vm4, %v11881_v23, -inf  ;;  %v2482_v18 = vsel %vm2412_vm4, %v11888_v25, -inf }
 0x442   :  { %2456 = vmax.xlane.f32.xlu0 %v2455_v60  ;;  %v2479_v32 = vsel %vm2412_vm4, %v11891_v27, -inf }
 0x445   :  { %2477 = vmax.xlane.f32.xlu1 %v2476_v21 }
 0x446   :  { %2474 = vmax.xlane.f32.xlu0 %v2473_v42 }
 0x449   :  { %2465 = vmax.xlane.f32.xlu1 %v2464_v26 }
 0x44a   :  { %2462 = vmax.xlane.f32.xlu0 %v2461_v3 }
 0x44d   :  { %2483 = vmax.xlane.f32.xlu1 %v2482_v18 }
 0x44e   :  { %2480 = vmax.xlane.f32.xlu0 %v2479_v32 }
 0x4a2   :  { %v2418_v33 = vpop.xlane.xlu1 %2417 }
 0x4a3   :  { %v2415_v39 = vpop.xlane.xlu0 %2414  ;;  %v2486_v40 = vsub.f32 %v11758_v17, %v2418_v33 }
 0x4a4   :  { %v2485_v50 = vsub.f32 %v11761_v30, %v2415_v39 }
 0x4a5   :  { %v2511_v46 = vmul.f32 1.442695, %v2486_v40 }
 0x4a6   :  { %v2509_v47 = vmul.f32 1.442695, %v2485_v50  ;;  %v2436_v5 = vpop.xlane.xlu1 %2435 }
 0x4a7   :  { %v2433_v48 = vpop.xlane.xlu0 %2432  ;;  %10646 = vpow2.f32 %v2511_v46  ;;  %v2492_v49 = vsub.f32 %v11764_v34, %v2436_v5 }
 0x4a8   :  { %v2491_v52 = vsub.f32 %v11767_v35, %v2433_v48  ;;  %10648 = vpow2.f32 %v2509_v47 }
 0x4a9   :  { %v2523_v53 = vmul.f32 1.442695, %v2492_v49 }
 0x4aa   :  { %v2521_v55 = vmul.f32 1.442695, %v2491_v52  ;;  %v2424_v0 = vpop.xlane.xlu1 %2423 }
 0x4ab   :  { %v2421_v2 = vpop.xlane.xlu0 %2420  ;;  %10650 = vpow2.f32 %v2523_v53  ;;  %v2488_v63 = vsub.f32 %v11788_v56, %v2424_v0 }
 0x4ac   :  { %v2487_v17 = vsub.f32 %v11791_v57, %v2421_v2  ;;  %10652 = vpow2.f32 %v2521_v55 }
 0x4ad   :  { %v2515_v30 = vmul.f32 1.442695, %v2488_v63 }
 0x4ae   :  { %v2513_v20 = vmul.f32 1.442695, %v2487_v17  ;;  %v2442_v44 = vpop.xlane.xlu1 %2441 }
 0x4af   :  { %v2439_v11 = vpop.xlane.xlu0 %2438  ;;  %10654 = vpow2.f32 %v2515_v30  ;;  %v2494_v34 = vsub.f32 %v11794_v58, %v2442_v44 }
 0x4b0   :  { %v2493_v35 = vsub.f32 %v11797_v61, %v2439_v11  ;;  %10656 = vpow2.f32 %v2513_v20 }
 0x4b1   :  { %v11905_v59 = vpop.eup %10646  ;;  %v2527_v62 = vmul.f32 1.442695, %v2494_v34 }
 0x4b2   :  { %v2525_v60 = vmul.f32 1.442695, %v2493_v35  ;;  %v11907_v19 = vpop.eup %10648  ;;  %v2430_v56 = vpop.xlane.xlu1 %2429  ;;  %v2560_v57 = vsel %vm2412_vm4, %v11905_v59, 0.0 }
 0x4b3   :  { %v2427_v13 = vpop.xlane.xlu0 %2426  ;;  %10658 = vpow2.f32 %v2527_v62  ;;  %v2490_v21 = vsub.f32 %v11818_v12, %v2430_v56  ;;  %2561 = vadd.xlane.f32.xlu1 %v2560_v57  ;;  %v2557_v58 = vsel %vm2412_vm4, %v11907_v19, 0.0 }
 0x4b4   :  { %v2489_v42 = vsub.f32 %v11821_v14, %v2427_v13  ;;  %10660 = vpow2.f32 %v2525_v60  ;;  %2558 = vadd.xlane.f32.xlu0 %v2557_v58 }
 0x4b5   :  { %v11915_v61 = vpop.eup %10650  ;;  %v2519_v26 = vmul.f32 1.442695, %v2490_v21 }
 0x4b6   :  { %v2517_v3 = vmul.f32 1.442695, %v2489_v42  ;;  %v11917_v18 = vpop.eup %10652  ;;  %v2448_v32 = vpop.xlane.xlu1 %2447  ;;  %v2578_v39 = vsel %vm2412_vm4, %v11915_v61, 0.0 }
 0x4b7   :  { %v2445_v33 = vpop.xlane.xlu0 %2444  ;;  %10662 = vpow2.f32 %v2519_v26  ;;  %v2496_v12 = vsub.f32 %v11828_v7, %v2448_v32  ;;  %2579 = vadd.xlane.f32.xlu1 %v2578_v39  ;;  %v2575_v40 = vsel %vm2412_vm4, %v11917_v18, 0.0 }
 0x4b8   :  { %v2495_v14 = vsub.f32 %v11831_v9, %v2445_v33  ;;  %10664 = vpow2.f32 %v2517_v3  ;;  %2576 = vadd.xlane.f32.xlu0 %v2575_v40 }
 0x4b9   :  { %v11925_v50 = vpop.eup %10654  ;;  %v2531_v46 = vmul.f32 1.442695, %v2496_v12 }
 0x4ba   :  { %v2529_v47 = vmul.f32 1.442695, %v2495_v14  ;;  %v11927_v5 = vpop.eup %10656  ;;  %v2566_v48 = vsel %vm2412_vm4, %v11925_v50, 0.0 }
 0x4bb   :  { %10666 = vpow2.f32 %v2531_v46  ;;  %2567 = vadd.xlane.f32.xlu1 %v2566_v48  ;;  %v2563_v7 = vsel %vm2412_vm4, %v11927_v5, 0.0 }
 0x4bc   :  { %10668 = vpow2.f32 %v2529_v47  ;;  %2564 = vadd.xlane.f32.xlu0 %v2563_v7 }
 0x4bd   :  { %v11933_v9 = vpop.eup %10658 }
 0x4be   :  { %v11935_v49 = vpop.eup %10660  ;;  %v2584_v52 = vsel %vm2412_vm4, %v11933_v9, 0.0 }
 0x4bf   :  { %2585 = vadd.xlane.f32.xlu1 %v2584_v52  ;;  %v2581_v53 = vsel %vm2412_vm4, %v11935_v49, 0.0 }
 0x4c0   :  { %2582 = vadd.xlane.f32.xlu0 %v2581_v53 }
 0x4c1   :  { %v11941_v55 = vpop.eup %10662 }
 0x4c2   :  { %v11943_v0 = vpop.eup %10664  ;;  %v2572_v2 = vsel %vm2412_vm4, %v11941_v55, 0.0 }
 0x4c3   :  { %2573 = vadd.xlane.f32.xlu1 %v2572_v2  ;;  %v2569_v63 = vsel %vm2412_vm4, %v11943_v0, 0.0 }
 0x4c4   :  { %2570 = vadd.xlane.f32.xlu0 %v2569_v63 }
 0x4c5   :  { %v11949_v17 = vpop.eup %10666 }
 0x4c6   :  { %v11951_v30 = vpop.eup %10668  ;;  %v2454_v20 = vpop.xlane.xlu1 %2453  ;;  %v2590_v11 = vsel %vm2412_vm4, %v11949_v17, 0.0 }
 0x4c7   :  { %v2451_v44 = vpop.xlane.xlu0 %2450  ;;  %v2498_v34 = vsub.f32 %v11838_v28, %v2454_v20  ;;  %2591 = vadd.xlane.f32.xlu1 %v2590_v11  ;;  %v2587_v62 = vsel %vm2412_vm4, %v11951_v30, 0.0 }
 0x4c8   :  { %v2497_v35 = vsub.f32 %v11841_v36, %v2451_v44  ;;  %2588 = vadd.xlane.f32.xlu0 %v2587_v62 }
 0x4c9   :  { %v2535_v60 = vmul.f32 1.442695, %v2498_v34 }
 0x4ca   :  { %v2533_v56 = vmul.f32 1.442695, %v2497_v35  ;;  %v2472_v13 = vpop.xlane.xlu1 %2471 }
 0x4cb   :  { %v2469_v57 = vpop.xlane.xlu0 %2468  ;;  %10670 = vpow2.f32 %v2535_v60  ;;  %v2504_v21 = vsub.f32 %v11844_v41, %v2472_v13 }
 0x4cc   :  { %v2503_v42 = vsub.f32 %v11847_v45, %v2469_v57  ;;  %10672 = vpow2.f32 %v2533_v56 }
 0x4cd   :  { %v2547_v58 = vmul.f32 1.442695, %v2504_v21 }
 0x4ce   :  { %v2545_v26 = vmul.f32 1.442695, %v2503_v42  ;;  %v2460_v28 = vpop.xlane.xlu1 %2459 }
 0x4cf   :  { %v2457_v3 = vpop.xlane.xlu0 %2456  ;;  %10674 = vpow2.f32 %v2547_v58  ;;  %v2500_v36 = vsub.f32 %v11858_v51, %v2460_v28 }
 0x4d0   :  { %v2499_v32 = vsub.f32 %v11861_v6, %v2457_v3  ;;  %10676 = vpow2.f32 %v2545_v26 }
 0x4d1   :  { %v2539_v33 = vmul.f32 1.442695, %v2500_v36 }
 0x4d2   :  { %v2537_v39 = vmul.f32 1.442695, %v2499_v32  ;;  %v2478_v12 = vpop.xlane.xlu1 %2477 }
 0x4d3   :  { %v2475_v14 = vpop.xlane.xlu0 %2474  ;;  %10678 = vpow2.f32 %v2539_v33  ;;  %v2506_v41 = vsub.f32 %v11864_v8, %v2478_v12 }
 0x4d4   :  { %v2505_v45 = vsub.f32 %v11867_v10, %v2475_v14  ;;  %10680 = vpow2.f32 %v2537_v39 }
 0x4d5   :  { %v11965_v40 = vpop.eup %10670  ;;  %v2551_v46 = vmul.f32 1.442695, %v2506_v41 }
 0x4d6   :  { %v2549_v47 = vmul.f32 1.442695, %v2505_v45  ;;  %v11967_v48 = vpop.eup %10672  ;;  %v2466_v51 = vpop.xlane.xlu1 %2465  ;;  %v2596_v6 = vsel %vm2412_vm4, %v11965_v40, 0.0 }
 0x4d7   :  { %v2463_v7 = vpop.xlane.xlu0 %2462  ;;  %10682 = vpow2.f32 %v2551_v46  ;;  %v2502_v52 = vsub.f32 %v11878_v43, %v2466_v51  ;;  %2597 = vadd.xlane.f32.xlu1 %v2596_v6  ;;  %v2593_v10 = vsel %vm2412_vm4, %v11967_v48, 0.0  ;;  %v1778_v51 = vld [vmem:[#allocation4 + $0x70] sm:$0xff]  ;;  %v1779_v6 = vld [vmem:[#allocation4 + $0x78] sm:$0xff] }
 0x4d8   :  { %v2501_v8 = vsub.f32 %v11881_v23, %v2463_v7  ;;  %10684 = vpow2.f32 %v2549_v47  ;;  %2594 = vadd.xlane.f32.xlu0 %v2593_v10  ;;  %v1831_v10 = vadd.f32 %v11718_v1, %v1779_v6 }
 0x4d9   :  { %v11975_v53 = vpop.eup %10674  ;;  %v2543_v2 = vmul.f32 1.442695, %v2502_v52 }
 0x4da   :  { %v2541_v63 = vmul.f32 1.442695, %v2501_v8  ;;  %v11977_v20 = vpop.eup %10676  ;;  %v2484_v44 = vpop.xlane.xlu1 %2483  ;;  %v2614_v11 = vsel %vm2412_vm4, %v11975_v53, 0.0  ;;  %v1830_v8 = vadd.f32 %v11718_v1, %v1778_v51 }
 0x4db   :  { %v2481_v34 = vpop.xlane.xlu0 %2480  ;;  %10686 = vpow2.f32 %v2543_v2  ;;  %v2508_v43 = vsub.f32 %v11888_v25, %v2484_v44  ;;  %2615 = vadd.xlane.f32.xlu1 %v2614_v11  ;;  %v2611_v35 = vsel %vm2412_vm4, %v11977_v20, 0.0  ;;  %v1781_v44 = vld [vmem:[#allocation4 + $0x88] sm:$0xff] }
 0x4dc   :  { %v2507_v23 = vsub.f32 %v11891_v27, %v2481_v34  ;;  %10688 = vpow2.f32 %v2541_v63  ;;  %2612 = vadd.xlane.f32.xlu0 %v2611_v35  ;;  %v1785_v35 = vld [vmem:[#allocation4 + $0xa8] sm:$0xff] }
 0x4dd   :  { %v11985_v62 = vpop.eup %10678  ;;  %v2555_v60 = vmul.f32 1.442695, %v2508_v43  ;;  %v1780_v43 = vld [vmem:[#allocation4 + $0x80] sm:$0xff] }
 0x4de   :  { %v2553_v56 = vmul.f32 1.442695, %v2507_v23  ;;  %v11987_v13 = vpop.eup %10680  ;;  %v2602_v57 = vsel %vm2412_vm4, %v11985_v62, 0.0  ;;  %v1784_v23 = vld [vmem:[#allocation4 + $0xa0] sm:$0xff] }
 0x4df   :  { %10690 = vpow2.f32 %v2555_v60  ;;  %2603 = vadd.xlane.f32.xlu1 %v2602_v57  ;;  %v2599_v25 = vsel %vm2412_vm4, %v11987_v13, 0.0  ;;  %v10334_v57 = vpack.c.bf16 %v1831_v10, %v1830_v8 }
 0x4e0   :  { %10692 = vpow2.f32 %v2553_v56  ;;  %2600 = vadd.xlane.f32.xlu0 %v2599_v25 }
 0x4e1   :  { %v11993_v27 = vpop.eup %10682 }
 0x4e2   :  { %v11995_v21 = vpop.eup %10684  ;;  %v2620_v42 = vsel %vm2412_vm4, %v11993_v27, 0.0 }
 0x4e3   :  { %2621 = vadd.xlane.f32.xlu1 %v2620_v42  ;;  %v2617_v58 = vsel %vm2412_vm4, %v11995_v21, 0.0 }
 0x4e4   :  { %2618 = vadd.xlane.f32.xlu0 %v2617_v58  ;;  %v1832_v58 = vadd.f32 %v11718_v1, %v1780_v43 }
 0x4e5   :  { %v12001_v26 = vpop.eup %10686 }
 0x4e6   :  { %v12003_v28 = vpop.eup %10688  ;;  %v2608_v3 = vsel %vm2412_vm4, %v12001_v26, 0.0 }
 0x4e7   :  { %2609 = vadd.xlane.f32.xlu1 %v2608_v3  ;;  %v2605_v36 = vsel %vm2412_vm4, %v12003_v28, 0.0  ;;  %v1833_v3 = vadd.f32 %v11718_v1, %v1781_v44 }
 0x4e8   :  { %2606 = vadd.xlane.f32.xlu0 %v2605_v36  ;;  %v1837_v36 = vadd.f32 %v11725_v4, %v1785_v35 }
 0x4e9   :  { %v12009_v32 = vpop.eup %10690 }
 0x4ea   :  { %v12011_v33 = vpop.eup %10692  ;;  %v2626_v39 = vsel %vm2412_vm4, %v12009_v32, 0.0 }
 0x4eb   :  { %2627 = vadd.xlane.f32.xlu1 %v2626_v39  ;;  %v2623_v12 = vsel %vm2412_vm4, %v12011_v33, 0.0 }
 0x4ec   :  { %2624 = vadd.xlane.f32.xlu0 %v2623_v12  ;;  %v1786_v12 = vld [vmem:[#allocation4 + $0xb0] sm:$0xff] }
 0x540   :  { %v2562_v14 = vpop.xlane.xlu1 %2561 }
 0x541   :  { %10694 = vrcp.f32 %v2562_v14  ;;  %v2559_v41 = vpop.xlane.xlu0 %2558  ;;  %v1787_v14 = vld [vmem:[#allocation4 + $0xb8] sm:$0xff] }
 0x542   :  { %10696 = vrcp.f32 %v2559_v41  ;;  %v1839_v6 = vadd.f32 %v11725_v4, %v1787_v14 }
 0x544   :  { %v2580_v45 = vpop.xlane.xlu1 %2579 }
 0x545   :  { %10698 = vrcp.f32 %v2580_v45  ;;  %v2577_v46 = vpop.xlane.xlu0 %2576 }
 0x546   :  { %10700 = vrcp.f32 %v2577_v46 }
 0x548   :  { %v2568_v47 = vpop.xlane.xlu1 %2567 }
 0x549   :  { %10702 = vrcp.f32 %v2568_v47  ;;  %v2565_v7 = vpop.xlane.xlu0 %2564  ;;  %v10338_v47 = vpack.c.bf16 %v1833_v3, %v1832_v58 }
 0x54a   :  { %10704 = vrcp.f32 %v2565_v7 }
 0x54b   :  { %v10695_v52 = vpop.eup %10694 }
 0x54c   :  { %v10697_v2 = vpop.eup %10696  ;;  %v2586_v63 = vpop.xlane.xlu1 %2585  ;;  %v2654_v60 = vmul.f32 %v10695_v52, %v11905_v59 }
 0x54d   :  { %10706 = vrcp.f32 %v2586_v63  ;;  %v2583_v11 = vpop.xlane.xlu0 %2582  ;;  %v2653_v34 = vmul.f32 %v10697_v2, %v11907_v19  ;;  %v1836_v19 = vadd.f32 %v11725_v4, %v1784_v23 }
 0x54e   :  { %10708 = vrcp.f32 %v2583_v11 }
 0x54f   :  { %v10699_v56 = vpop.eup %10698  ;;  %9484 = vmatprep.mubr.msk.f32.mxu0 %vm2412_vm4, %v2653_v34  ;;  %v10346_v51 = vpack.c.bf16 %v1837_v36, %v1836_v19 }
 0x550   :  { %v10701_v25 = vpop.eup %10700  ;;  %v2574_v42 = vpop.xlane.xlu1 %2573  ;;  %9485 = vmatmul.mubr.msk.f32.vlgmr.msra.gmra.mrb[48].mxu0 %vm2412_vm4, %v2654_v60  ;;  %v2660_v41 = vmul.f32 %v10699_v56, %v11915_v61 }
 0x551   :  { %10710 = vrcp.f32 %v2574_v42  ;;  %10333 = vmatpush3.bf16.msra.mxu0 %v11741_v15  ;;  %v2571_v59 = vpop.xlane.xlu0 %2570  ;;  %v2659_v39 = vmul.f32 %v10701_v25, %v11917_v18  ;;  %v1838_v15 = vadd.f32 %v11725_v4, %v1786_v12 }
 0x552   :  { %10335 = vmatprep.subr.bf16.mxu0 %v10334_v57  ;;  %10712 = vrcp.f32 %v2571_v59 }
 0x553   :  { %v10703_v45 = vpop.eup %10702  ;;  %9505 = vmatprep.mubr.msk.f32.mxu1 %vm2412_vm4, %v2659_v39  ;;  %v10350_v10 = vpack.c.bf16 %v1839_v6, %v1838_v15 }
 0x554   :  { %v10705_v1 = vpop.eup %10704  ;;  %v2592_v46 = vpop.xlane.xlu1 %2591  ;;  %9506 = vmatmul.mubr.msk.f32.vlgmr.msra.gmra.mrb[54].mxu1 %vm2412_vm4, %v2660_v41  ;;  %v2656_v7 = vmul.f32 %v10703_v45, %v11925_v50 }
 0x555   :  { %10714 = vrcp.f32 %v2592_v46  ;;  %10337 = vmatpush3.bf16.msra.mxu0 %v10334_v57  ;;  %10345 = vmatpush3.bf16.msra.mxu1 %v11743_v16  ;;  %v2589_v61 = vpop.xlane.xlu0 %2588  ;;  %v2655_v18 = vmul.f32 %v10705_v1, %v11927_v5 }
 0x556   :  { %10339 = vmatprep.subr.bf16.mxu0 %v10338_v47  ;;  %10347 = vmatprep.subr.bf16.mxu1 %v10346_v51  ;;  %10716 = vrcp.f32 %v2589_v61 }
 0x557   :  { %v10707_v52 = vpop.eup %10706  ;;  %9487 = vmatprep.mubr.msk.f32.mxu0 %vm2412_vm4, %v2655_v18 }
 0x558   :  { %v10709_v8 = vpop.eup %10708  ;;  %9488 = vmatmul.mubr.msk.f32.gmra.mrb[50].mxu0 %vm2412_vm4, %v2656_v7  ;;  %v2662_v16 = vmul.f32 %v10707_v52, %v11933_v9 }
 0x559   :  { %10341 = vmatpush3.bf16.msra.mxu0 %v10338_v47  ;;  %10349 = vmatpush3.bf16.msra.mxu1 %v10346_v51  ;;  %v2661_v4 = vmul.f32 %v10709_v8, %v11935_v49 }
 0x55a   :  { %10351 = vmatprep.subr.bf16.mxu1 %v10350_v10 }
 0x55b   :  { %v10711_v5 = vpop.eup %10710  ;;  %9508 = vmatprep.mubr.msk.f32.mxu1 %vm2412_vm4, %v2661_v4 }
 0x55c   :  { %v10713_v2 = vpop.eup %10712  ;;  %9509 = vmatmul.mubr.msk.f32.gmra.mrb[56].mxu1 %vm2412_vm4, %v2662_v16  ;;  %v2658_v63 = vmul.f32 %v10711_v5, %v11941_v55 }
 0x55d   :  { %10353 = vmatpush3.bf16.msra.mxu1 %v10350_v10  ;;  %v2657_v50 = vmul.f32 %v10713_v2, %v11943_v0 }
 0x55f   :  { %v10715_v44 = vpop.eup %10714  ;;  %9490 = vmatprep.mubr.msk.f32.mxu0 %vm2412_vm4, %v2657_v50 }
 0x560   :  { %v10717_v11 = vpop.eup %10716  ;;  %9491 = vmatmul.mubr.msk.f32.gmra.mrb[52].mxu0 %vm2412_vm4, %v2658_v63  ;;  %v2664_v9 = vmul.f32 %v10715_v44, %v11949_v17 }
 0x561   :  { %v2663_v49 = vmul.f32 %v10717_v11, %v11951_v30 }
 0x563   :  { %9511 = vmatprep.mubr.msk.f32.mxu1 %vm2412_vm4, %v2663_v49 }
 0x564   :  { %v2598_v34 = vpop.xlane.xlu1 %2597  ;;  %9512 = vmatmul.mubr.msk.f32.gmra.mrb[58].mxu1 %vm2412_vm4, %v2664_v9 }
 0x565   :  { %10718 = vrcp.f32 %v2598_v34  ;;  %v2595_v43 = vpop.xlane.xlu0 %2594 }
 0x566   :  { %10720 = vrcp.f32 %v2595_v43 }
 0x568   :  { %v2616_v0 = vpop.xlane.xlu1 %2615 }
 0x569   :  { %10722 = vrcp.f32 %v2616_v0  ;;  %v2613_v55 = vpop.xlane.xlu0 %2612 }
 0x56a   :  { %10724 = vrcp.f32 %v2613_v55 }
 0x56c   :  { %v2604_v23 = vpop.xlane.xlu1 %2603 }
 0x56d   :  { %10726 = vrcp.f32 %v2604_v23  ;;  %v2601_v35 = vpop.xlane.xlu0 %2600 }
 0x56e   :  { %10728 = vrcp.f32 %v2601_v35 }
 0x56f   :  { %v10719_v60 = vpop.eup %10718 }
 0x570   :  { %v10721_v30 = vpop.eup %10720  ;;  %v2622_v56 = vpop.xlane.xlu1 %2621  ;;  %v2666_v25 = vmul.f32 %v10719_v60, %v11965_v40 }
 0x571   :  { %10730 = vrcp.f32 %v2622_v56  ;;  %v2619_v17 = vpop.xlane.xlu0 %2618  ;;  %v2665_v57 = vmul.f32 %v10721_v30, %v11967_v48 }
 0x572   :  { %10732 = vrcp.f32 %v2619_v17 }
 0x573   :  { %v10723_v42 = vpop.eup %10722  ;;  %9526 = vmatprep.mubr.msk.f32.mxu0 %vm2412_vm4, %v2665_v57 }
 0x574   :  { %v10725_v58 = vpop.eup %10724  ;;  %v2610_v3 = vpop.xlane.xlu1 %2609  ;;  %9527 = vmatmul.mubr.msk.f32.vlgmr.msra.gmra.mrb[54].mxu0 %vm2412_vm4, %v2666_v25  ;;  %v2672_v59 = vmul.f32 %v10723_v42, %v11975_v53 }
 0x575   :  { %10734 = vrcp.f32 %v2610_v3  ;;  %v2607_v19 = vpop.xlane.xlu0 %2606  ;;  %v2671_v36 = vmul.f32 %v10725_v58, %v11977_v20 }
 0x576   :  { %10736 = vrcp.f32 %v2607_v19 }
 0x577   :  { %v10727_v39 = vpop.eup %10726  ;;  %9547 = vmatprep.mubr.msk.f32.mxu1 %vm2412_vm4, %v2671_v36 }
 0x578   :  { %v10729_v48 = vpop.eup %10728  ;;  %v2628_v40 = vpop.xlane.xlu1 %2627  ;;  %9548 = vmatmul.mubr.msk.f32.vlgmr.msra.gmra.mrb[60].mxu1 %vm2412_vm4, %v2672_v59  ;;  %v2668_v41 = vmul.f32 %v10727_v39, %v11985_v62 }
 0x579   :  { %10738 = vrcp.f32 %v2628_v40  ;;  %v2625_v12 = vpop.xlane.xlu0 %2624  ;;  %v2667_v14 = vmul.f32 %v10729_v48, %v11987_v13 }
 0x57a   :  { %10740 = vrcp.f32 %v2625_v12 }
 0x57b   :  { %v10731_v45 = vpop.eup %10730  ;;  %9529 = vmatprep.mubr.msk.f32.mxu0 %vm2412_vm4, %v2667_v14 }
 0x57c   :  { %v10733_v20 = vpop.eup %10732  ;;  %9530 = vmatmul.mubr.msk.f32.gmra.mrb[56].mxu0 %vm2412_vm4, %v2668_v41  ;;  %v2674_v1 = vmul.f32 %v10731_v45, %v11993_v27 }
 0x57d   :  { %v2673_v53 = vmul.f32 %v10733_v20, %v11995_v21 }
 0x57f   :  { %v10735_v46 = vpop.eup %10734  ;;  %9550 = vmatprep.mubr.msk.f32.mxu1 %vm2412_vm4, %v2673_v53 }
 0x580   :  { %v10737_v47 = vpop.eup %10736  ;;  %9551 = vmatmul.mubr.msk.f32.gmra.mrb[62].mxu1 %vm2412_vm4, %v2674_v1  ;;  %v2670_v62 = vmul.f32 %v10735_v46, %v12001_v26  ;;  %v3130_v26 = vld [vmem:[%s13455_s12 + $0x8] sm:$0xff] }
 0x581   :  { %v2669_v13 = vmul.f32 %v10737_v47, %v12003_v28  ;;  %v3129_v28 = vld [vmem:[%s13455_s12] sm:$0xff]  ;;  %9567 = vmatprep.subr.mxu1 %v3130_v26 }
 0x582   :  { %9556 = vmatprep.subr.mxu0 %v3129_v28  ;;  %9568 = vmatpush3.msra.mxu1 %v3130_v26 }
 0x583   :  { %v10739_v51 = vpop.eup %10738  ;;  %9532 = vmatprep.mubr.msk.f32.mxu0 %vm2412_vm4, %v2669_v13  ;;  %9557 = vmatpush3.msra.mxu0 %v3129_v28 }
 0x584   :  { %v10741_v15 = vpop.eup %10740  ;;  %9533 = vmatmul.mubr.msk.f32.gmra.mrb[58].mxu0 %vm2412_vm4, %v2670_v62  ;;  %v2676_v27 = vmul.f32 %v10739_v51, %v12009_v32  ;;  %v3131_v32 = vld [vmem:[%s13455_s12 + $0x10] sm:$0xff] }
 0x585   :  { %v2675_v21 = vmul.f32 %v10741_v15, %v12011_v33  ;;  %9578 = vmatprep.subr.mxu0 %v3131_v32  ;;  %v3132_v33 = vld [vmem:[%s13455_s12 + $0x18] sm:$0xff] }
 0x586   :  { %9589 = vmatprep.subr.mxu1 %v3132_v33 }
 0x587   :  { %9553 = vmatprep.mubr.msk.f32.mxu1 %vm2412_vm4, %v2675_v21 }
 0x588   :  { %9554 = vmatmul.mubr.msk.f32.gmra.mrb[64].mxu1 %vm2412_vm4, %v2676_v27 }
 0x623   :  { %v9486_v6 = vpop.f32.mrb[48].mxu0 }
 0x624   :  { %v2761_v61 = vpop.f32.mrb[49].mxu0 }
 0x625   :  { %9558 = vmatprep.mubr.msk.f32.mxu0 %vm485_vm2, %v2761_v61 }
 0x626   :  { %9559 = vmatmul.mubr.msk.f32.vlgmr.msra.gmra.mrb[60].mxu0 %vm485_vm2, %v9486_v6 }
 0x627   :  { %v9507_v18 = vpop.f32.mrb[54].mxu1  ;;  %9579 = vmatpush3.msra.mxu0 %v3131_v32 }
 0x628   :  { %v2874_v7 = vpop.f32.mrb[55].mxu1 }
 0x629   :  { %9569 = vmatprep.mubr.msk.f32.mxu1 %vm485_vm2, %v2874_v7 }
 0x62a   :  { %9570 = vmatmul.mubr.msk.f32.vlgmr.msra.gmra.mrb[66].mxu1 %vm485_vm2, %v9507_v18 }
 0x62b   :  { %v9489_v52 = vpop.f32.mrb[50].mxu0  ;;  %9590 = vmatpush3.msra.mxu1 %v3132_v33 }
 0x62c   :  { %v2771_v8 = vpop.f32.mrb[51].mxu0 }
 0x62d   :  { %9561 = vmatprep.mubr.msk.f32.mxu0 %vm485_vm2, %v2771_v8 }
 0x62e   :  { %9562 = vmatmul.mubr.msk.f32.gmra.mrb[62].mxu0 %vm485_vm2, %v9489_v52 }
 0x62f   :  { %v9510_v10 = vpop.f32.mrb[56].mxu1 }
 0x630   :  { %v2884_v4 = vpop.f32.mrb[57].mxu1 }
 0x631   :  { %9572 = vmatprep.mubr.msk.f32.mxu1 %vm485_vm2, %v2884_v4 }
 0x632   :  { %9573 = vmatmul.mubr.msk.f32.gmra.mrb[68].mxu1 %vm485_vm2, %v9510_v10 }
 0x633   :  { %v9492_v16 = vpop.f32.mrb[52].mxu0 }
 0x634   :  { %v2781_v5 = vpop.f32.mrb[53].mxu0 }
 0x635   :  { %9564 = vmatprep.mubr.msk.f32.mxu0 %vm485_vm2, %v2781_v5  ;;  %v8298_v5 = vld [vmem:[%s13456_s13] ss:$0 sm:$0xff] }
 0x636   :  { %9565 = vmatmul.mubr.msk.f32.gmra.mrb[64].mxu0 %vm485_vm2, %v9492_v16 }
 0x637   :  { %v9513_v2 = vpop.f32.mrb[58].mxu1 }
 0x638   :  { %v2894_v50 = vpop.f32.mrb[59].mxu1 }
 0x639   :  { %9575 = vmatprep.mubr.msk.f32.mxu1 %vm485_vm2, %v2894_v50 }
 0x63a   :  { %9576 = vmatmul.mubr.msk.f32.gmra.mrb[70].mxu1 %vm485_vm2, %v9513_v2 }
 0x647   :  { %v9528_v63 = vpop.f32.mrb[54].mxu0 }
 0x648   :  { %v2987_v44 = vpop.f32.mrb[55].mxu0 }
 0x649   :  { %9580 = vmatprep.mubr.msk.f32.mxu0 %vm485_vm2, %v2987_v44 }
 0x64a   :  { %9581 = vmatmul.mubr.msk.f32.vlgmr.msra.gmra.mrb[66].mxu0 %vm485_vm2, %v9528_v63 }
 0x64b   :  { %v9549_v11 = vpop.f32.mrb[60].mxu1 }
 0x64c   :  { %v3100_v49 = vpop.f32.mrb[61].mxu1 }
 0x64d   :  { %9591 = vmatprep.mubr.msk.f32.mxu1 %vm485_vm2, %v3100_v49 }
 0x64e   :  { %9592 = vmatmul.mubr.msk.f32.vlgmr.msra.gmra.mrb[72].mxu1 %vm485_vm2, %v9549_v11 }
 0x64f   :  { %v9531_v9 = vpop.f32.mrb[56].mxu0 }
 0x650   :  { %v2997_v34 = vpop.f32.mrb[57].mxu0 }
 0x651   :  { %9583 = vmatprep.mubr.msk.f32.mxu0 %vm485_vm2, %v2997_v34 }
 0x652   :  { %9584 = vmatmul.mubr.msk.f32.gmra.mrb[68].mxu0 %vm485_vm2, %v9531_v9 }
 0x653   :  { %v9552_v43 = vpop.f32.mrb[62].mxu1 }
 0x654   :  { %v3110_v0 = vpop.f32.mrb[63].mxu1 }
 0x655   :  { %9594 = vmatprep.mubr.msk.f32.mxu1 %vm485_vm2, %v3110_v0 }
 0x656   :  { %9595 = vmatmul.mubr.msk.f32.gmra.mrb[74].mxu1 %vm485_vm2, %v9552_v43 }
 0x657   :  { %v9534_v55 = vpop.f32.mrb[58].mxu0 }
 0x658   :  { %v3007_v23 = vpop.f32.mrb[59].mxu0 }
 0x659   :  { %9586 = vmatprep.mubr.msk.f32.mxu0 %vm485_vm2, %v3007_v23 }
 0x65a   :  { %9587 = vmatmul.mubr.msk.f32.gmra.mrb[70].mxu0 %vm485_vm2, %v9534_v55 }
 0x65b   :  { %v9555_v35 = vpop.f32.mrb[64].mxu1 }
 0x65c   :  { %v3120_v60 = vpop.f32.mrb[65].mxu1 }
 0x65d   :  { %9597 = vmatprep.mubr.msk.f32.mxu1 %vm485_vm2, %v3120_v60 }
 0x65e   :  { %9598 = vmatmul.mubr.msk.f32.gmra.mrb[76].mxu1 %vm485_vm2, %v9555_v35 }
 0x6f9   :  { %v9560_v30 = vpop.f32.mrb[60].mxu0 }
 0x6fa   :  { %v3217_v56 = vpop.f32.mrb[61].mxu0  ;;  %v3592_v57 = vsel %vm220_vm1, %v9560_v30, 0.0 }
 0x6fb   :  { %v3585_v58 = vsel %vm220_vm1, %v3217_v56, 0.0 }
 0x6fd   :  { %v9571_v17 = vpop.f32.mrb[66].mxu1 }
 0x6fe   :  { %v3593_v25 = vsel %vm220_vm1, %v9571_v17, 0.0  ;;  %v3330_v42 = vpop.f32.mrb[67].mxu1 }
 0x6ff   :  { %v3594_v3 = vadd.f32 %v3593_v25, %v3592_v57  ;;  %v3586_v19 = vsel %vm220_vm1, %v3330_v42, 0.0 }
 0x700   :  { %v3587_v36 = vadd.f32 %v3586_v19, %v3585_v58 }
 0x701   :  { %v9563_v59 = vpop.f32.mrb[62].mxu0 }
 0x702   :  { %v3227_v39 = vpop.f32.mrb[63].mxu0  ;;  %v3606_v40 = vsel %vm220_vm1, %v9563_v59, 0.0 }
 0x703   :  { %v3599_v41 = vsel %vm220_vm1, %v3227_v39, 0.0 }
 0x705   :  { %v9574_v48 = vpop.f32.mrb[68].mxu1 }
 0x706   :  { %v3607_v12 = vsel %vm220_vm1, %v9574_v48, 0.0  ;;  %v3340_v14 = vpop.f32.mrb[69].mxu1 }
 0x707   :  { %v3608_v45 = vadd.f32 %v3607_v12, %v3606_v40  ;;  %v3600_v20 = vsel %vm220_vm1, %v3340_v14, 0.0 }
 0x708   :  { %v3601_v53 = vadd.f32 %v3600_v20, %v3599_v41 }
 0x709   :  { %v9566_v1 = vpop.f32.mrb[64].mxu0 }
 0x70a   :  { %v3237_v46 = vpop.f32.mrb[65].mxu0  ;;  %v3620_v13 = vsel %vm220_vm1, %v9566_v1, 0.0 }
 0x70b   :  { %v3613_v15 = vsel %vm220_vm1, %v3237_v46, 0.0 }
 0x70d   :  { %v9577_v47 = vpop.f32.mrb[70].mxu1 }
 0x70e   :  { %v3621_v62 = vsel %vm220_vm1, %v9577_v47, 0.0  ;;  %v3350_v51 = vpop.f32.mrb[71].mxu1 }
 0x70f   :  { %v3622_v21 = vadd.f32 %v3621_v62, %v3620_v13  ;;  %v3614_v27 = vsel %vm220_vm1, %v3350_v51, 0.0 }
 0x710   :  { %v3615_v28 = vadd.f32 %v3614_v27, %v3613_v15 }
 0x71d   :  { %v9582_v26 = vpop.f32.mrb[66].mxu0 }
 0x71e   :  { %v3595_v32 = vsel %vm220_vm1, %v9582_v26, 0.0  ;;  %v3443_v33 = vpop.f32.mrb[67].mxu0 }
 0x71f   :  { %v3596_v6 = vadd.f32 %v3595_v32, %v3594_v3  ;;  %v3588_v61 = vsel %vm220_vm1, %v3443_v33, 0.0 }
 0x720   :  { %v3589_v18 = vadd.f32 %v3588_v61, %v3587_v36 }
 0x721   :  { %v9593_v7 = vpop.f32.mrb[72].mxu1 }
 0x722   :  { %v3597_v52 = vsel %vm220_vm1, %v9593_v7, 0.0  ;;  %v3556_v8 = vpop.f32.mrb[73].mxu1 }
 0x723   :  { %v3598_v10 = vadd.f32 %v3597_v52, %v3596_v6  ;;  %v3590_v4 = vsel %vm220_vm1, %v3556_v8, 0.0 }
 0x724   :  { %v3591_v16 = vadd.f32 %v3590_v4, %v3589_v18 }
 0x725   :  { %v3628_v2 = vadd.f32 %v3598_v10, %v11120_v24  ;;  %v9585_v50 = vpop.f32.mrb[68].mxu0 }
 0x726   :  { %v3627_v63 = vadd.f32 %v3591_v16, %v11115_v22  ;;  %v3609_v44 = vsel %vm220_vm1, %v9585_v50, 0.0  ;;  %v3453_v11 = vpop.f32.mrb[69].mxu0 }
 0x727   :  { %v3610_v49 = vadd.f32 %v3609_v44, %v3608_v45  ;;  %v3602_v9 = vsel %vm220_vm1, %v3453_v11, 0.0  ;;  %v12134_v34 = vadd.f32 %v8298_v5, %v3628_v2 }
 0x728   :  { %v3603_v43 = vadd.f32 %v3602_v9, %v3601_v53  ;;  %v12136_v0 = vadd.f32 %v8298_v5, %v3627_v63 }
 0x729   :  { %v9596_v55 = vpop.f32.mrb[74].mxu1  ;;  %v3651_v23 = vsel %vm220_vm1, %v12134_v34, 0.0 }
 0x72a   :  { %v3611_v24 = vsel %vm220_vm1, %v9596_v55, 0.0  ;;  %3652 = vadd.xlane.f32.xlu1 %v3651_v23  ;;  %v3566_v35 = vpop.f32.mrb[75].mxu1  ;;  %v3648_v22 = vsel %vm220_vm1, %v12136_v0, 0.0  ;;  %v3750_v23 = vld [vmem:[%s13459_s16] sm:$0xff] }
 0x72b   :  { %v3612_v60 = vadd.f32 %v3611_v24, %v3610_v49  ;;  %v3604_v30 = vsel %vm220_vm1, %v3566_v35, 0.0  ;;  %3649 = vadd.xlane.f32.xlu0 %v3648_v22  ;;  %v3751_v24 = vld [vmem:[%s13459_s16 + $0x8] sm:$0xff]  ;;  %v3752_v22 = vld [vmem:[%s13459_s16 + $0x10] sm:$0xff] }
 0x72c   :  { %v3605_v56 = vadd.f32 %v3604_v30, %v3603_v43  ;;  %v10354_v35 = vpack.c.bf16 %v3751_v24, %v3750_v23  ;;  %v3933_v23 = vld [vmem:[%s13461_s18 + $0x28] sm:$0xff] }
 0x72d   :  { %v3630_v17 = vadd.f32 %v3612_v60, %v11132_v31  ;;  %v9588_v57 = vpop.f32.mrb[70].mxu0  ;;  %v3753_v60 = vld [vmem:[%s13459_s16 + $0x18] sm:$0xff] }
 0x72e   :  { %v3629_v25 = vadd.f32 %v3605_v56, %v11127_v29  ;;  %v3623_v42 = vsel %vm220_vm1, %v9588_v57, 0.0  ;;  %v3463_v58 = vpop.f32.mrb[71].mxu0  ;;  %10355 = vmatprep.subr.bf16.mxu0 %v10354_v35  ;;  %v10358_v30 = vpack.c.bf16 %v3753_v60, %v3752_v22  ;;  %v3935_v22 = vld [vmem:[%s13461_s18 + $0x38] sm:$0xff] }
 0x72f   :  { %v3624_v3 = vadd.f32 %v3623_v42, %v3622_v21  ;;  %v3616_v19 = vsel %vm220_vm1, %v3463_v58, 0.0  ;;  %v12148_v36 = vadd.f32 %v8298_v5, %v3630_v17  ;;  %10357 = vmatpush3.bf16.msra.mxu0 %v10354_v35  ;;  %v3934_v35 = vld [vmem:[%s13461_s18 + $0x30] sm:$0xff] }
 0x730   :  { %v3617_v59 = vadd.f32 %v3616_v19, %v3615_v28  ;;  %v12150_v39 = vadd.f32 %v8298_v5, %v3629_v25  ;;  %10359 = vmatprep.subr.bf16.mxu0 %v10358_v30  ;;  %v10374_v60 = vpack.c.bf16 %v3935_v22, %v3934_v35 }
 0x731   :  { %v9599_v48 = vpop.f32.mrb[76].mxu1  ;;  %v3657_v40 = vsel %vm220_vm1, %v12148_v36, 0.0 }
 0x732   :  { %v3625_v31 = vsel %vm220_vm1, %v9599_v48, 0.0  ;;  %3658 = vadd.xlane.f32.xlu1 %v3657_v40  ;;  %v3576_v12 = vpop.f32.mrb[77].mxu1  ;;  %v3654_v29 = vsel %vm220_vm1, %v12150_v39, 0.0 }
 0x733   :  { %v3626_v14 = vadd.f32 %v3625_v31, %v3624_v3  ;;  %v3618_v41 = vsel %vm220_vm1, %v3576_v12, 0.0  ;;  %3655 = vadd.xlane.f32.xlu0 %v3654_v29  ;;  %10361 = vmatpush3.bf16.msra.mxu0 %v10358_v30  ;;  %v8299_v29 = vld [vmem:[%s13457_s14] ss:$0 sm:$0xff] }
 0x734   :  { %v3619_v45 = vadd.f32 %v3618_v41, %v3617_v59  ;;  %v8301_v30 = vld [vmem:[%s13460_s17] ss:$0 sm:$0xff] }
 0x735   :  { %v3632_v20 = vadd.f32 %v3626_v14, %v11143_v38 }
 0x736   :  { %v3631_v53 = vadd.f32 %v3619_v45, %v11141_v37 }
 0x737   :  { %v12160_v1 = vadd.f32 %v8298_v5, %v3632_v20 }
 0x738   :  { %v12162_v46 = vadd.f32 %v8298_v5, %v3631_v53 }
 0x739   :  { %v3663_v47 = vsel %vm220_vm1, %v12160_v1, 0.0 }
 0x73a   :  { %3664 = vadd.xlane.f32.xlu1 %v3663_v47  ;;  %v3660_v13 = vsel %vm220_vm1, %v12162_v46, 0.0 }
 0x73b   :  { %3661 = vadd.xlane.f32.xlu0 %v3660_v13  ;;  %v8300_v13 = vld [vmem:[%s13458_s15] ss:$0 sm:$0xff] }
 0x7b7   :  { %v3653_v62 = vpop.xlane.xlu1 %3652 }
 0x7b8   :  { %v3667_v51 = vmul.f32 0.03125, %v3653_v62  ;;  %v3650_v15 = vpop.xlane.xlu0 %3649 }
 0x7b9   :  { %v3666_v21 = vmul.f32 0.03125, %v3650_v15 }
 0x7ba   :  { %v3673_v38 = vsub.f32 %v12134_v34, %v3667_v51 }
 0x7bb   :  { %v12170_v37 = vsub.f32 %v12136_v0, %v3666_v21 }
 0x7bc   :  { %v3679_v27 = vmul.f32 %v3673_v38, %v3673_v38 }
 0x7bd   :  { %v3678_v28 = vmul.f32 %v12170_v37, %v12170_v37 }
 0x7be   :  { %v3687_v26 = vsel %vm220_vm1, %v3679_v27, 0.0 }
 0x7bf   :  { %v3659_v32 = vpop.xlane.xlu1 %3658  ;;  %3688 = vadd.xlane.f32.xlu1 %v3687_v26  ;;  %v3684_v33 = vsel %vm220_vm1, %v3678_v28, 0.0 }
 0x7c0   :  { %v3669_v6 = vmul.f32 0.03125, %v3659_v32  ;;  %v3656_v61 = vpop.xlane.xlu0 %3655  ;;  %3685 = vadd.xlane.f32.xlu0 %v3684_v33 }
 0x7c1   :  { %v3668_v18 = vmul.f32 0.03125, %v3656_v61 }
 0x7c2   :  { %v12177_v7 = vsub.f32 %v12148_v36, %v3669_v6 }
 0x7c3   :  { %v12180_v52 = vsub.f32 %v12150_v39, %v3668_v18 }
 0x7c4   :  { %v3681_v8 = vmul.f32 %v12177_v7, %v12177_v7 }
 0x7c5   :  { %v3680_v10 = vmul.f32 %v12180_v52, %v12180_v52 }
 0x7c6   :  { %v3693_v4 = vsel %vm220_vm1, %v3681_v8, 0.0 }
 0x7c7   :  { %3694 = vadd.xlane.f32.xlu1 %v3693_v4  ;;  %v3665_v16 = vpop.xlane.xlu1 %3664  ;;  %v3690_v5 = vsel %vm220_vm1, %v3680_v10, 0.0 }
 0x7c8   :  { %v3671_v2 = vmul.f32 0.03125, %v3665_v16  ;;  %3691 = vadd.xlane.f32.xlu0 %v3690_v5  ;;  %v3662_v50 = vpop.xlane.xlu0 %3661 }
 0x7c9   :  { %v3670_v63 = vmul.f32 0.03125, %v3662_v50 }
 0x7ca   :  { %v12189_v44 = vsub.f32 %v12160_v1, %v3671_v2 }
 0x7cb   :  { %v12192_v11 = vsub.f32 %v12162_v46, %v3670_v63 }
 0x7cc   :  { %v3683_v49 = vmul.f32 %v12189_v44, %v12189_v44 }
 0x7cd   :  { %v3682_v9 = vmul.f32 %v12192_v11, %v12192_v11 }
 0x7ce   :  { %v3699_v43 = vsel %vm220_vm1, %v3683_v49, 0.0  ;;  %v3929_v49 = vld [vmem:[%s13461_s18 + $0x8] sm:$0xff] }
 0x7cf   :  { %3700 = vadd.xlane.f32.xlu1 %v3699_v43  ;;  %v3696_v55 = vsel %vm220_vm1, %v3682_v9, 0.0 }
 0x7d0   :  { %3697 = vadd.xlane.f32.xlu0 %v3696_v55  ;;  %v3932_v55 = vld [vmem:[%s13461_s18 + $0x20] sm:$0xff] }
 0x7d1   :  { %v10370_v24 = vpack.c.bf16 %v3933_v23, %v3932_v55 }
 0x84c   :  { %v3689_v56 = vpop.xlane.xlu1 %3688 }
 0x84d   :  { %v3703_v17 = vmul.f32 0.03125, %v3689_v56  ;;  %v3686_v57 = vpop.xlane.xlu0 %3685 }
 0x84e   :  { %v3702_v25 = vmul.f32 0.03125, %v3686_v57 }
 0x84f   :  { %v3709_v42 = vadd.f32 1e-05, %v3703_v17 }
 0x850   :  { %v3708_v58 = vadd.f32 1e-05, %v3702_v25 }
 0x851   :  { %10742 = vrsqrt.f32 %v3709_v42 }
 0x852   :  { %10744 = vrsqrt.f32 %v3708_v58 }
 0x854   :  { %v3695_v3 = vpop.xlane.xlu1 %3694 }
 0x855   :  { %v3705_v19 = vmul.f32 0.03125, %v3695_v3  ;;  %v3692_v59 = vpop.xlane.xlu0 %3691 }
 0x856   :  { %v3704_v48 = vmul.f32 0.03125, %v3692_v59 }
 0x857   :  { %v3711_v40 = vadd.f32 1e-05, %v3705_v19 }
 0x858   :  { %v3710_v31 = vadd.f32 1e-05, %v3704_v48 }
 0x859   :  { %10746 = vrsqrt.f32 %v3711_v40 }
 0x85a   :  { %10748 = vrsqrt.f32 %v3710_v31 }
 0x85b   :  { %v10743_v12 = vpop.eup %10742 }
 0x85c   :  { %v10745_v14 = vpop.eup %10744  ;;  %v3721_v41 = vmul.f32 %v10743_v12, %v3673_v38  ;;  %v3701_v45 = vpop.xlane.xlu1 %3700 }
 0x85d   :  { %v3707_v20 = vmul.f32 0.03125, %v3701_v45  ;;  %v3698_v53 = vpop.xlane.xlu0 %3697  ;;  %v3720_v47 = vmul.f32 %v10745_v14, %v12170_v37 }
 0x85e   :  { %v3733_v62 = vmul.f32 %v8299_v29, %v3721_v41  ;;  %v3706_v51 = vmul.f32 0.03125, %v3698_v53 }
 0x85f   :  { %v3713_v15 = vadd.f32 1e-05, %v3707_v20  ;;  %v3732_v21 = vmul.f32 %v8299_v29, %v3720_v47 }
 0x860   :  { %v3712_v27 = vadd.f32 1e-05, %v3706_v51  ;;  %v3745_v26 = vadd.f32 %v8300_v13, %v3733_v62 }
 0x861   :  { %10750 = vrsqrt.f32 %v3713_v15  ;;  %v3744_v28 = vadd.f32 %v8300_v13, %v3732_v21 }
 0x862   :  { %10752 = vrsqrt.f32 %v3712_v27 }
 0x863   :  { %v10747_v32 = vpop.eup %10746  ;;  %9608 = vmatprep.mubr.msk.f32.mxu0 %vm220_vm1, %v3744_v28 }
 0x864   :  { %v10749_v38 = vpop.eup %10748  ;;  %9609 = vmatmul.mubr.msk.f32.vlgmr.msra.gmra.mrb[72].mxu0 %vm220_vm1, %v3745_v26  ;;  %v3723_v37 = vmul.f32 %v10747_v32, %v12177_v7 }
 0x865   :  { %v3722_v33 = vmul.f32 %v10749_v38, %v12180_v52  ;;  %v3928_v52 = vld [vmem:[%s13461_s18] sm:$0xff] }
 0x866   :  { %v3735_v6 = vmul.f32 %v8299_v29, %v3723_v37  ;;  %v10362_v9 = vpack.c.bf16 %v3929_v49, %v3928_v52 }
 0x867   :  { %v3734_v61 = vmul.f32 %v8299_v29, %v3722_v33 }
 0x868   :  { %v3747_v8 = vadd.f32 %v8300_v13, %v3735_v6  ;;  %10363 = vmatprep.subr.bf16.mxu1 %v10362_v9 }
 0x869   :  { %v3746_v18 = vadd.f32 %v8300_v13, %v3734_v61  ;;  %10365 = vmatpush3.bf16.msra.mxu1 %v10362_v9 }
 0x86b   :  { %v10751_v10 = vpop.eup %10750  ;;  %9611 = vmatprep.mubr.msk.f32.mxu0 %vm220_vm1, %v3746_v18 }
 0x86c   :  { %v10753_v4 = vpop.eup %10752  ;;  %9612 = vmatmul.mubr.msk.f32.gmra.mrb[74].mxu0 %vm220_vm1, %v3747_v8  ;;  %v3725_v16 = vmul.f32 %v10751_v10, %v12189_v44  ;;  %v3930_v44 = vld [vmem:[%s13461_s18 + $0x10] sm:$0xff] }
 0x86d   :  { %v3724_v5 = vmul.f32 %v10753_v4, %v12192_v11  ;;  %v3931_v11 = vld [vmem:[%s13461_s18 + $0x18] sm:$0xff] }
 0x86e   :  { %v3737_v2 = vmul.f32 %v8299_v29, %v3725_v16  ;;  %v10366_v43 = vpack.c.bf16 %v3931_v11, %v3930_v44 }
 0x86f   :  { %v3736_v50 = vmul.f32 %v8299_v29, %v3724_v5 }
 0x870   :  { %v3749_v7 = vadd.f32 %v8300_v13, %v3737_v2  ;;  %10367 = vmatprep.subr.bf16.mxu1 %v10366_v43 }
 0x871   :  { %v3748_v63 = vadd.f32 %v8300_v13, %v3736_v50  ;;  %10369 = vmatpush3.bf16.msra.mxu1 %v10366_v43 }
 0x872   :  { %10371 = vmatprep.subr.bf16.mxu1 %v10370_v24 }
 0x873   :  { %9614 = vmatprep.mubr.msk.f32.mxu0 %vm220_vm1, %v3748_v63 }
 0x874   :  { %9615 = vmatmul.mubr.msk.f32.gmra.mrb[76].mxu0 %vm220_vm1, %v3749_v7 }
 0x875   :  { %10373 = vmatpush3.bf16.msra.mxu1 %v10370_v24 }
 0x876   :  { %10375 = vmatprep.subr.bf16.mxu1 %v10374_v60 }
 0x879   :  { %10377 = vmatpush3.bf16.msra.mxu1 %v10374_v60 }
 0x937   :  { %v9610_v56 = vpop.f32.mrb[72].mxu0 }
 0x938   :  { %v3851_v17 = vadd.f32 %v9610_v56, %v8301_v30  ;;  %v3845_v57 = vpop.f32.mrb[73].mxu0 }
 0x939   :  { %v3846_v25 = vadd.f32 %v8301_v30, %v3845_v57 }
 0x93a   :  { %v3881_v42 = vmul.f32 0.044715, %v3851_v17  ;;  %v3875_v52 = vmul.f32 0.5, %v3851_v17 }
 0x93b   :  { %v3880_v58 = vmul.f32 0.044715, %v3846_v25  ;;  %v3874_v63 = vmul.f32 0.5, %v3846_v25 }
 0x93c   :  { %v3887_v3 = vmul.f32 %v3881_v42, %v3851_v17 }
 0x93d   :  { %v3886_v19 = vmul.f32 %v3880_v58, %v3846_v25 }
 0x93e   :  { %v3893_v59 = vmul.f32 %v3887_v3, %v3851_v17 }
 0x93f   :  { %v3892_v48 = vmul.f32 %v3886_v19, %v3846_v25  ;;  %v9613_v40 = vpop.f32.mrb[74].mxu0 }
 0x940   :  { %v3899_v31 = vadd.f32 %v3893_v59, %v3851_v17  ;;  %v3861_v12 = vadd.f32 %v9613_v40, %v8301_v30  ;;  %v3855_v29 = vpop.f32.mrb[75].mxu0  ;;  %v8314_v40 = vld [vmem:[%s13462_s19] ss:$0 sm:$0xff] }
 0x941   :  { %v3898_v14 = vadd.f32 %v3892_v48, %v3846_v25  ;;  %v3856_v41 = vadd.f32 %v8301_v30, %v3855_v29 }
 0x942   :  { %v3905_v45 = vmul.f32 0.7978845, %v3899_v31  ;;  %v3883_v20 = vmul.f32 0.044715, %v3861_v12  ;;  %v3877_v60 = vmul.f32 0.5, %v3861_v12 }
 0x943   :  { %v3882_v53 = vmul.f32 0.044715, %v3856_v41  ;;  %v3904_v47 = vmul.f32 0.7978845, %v3898_v14  ;;  %v3876_v35 = vmul.f32 0.5, %v3856_v41 }
 0x944   :  { %10754 = vtanh.f32 %v3905_v45  ;;  %v3889_v13 = vmul.f32 %v3883_v20, %v3861_v12 }
 0x945   :  { %v3888_v62 = vmul.f32 %v3882_v53, %v3856_v41  ;;  %10756 = vtanh.f32 %v3904_v47 }
 0x946   :  { %v3895_v51 = vmul.f32 %v3889_v13, %v3861_v12 }
 0x947   :  { %v3894_v15 = vmul.f32 %v3888_v62, %v3856_v41  ;;  %v9616_v21 = vpop.f32.mrb[76].mxu0 }
 0x948   :  { %v3901_v27 = vadd.f32 %v3895_v51, %v3861_v12  ;;  %v3871_v28 = vadd.f32 %v9616_v21, %v8301_v30  ;;  %v3865_v26 = vpop.f32.mrb[77].mxu0 }
 0x949   :  { %v3900_v32 = vadd.f32 %v3894_v15, %v3856_v41  ;;  %v3866_v38 = vadd.f32 %v8301_v30, %v3865_v26 }
 0x94a   :  { %v3885_v37 = vmul.f32 0.044715, %v3871_v28  ;;  %v3907_v33 = vmul.f32 0.7978845, %v3901_v27  ;;  %v3879_v3 = vmul.f32 0.5, %v3871_v28 }
 0x94b   :  { %v3884_v6 = vmul.f32 0.044715, %v3866_v38  ;;  %v3906_v61 = vmul.f32 0.7978845, %v3900_v32  ;;  %v3878_v42 = vmul.f32 0.5, %v3866_v38 }
 0x94c   :  { %v3891_v18 = vmul.f32 %v3885_v37, %v3871_v28  ;;  %10758 = vtanh.f32 %v3907_v33 }
 0x94d   :  { %v3890_v8 = vmul.f32 %v3884_v6, %v3866_v38  ;;  %10760 = vtanh.f32 %v3906_v61 }
 0x94e   :  { %v10755_v10 = vpop.eup %10754  ;;  %v3897_v4 = vmul.f32 %v3891_v18, %v3871_v28 }
 0x94f   :  { %v10757_v16 = vpop.eup %10756  ;;  %v3917_v5 = vadd.f32 1.0, %v10755_v10  ;;  %v3896_v2 = vmul.f32 %v3890_v8, %v3866_v38 }
 0x950   :  { %v3903_v50 = vadd.f32 %v3897_v4, %v3871_v28  ;;  %v3916_v7 = vadd.f32 1.0, %v10757_v16 }
 0x951   :  { %v3902_v49 = vadd.f32 %v3896_v2, %v3866_v38  ;;  %v3923_v11 = vmul.f32 %v3917_v5, %v3875_v52 }
 0x952   :  { %v3922_v9 = vmul.f32 %v3916_v7, %v3874_v63  ;;  %v3909_v44 = vmul.f32 0.7978845, %v3903_v50 }
 0x953   :  { %v3908_v43 = vmul.f32 0.7978845, %v3902_v49 }
 0x954   :  { %9633 = vmatprep.mubr.msk.f32.mxu1 %vm98_vm0, %v3922_v9  ;;  %10762 = vtanh.f32 %v3909_v44 }
 0x955   :  { %9634 = vmatmul.mubr.msk.f32.vlgmr.msra.gmra.mrb[78].mxu1 %vm98_vm0, %v3923_v11  ;;  %10764 = vtanh.f32 %v3908_v43 }
 0x956   :  { %v10759_v55 = vpop.eup %10758 }
 0x957   :  { %v10761_v23 = vpop.eup %10760  ;;  %v3919_v24 = vadd.f32 1.0, %v10759_v55 }
 0x958   :  { %v3918_v22 = vadd.f32 1.0, %v10761_v23 }
 0x959   :  { %v3925_v56 = vmul.f32 %v3919_v24, %v3877_v60 }
 0x95a   :  { %v3924_v30 = vmul.f32 %v3918_v22, %v3876_v35 }
 0x95c   :  { %9636 = vmatprep.mubr.msk.f32.mxu1 %vm98_vm0, %v3924_v30 }
 0x95d   :  { %9637 = vmatmul.mubr.msk.f32.gmra.mrb[80].mxu1 %vm98_vm0, %v3925_v56 }
 0x95e   :  { %v10763_v17 = vpop.eup %10762 }
 0x95f   :  { %v10765_v57 = vpop.eup %10764  ;;  %v3921_v25 = vadd.f32 1.0, %v10763_v17  ;;  %v8319_v17 = vld [vmem:[%s13489_s26 + $0x80] sm:$0xff] }
 0x960   :  { %v3920_v58 = vadd.f32 1.0, %v10765_v57  ;;  %v8320_v57 = vld [vmem:[%s13489_s26 + $0x88] sm:$0xff] }
 0x961   :  { %v3927_v59 = vmul.f32 %v3921_v25, %v3879_v3  ;;  %v8335_v25 = vld [vmem:[%s13491_s29 + $0x80] sm:$0xff] }
 0x962   :  { %v3926_v19 = vmul.f32 %v3920_v58, %v3878_v42  ;;  %v10378_v42 = vpack.c.bf16 %v8320_v57, %v8319_v17  ;;  %v8336_v58 = vld [vmem:[%s13491_s29 + $0x88] sm:$0xff] }
 0x963   :  { %v10386_v3 = vpack.c.bf16 %v8336_v58, %v8335_v25  ;;  %v8340_v57 = vld [vmem:[%s13491_s29 + $0xa8] sm:$0xff]  ;;  %v8355_v25 = vld [vmem:[%s13490_s0 + $0xa0] sm:$0xff] }
 0x964   :  { %9639 = vmatprep.mubr.msk.f32.mxu1 %vm98_vm0, %v3926_v19  ;;  %10379 = vmatprep.subr.bf16.mxu0 %v10378_v42  ;;  %v8321_v19 = vld [vmem:[%s13489_s26 + $0x90] sm:$0xff] }
 0x965   :  { %9640 = vmatmul.mubr.msk.f32.gmra.mrb[82].mxu1 %vm98_vm0, %v3927_v59  ;;  %10387 = vmatprep.subr.bf16.mxu1 %v10386_v3  ;;  %v8322_v59 = vld [vmem:[%s13489_s26 + $0x98] sm:$0xff] }
 0x966   :  { %10381 = vmatpush3.bf16.msra.mxu0 %v10378_v42  ;;  %10389 = vmatpush3.bf16.msra.mxu1 %v10386_v3  ;;  %v8356_v42 = vld [vmem:[%s13490_s0 + $0xa8] sm:$0xff] }
 0xa28   :  { %v9635_v48 = vpop.f32.mrb[78].mxu1 }
 0xa29   :  { %v4050_v31 = vadd.f32 %v9635_v48, %v12134_v34  ;;  %v4020_v12 = vpop.f32.mrb[79].mxu1  ;;  %v8337_v48 = vld [vmem:[%s13491_s29 + $0x90] sm:$0xff] }
 0xa2a   :  { %v4049_v29 = vadd.f32 %v4020_v12, %v12136_v0 }
 0xa2b   :  { %v12267_v14 = vadd.f32 %v8314_v40, %v4050_v31  ;;  %v8338_v31 = vld [vmem:[%s13491_s29 + $0x98] sm:$0xff] }
 0xa2c   :  { %v12269_v41 = vadd.f32 %v8314_v40, %v4049_v29  ;;  %v10390_v12 = vpack.c.bf16 %v8338_v31, %v8337_v48  ;;  %v8351_v29 = vld [vmem:[%s13490_s0 + $0x80] sm:$0xff] }
 0xa2d   :  { %v4075_v45 = vsel %vm220_vm1, %v12267_v14, 0.0 }
 0xa2e   :  { %4076 = vadd.xlane.f32.xlu1 %v4075_v45  ;;  %v4072_v20 = vsel %vm220_vm1, %v12269_v41, 0.0  ;;  %10391 = vmatprep.subr.bf16.mxu1 %v10390_v12  ;;  %v8352_v45 = vld [vmem:[%s13490_s0 + $0x88] sm:$0xff] }
 0xa2f   :  { %4073 = vadd.xlane.f32.xlu0 %v4072_v20  ;;  %10393 = vmatpush3.bf16.msra.mxu1 %v10390_v12  ;;  %v8323_v20 = vld [vmem:[%s13489_s26 + $0xa0] sm:$0xff] }
 0xa30   :  { %v9638_v53 = vpop.f32.mrb[80].mxu1 }
 0xa31   :  { %v4052_v47 = vadd.f32 %v9638_v53, %v12148_v36  ;;  %v4030_v13 = vpop.f32.mrb[81].mxu1  ;;  %v10394_v53 = vpack.c.bf16 %v8352_v45, %v8351_v29 }
 0xa32   :  { %v4051_v34 = vadd.f32 %v4030_v13, %v12150_v39 }
 0xa33   :  { %v12277_v62 = vadd.f32 %v8314_v40, %v4052_v47  ;;  %v8324_v47 = vld [vmem:[%s13489_s26 + $0xa8] sm:$0xff] }
 0xa34   :  { %v12279_v0 = vadd.f32 %v8314_v40, %v4051_v34  ;;  %v10402_v13 = vpack.c.bf16 %v8324_v47, %v8323_v20 }
 0xa35   :  { %v4081_v51 = vsel %vm220_vm1, %v12277_v62, 0.0 }
 0xa36   :  { %4082 = vadd.xlane.f32.xlu1 %v4081_v51  ;;  %v4078_v15 = vsel %vm220_vm1, %v12279_v0, 0.0  ;;  %10403 = vmatprep.subr.bf16.mxu1 %v10402_v13 }
 0xa37   :  { %4079 = vadd.xlane.f32.xlu0 %v4078_v15 }
 0xa38   :  { %v9641_v21 = vpop.f32.mrb[82].mxu1 }
 0xa39   :  { %v4054_v27 = vadd.f32 %v9641_v21, %v12160_v1  ;;  %v4040_v28 = vpop.f32.mrb[83].mxu1 }
 0xa3a   :  { %v4053_v36 = vadd.f32 %v4040_v28, %v12162_v46 }
 0xa3b   :  { %v12287_v26 = vadd.f32 %v8314_v40, %v4054_v27 }
 0xa3c   :  { %v12289_v39 = vadd.f32 %v8314_v40, %v4053_v36  ;;  %v10382_v40 = vpack.c.bf16 %v8322_v59, %v8321_v19 }
 0xa3d   :  { %v4087_v32 = vsel %vm220_vm1, %v12287_v26, 0.0 }
 0xa3e   :  { %4088 = vadd.xlane.f32.xlu1 %v4087_v32  ;;  %v4084_v38 = vsel %vm220_vm1, %v12289_v39, 0.0  ;;  %10383 = vmatprep.subr.bf16.mxu0 %v10382_v40 }
 0xa3f   :  { %4085 = vadd.xlane.f32.xlu0 %v4084_v38  ;;  %10385 = vmatpush3.bf16.msra.mxu0 %v10382_v40  ;;  %v10418_v40 = vpack.c.bf16 %v8356_v42, %v8355_v25  ;;  %v8349_v25 = vld [vmem:[%s13491_s29 + $0xf0] sm:$0xff]  ;;  %v8350_v42 = vld [vmem:[%s13491_s29 + $0xf8] sm:$0xff] }
 0xa40   :  { %10395 = vmatprep.subr.bf16.mxu0 %v10394_v53 }
 0xabb   :  { %v4077_v37 = vpop.xlane.xlu1 %4076 }
 0xabc   :  { %v4091_v33 = vmul.f32 0.03125, %v4077_v37  ;;  %v4074_v6 = vpop.xlane.xlu0 %4073 }
 0xabd   :  { %v4090_v61 = vmul.f32 0.03125, %v4074_v6 }
 0xabe   :  { %v12296_v1 = vsub.f32 %v12267_v14, %v4091_v33 }
 0xabf   :  { %v12299_v46 = vsub.f32 %v12269_v41, %v4090_v61 }
 0xac0   :  { %v4103_v18 = vmul.f32 %v12296_v1, %v12296_v1 }
 0xac1   :  { %v4102_v8 = vmul.f32 %v12299_v46, %v12299_v46 }
 0xac2   :  { %v4111_v10 = vsel %vm220_vm1, %v4103_v18, 0.0  ;;  %v8317_v18 = vld [vmem:[%s13492_s1 + $0x1] ss:$0 sm:$0xff] }
 0xac3   :  { %v4083_v4 = vpop.xlane.xlu1 %4082  ;;  %4112 = vadd.xlane.f32.xlu1 %v4111_v10  ;;  %v4108_v16 = vsel %vm220_vm1, %v4102_v8, 0.0 }
 0xac4   :  { %v4093_v5 = vmul.f32 0.03125, %v4083_v4  ;;  %4109 = vadd.xlane.f32.xlu0 %v4108_v16  ;;  %v4080_v2 = vpop.xlane.xlu0 %4079 }
 0xac5   :  { %v4092_v50 = vmul.f32 0.03125, %v4080_v2 }
 0xac6   :  { %v12308_v63 = vsub.f32 %v12277_v62, %v4093_v5 }
 0xac7   :  { %v12311_v7 = vsub.f32 %v12279_v0, %v4092_v50  ;;  %v8318_v50 = vld [vmem:[%s13493_s2 + $0x1] ss:$0 sm:$0xff] }
 0xac8   :  { %v4105_v52 = vmul.f32 %v12308_v63, %v12308_v63 }
 0xac9   :  { %v4104_v49 = vmul.f32 %v12311_v7, %v12311_v7 }
 0xaca   :  { %v4117_v9 = vsel %vm220_vm1, %v4105_v52, 0.0 }
 0xacb   :  { %4118 = vadd.xlane.f32.xlu1 %v4117_v9  ;;  %v4089_v44 = vpop.xlane.xlu1 %4088  ;;  %v4114_v11 = vsel %vm220_vm1, %v4104_v49, 0.0  ;;  %v8353_v9 = vld [vmem:[%s13490_s0 + $0x90] sm:$0xff] }
 0xacc   :  { %v4095_v43 = vmul.f32 0.03125, %v4089_v44  ;;  %4115 = vadd.xlane.f32.xlu0 %v4114_v11  ;;  %v4086_v55 = vpop.xlane.xlu0 %4085 }
 0xacd   :  { %v4094_v23 = vmul.f32 0.03125, %v4086_v55 }
 0xace   :  { %v12320_v24 = vsub.f32 %v12287_v26, %v4095_v43  ;;  %v8326_v43 = vld [vmem:[%s13489_s26 + $0xb8] sm:$0xff] }
 0xacf   :  { %v12323_v35 = vsub.f32 %v12289_v39, %v4094_v23 }
 0xad0   :  { %v4107_v22 = vmul.f32 %v12320_v24, %v12320_v24 }
 0xad1   :  { %v4106_v60 = vmul.f32 %v12323_v35, %v12323_v35 }
 0xad2   :  { %v4123_v30 = vsel %vm220_vm1, %v4107_v22, 0.0 }
 0xad3   :  { %4124 = vadd.xlane.f32.xlu1 %v4123_v30  ;;  %v4120_v56 = vsel %vm220_vm1, %v4106_v60, 0.0 }
 0xad4   :  { %4121 = vadd.xlane.f32.xlu0 %v4120_v56  ;;  %v8339_v56 = vld [vmem:[%s13491_s29 + $0xa0] sm:$0xff] }
 0xad5   :  { %v10410_v48 = vpack.c.bf16 %v8340_v57, %v8339_v56  ;;  %v8363_v56 = vld [vmem:[%s13490_s0 + $0xe0] sm:$0xff] }
 0xb50   :  { %v4113_v34 = vpop.xlane.xlu1 %4112 }
 0xb51   :  { %v4127_v51 = vmul.f32 0.03125, %v4113_v34  ;;  %v4110_v15 = vpop.xlane.xlu0 %4109 }
 0xb52   :  { %v4126_v21 = vmul.f32 0.03125, %v4110_v15  ;;  %v8357_v15 = vld [vmem:[%s13490_s0 + $0xb0] sm:$0xff] }
 0xb53   :  { %v4133_v27 = vadd.f32 1e-05, %v4127_v51 }
 0xb54   :  { %v4132_v28 = vadd.f32 1e-05, %v4126_v21  ;;  %v8358_v21 = vld [vmem:[%s13490_s0 + $0xb8] sm:$0xff] }
 0xb55   :  { %10766 = vrsqrt.f32 %v4133_v27  ;;  %v8327_v27 = vld [vmem:[%s13489_s26 + $0xc0] sm:$0xff] }
 0xb56   :  { %10768 = vrsqrt.f32 %v4132_v28  ;;  %v8328_v28 = vld [vmem:[%s13489_s26 + $0xc8] sm:$0xff] }
 0xb58   :  { %v4119_v36 = vpop.xlane.xlu1 %4118 }
 0xb59   :  { %v4129_v32 = vmul.f32 0.03125, %v4119_v36  ;;  %v4116_v38 = vpop.xlane.xlu0 %4115  ;;  %v10422_v36 = vpack.c.bf16 %v8358_v21, %v8357_v15 }
 0xb5a   :  { %v4128_v37 = vmul.f32 0.03125, %v4116_v38  ;;  %v8343_v38 = vld [vmem:[%s13491_s29 + $0xc0] sm:$0xff] }
 0xb5b   :  { %v4135_v33 = vadd.f32 1e-05, %v4129_v32  ;;  %v10426_v32 = vpack.c.bf16 %v8328_v28, %v8327_v27 }
 0xb5c   :  { %v4134_v6 = vadd.f32 1e-05, %v4128_v37  ;;  %v8344_v37 = vld [vmem:[%s13491_s29 + $0xc8] sm:$0xff] }
 0xb5d   :  { %10770 = vrsqrt.f32 %v4135_v33  ;;  %v10434_v33 = vpack.c.bf16 %v8344_v37, %v8343_v38 }
 0xb5e   :  { %10772 = vrsqrt.f32 %v4134_v6  ;;  %v8329_v6 = vld [vmem:[%s13489_s26 + $0xd0] sm:$0xff] }
 0xb5f   :  { %v10767_v61 = vpop.eup %10766 }
 0xb60   :  { %v10769_v8 = vpop.eup %10768  ;;  %v4145_v10 = vmul.f32 %v10767_v61, %v12296_v1  ;;  %v4125_v4 = vpop.xlane.xlu1 %4124  ;;  %v8354_v1 = vld [vmem:[%s13490_s0 + $0x98] sm:$0xff] }
 0xb61   :  { %v4144_v16 = vmul.f32 %v10769_v8, %v12299_v46  ;;  %v4131_v5 = vmul.f32 0.03125, %v4125_v4  ;;  %v4122_v2 = vpop.xlane.xlu0 %4121  ;;  %v8325_v46 = vld [vmem:[%s13489_s26 + $0xb0] sm:$0xff]  ;;  %v10398_v60 = vpack.c.bf16 %v8354_v1, %v8353_v9  ;;  %v8330_v61 = vld [vmem:[%s13489_s26 + $0xd8] sm:$0xff]  ;;  %v8359_v4 = vld [vmem:[%s13490_s0 + $0xc0] sm:$0xff] }
 0xb62   :  { %v4157_v52 = vmul.f32 %v8317_v18, %v4145_v10  ;;  %v4130_v49 = vmul.f32 0.03125, %v4122_v2  ;;  %v10406_v30 = vpack.c.bf16 %v8326_v43, %v8325_v46  ;;  %v8345_v8 = vld [vmem:[%s13491_s29 + $0xd0] sm:$0xff]  ;;  %v8346_v10 = vld [vmem:[%s13491_s29 + $0xd8] sm:$0xff]  ;;  %v8347_v43 = vld [vmem:[%s13491_s29 + $0xe0] sm:$0xff] }
 0xb63   :  { %v4156_v44 = vmul.f32 %v8317_v18, %v4144_v16  ;;  %v4137_v11 = vadd.f32 1e-05, %v4131_v5  ;;  %v8360_v16 = vld [vmem:[%s13490_s0 + $0xc8] sm:$0xff]  ;;  %v10438_v5 = vpack.c.bf16 %v8346_v10, %v8345_v8  ;;  %v8361_v9 = vld [vmem:[%s13490_s0 + $0xd0] sm:$0xff]  ;;  %v8334_v46 = vld [vmem:[%s13489_s26 + $0xf8] sm:$0xff] }
 0xb64   :  { %v4136_v55 = vadd.f32 1e-05, %v4130_v49  ;;  %v12389_v22 = vadd.f32 %v8318_v50, %v4157_v52  ;;  %v10442_v2 = vpack.c.bf16 %v8360_v16, %v8359_v4  ;;  %v8332_v52 = vld [vmem:[%s13489_s26 + $0xe8] sm:$0xff]  ;;  %v8333_v1 = vld [vmem:[%s13489_s26 + $0xf0] sm:$0xff] }
 0xb65   :  { %v12387_v23 = vadd.f32 %v8318_v50, %v4156_v44  ;;  %10774 = vrsqrt.f32 %v4137_v11  ;;  %v8362_v44 = vld [vmem:[%s13490_s0 + $0xd8] sm:$0xff] }
 0xb66   :  { %10776 = vrsqrt.f32 %v4136_v55  ;;  %v10446_v11 = vpack.c.bf16 %v8362_v44, %v8361_v9  ;;  %v8348_v55 = vld [vmem:[%s13491_s29 + $0xe8] sm:$0xff] }
 0xb67   :  { %v10771_v17 = vpop.eup %10770  ;;  %9650 = vmatprep.mubr.msk.f32.mxu0 %vm220_vm1, %v12387_v23  ;;  %9667 = vmatprep.mubr.msk.f32.mxu1 %vm220_vm1, %v12387_v23 }
 0xb68   :  { %v10773_v58 = vpop.eup %10772  ;;  %v4147_v3 = vmul.f32 %v10771_v17, %v12308_v63  ;;  %9651 = vmatmul.mubr.msk.f32.vlgmr.msra.gmra.mrb[78].mxu0 %vm220_vm1, %v12389_v22  ;;  %9668 = vmatmul.mubr.msk.f32.vlgmr.msra.gmra.mrb[84].mxu1 %vm220_vm1, %v12389_v22  ;;  %v8364_v17 = vld [vmem:[%s13490_s0 + $0xe8] sm:$0xff] }
 0xb69   :  { %v4146_v19 = vmul.f32 %v10773_v58, %v12311_v7  ;;  %10397 = vmatpush3.bf16.msra.mxu0 %v10394_v53  ;;  %10405 = vmatpush3.bf16.msra.mxu1 %v10402_v13  ;;  %v10466_v57 = vpack.c.bf16 %v8364_v17, %v8363_v56  ;;  %v10462_v58 = vpack.c.bf16 %v8350_v42, %v8349_v25 }
 0xb6a   :  { %v4159_v59 = vmul.f32 %v8317_v18, %v4147_v3  ;;  %10399 = vmatprep.subr.bf16.mxu0 %v10398_v60  ;;  %10407 = vmatprep.subr.bf16.mxu1 %v10406_v30  ;;  %v8365_v3 = vld [vmem:[%s13490_s0 + $0xf0] sm:$0xff] }
 0xb6b   :  { %v4158_v31 = vmul.f32 %v8317_v18, %v4146_v19  ;;  %v8366_v19 = vld [vmem:[%s13490_s0 + $0xf8] sm:$0xff] }
 0xb6c   :  { %v12415_v63 = vadd.f32 %v8318_v50, %v4159_v59  ;;  %v10470_v59 = vpack.c.bf16 %v8366_v19, %v8365_v3 }
 0xb6d   :  { %v12413_v12 = vadd.f32 %v8318_v50, %v4158_v31  ;;  %10401 = vmatpush3.bf16.msra.mxu0 %v10398_v60  ;;  %10409 = vmatpush3.bf16.msra.mxu1 %v10406_v30  ;;  %v10454_v60 = vpack.c.bf16 %v8334_v46, %v8333_v1  ;;  %v10458_v30 = vpack.c.bf16 %v8348_v55, %v8347_v43  ;;  %v8451_v31 = vld [vmem:[%s13453_s10 + $0x4] ss:$0 sm:$0xff] }
 0xb6e   :  { %10411 = vmatprep.subr.bf16.mxu0 %v10410_v48  ;;  %10419 = vmatprep.subr.bf16.mxu1 %v10418_v40 }
 0xb6f   :  { %v10775_v29 = vpop.eup %10774  ;;  %9653 = vmatprep.mubr.msk.f32.mxu0 %vm220_vm1, %v12413_v12  ;;  %9670 = vmatprep.mubr.msk.f32.mxu1 %vm220_vm1, %v12413_v12 }
 0xb70   :  { %v10777_v7 = vpop.eup %10776  ;;  %v4149_v45 = vmul.f32 %v10775_v29, %v12320_v24  ;;  %9654 = vmatmul.mubr.msk.f32.gmra.mrb[80].mxu0 %vm220_vm1, %v12415_v63  ;;  %9671 = vmatmul.mubr.msk.f32.gmra.mrb[86].mxu1 %vm220_vm1, %v12415_v63  ;;  %v8341_v24 = vld [vmem:[%s13491_s29 + $0xb0] sm:$0xff] }
 0xb71   :  { %v4148_v20 = vmul.f32 %v10777_v7, %v12323_v35  ;;  %v8342_v35 = vld [vmem:[%s13491_s29 + $0xb8] sm:$0xff] }
 0xb72   :  { %v4161_v53 = vmul.f32 %v8317_v18, %v4149_v45  ;;  %v10414_v51 = vpack.c.bf16 %v8342_v35, %v8341_v24 }
 0xb73   :  { %v4160_v47 = vmul.f32 %v8317_v18, %v4148_v20  ;;  %v10430_v18 = vpack.c.bf16 %v8330_v61, %v8329_v6 }
 0xb74   :  { %v12429_v34 = vadd.f32 %v8318_v50, %v4161_v53 }
 0xb75   :  { %v12427_v13 = vadd.f32 %v8318_v50, %v4160_v47  ;;  %v8331_v50 = vld [vmem:[%s13489_s26 + $0xe0] sm:$0xff] }
 0xb76   :  { %v10450_v49 = vpack.c.bf16 %v8332_v52, %v8331_v50 }
 0xb77   :  { %9656 = vmatprep.mubr.msk.f32.mxu0 %vm220_vm1, %v12427_v13  ;;  %9673 = vmatprep.mubr.msk.f32.mxu1 %vm220_vm1, %v12427_v13 }
 0xb78   :  { %9657 = vmatmul.mubr.msk.f32.gmra.mrb[82].mxu0 %vm220_vm1, %v12429_v34  ;;  %9674 = vmatmul.mubr.msk.f32.gmra.mrb[88].mxu1 %vm220_vm1, %v12429_v34 }
 0xb79   :  { %9684 = vmatprep.mubr.msk.f32.mxu0 %vm220_vm1, %v12387_v23  ;;  %9701 = vmatprep.mubr.msk.f32.mxu1 %vm220_vm1, %v12387_v23 }
 0xb7c   :  { %9685 = vmatmul.mubr.msk.f32.vlgmr.msra.gmra.mrb[84].mxu0 %vm220_vm1, %v12389_v22  ;;  %9702 = vmatmul.mubr.msk.f32.vlgmr.msra.gmra.mrb[90].mxu1 %vm220_vm1, %v12389_v22 }
 0xb7d   :  { %10413 = vmatpush3.bf16.msra.mxu0 %v10410_v48  ;;  %9687 = vmatprep.mubr.msk.f32.mxu0 %vm220_vm1, %v12413_v12 }
 0xb7e   :  { %9704 = vmatprep.mubr.msk.f32.mxu1 %vm220_vm1, %v12413_v12  ;;  %10415 = vmatprep.subr.bf16.mxu0 %v10414_v51 }
 0xb7f   :  { %10421 = vmatpush3.bf16.msra.mxu1 %v10418_v40 }
 0xb80   :  { %9688 = vmatmul.mubr.msk.f32.gmra.mrb[86].mxu0 %vm220_vm1, %v12415_v63  ;;  %9705 = vmatmul.mubr.msk.f32.gmra.mrb[92].mxu1 %vm220_vm1, %v12415_v63 }
 0xb81   :  { %9690 = vmatprep.mubr.msk.f32.mxu0 %vm220_vm1, %v12427_v13  ;;  %9707 = vmatprep.mubr.msk.f32.mxu1 %vm220_vm1, %v12427_v13 }
 0xb82   :  { %10417 = vmatpush3.bf16.msra.mxu0 %v10414_v51  ;;  %10423 = vmatprep.subr.bf16.mxu1 %v10422_v36 }
 0xb83   :  { %10425 = vmatpush3.bf16.msra.mxu1 %v10422_v36  ;;  %10427 = vmatprep.subr.bf16.mxu0 %v10426_v32 }
 0xb84   :  { %9691 = vmatmul.mubr.msk.f32.gmra.mrb[88].mxu0 %vm220_vm1, %v12429_v34  ;;  %9708 = vmatmul.mubr.msk.f32.gmra.mrb[94].mxu1 %vm220_vm1, %v12429_v34 }
 0xb85   :  { %9718 = vmatprep.mubr.msk.f32.mxu0 %vm220_vm1, %v12387_v23  ;;  %9735 = vmatprep.mubr.msk.f32.mxu1 %vm220_vm1, %v12387_v23 }
 0xb86   :  { %10435 = vmatprep.subr.bf16.mxu1 %v10434_v33 }
 0xb88   :  { %9719 = vmatmul.mubr.msk.f32.vlgmr.msra.gmra.mrb[90].mxu0 %vm220_vm1, %v12389_v22  ;;  %9736 = vmatmul.mubr.msk.f32.vlgmr.msra.gmra.mrb[96].mxu1 %vm220_vm1, %v12389_v22 }
 0xb89   :  { %10429 = vmatpush3.bf16.msra.mxu0 %v10426_v32  ;;  %9721 = vmatprep.mubr.msk.f32.mxu0 %vm220_vm1, %v12413_v12 }
 0xb8a   :  { %9738 = vmatprep.mubr.msk.f32.mxu1 %vm220_vm1, %v12413_v12  ;;  %10431 = vmatprep.subr.bf16.mxu0 %v10430_v18 }
 0xb8b   :  { %10437 = vmatpush3.bf16.msra.mxu1 %v10434_v33 }
 0xb8c   :  { %9722 = vmatmul.mubr.msk.f32.gmra.mrb[92].mxu0 %vm220_vm1, %v12415_v63  ;;  %9739 = vmatmul.mubr.msk.f32.gmra.mrb[98].mxu1 %vm220_vm1, %v12415_v63 }
 0xb8d   :  { %9724 = vmatprep.mubr.msk.f32.mxu0 %vm220_vm1, %v12427_v13  ;;  %9741 = vmatprep.mubr.msk.f32.mxu1 %vm220_vm1, %v12427_v13 }
 0xb8e   :  { %10433 = vmatpush3.bf16.msra.mxu0 %v10430_v18  ;;  %10439 = vmatprep.subr.bf16.mxu1 %v10438_v5 }
 0xb8f   :  { %10441 = vmatpush3.bf16.msra.mxu1 %v10438_v5  ;;  %10443 = vmatprep.subr.bf16.mxu0 %v10442_v2 }
 0xb90   :  { %9725 = vmatmul.mubr.msk.f32.gmra.mrb[94].mxu0 %vm220_vm1, %v12429_v34  ;;  %9742 = vmatmul.mubr.msk.f32.gmra.mrb[100].mxu1 %vm220_vm1, %v12429_v34 }
 0xb91   :  { %9752 = vmatprep.mubr.msk.f32.mxu0 %vm220_vm1, %v12387_v23  ;;  %9769 = vmatprep.mubr.msk.f32.mxu1 %vm220_vm1, %v12387_v23 }
 0xb92   :  { %10451 = vmatprep.subr.bf16.mxu1 %v10450_v49 }
 0xb94   :  { %9753 = vmatmul.mubr.msk.f32.vlgmr.msra.gmra.mrb[96].mxu0 %vm220_vm1, %v12389_v22  ;;  %9770 = vmatmul.mubr.msk.f32.vlgmr.msra.gmra.mrb[102].mxu1 %vm220_vm1, %v12389_v22 }
 0xb95   :  { %10445 = vmatpush3.bf16.msra.mxu0 %v10442_v2  ;;  %9755 = vmatprep.mubr.msk.f32.mxu0 %vm220_vm1, %v12413_v12 }
 0xb96   :  { %9772 = vmatprep.mubr.msk.f32.mxu1 %vm220_vm1, %v12413_v12  ;;  %10447 = vmatprep.subr.bf16.mxu0 %v10446_v11 }
 0xb97   :  { %10453 = vmatpush3.bf16.msra.mxu1 %v10450_v49  ;;  %v12684_v49 = vld [vmem:[%s13452_s9 + $0x5] ss:$0 sm:$0xff] }
 0xb98   :  { %9756 = vmatmul.mubr.msk.f32.gmra.mrb[98].mxu0 %vm220_vm1, %v12415_v63  ;;  %9773 = vmatmul.mubr.msk.f32.gmra.mrb[104].mxu1 %vm220_vm1, %v12415_v63 }
 0xb99   :  { %9758 = vmatprep.mubr.msk.f32.mxu0 %vm220_vm1, %v12427_v13  ;;  %9775 = vmatprep.mubr.msk.f32.mxu1 %vm220_vm1, %v12427_v13 }
 0xb9a   :  { %10449 = vmatpush3.bf16.msra.mxu0 %v10446_v11  ;;  %10455 = vmatprep.subr.bf16.mxu1 %v10454_v60 }
 0xb9b   :  { %10457 = vmatpush3.bf16.msra.mxu1 %v10454_v60  ;;  %10459 = vmatprep.subr.bf16.mxu0 %v10458_v30 }
 0xb9c   :  { %9759 = vmatmul.mubr.msk.f32.gmra.mrb[100].mxu0 %vm220_vm1, %v12429_v34  ;;  %9776 = vmatmul.mubr.msk.f32.gmra.mrb[106].mxu1 %vm220_vm1, %v12429_v34 }
 0xb9d   :  { %9786 = vmatprep.mubr.msk.f32.mxu0 %vm220_vm1, %v12387_v23  ;;  %9803 = vmatprep.mubr.msk.f32.mxu1 %vm220_vm1, %v12387_v23 }
 0xb9e   :  { %10467 = vmatprep.subr.bf16.mxu1 %v10466_v57 }
 0xba0   :  { %9787 = vmatmul.mubr.msk.f32.vlgmr.msra.gmra.mrb[102].mxu0 %vm220_vm1, %v12389_v22  ;;  %9804 = vmatmul.mubr.msk.f32.vlgmr.msra.gmra.mrb[108].mxu1 %vm220_vm1, %v12389_v22 }
 0xba1   :  { %10461 = vmatpush3.bf16.msra.mxu0 %v10458_v30  ;;  %9789 = vmatprep.mubr.msk.f32.mxu0 %vm220_vm1, %v12413_v12 }
 0xba2   :  { %9806 = vmatprep.mubr.msk.f32.mxu1 %vm220_vm1, %v12413_v12  ;;  %10463 = vmatprep.subr.bf16.mxu0 %v10462_v58 }
 0xba3   :  { %10469 = vmatpush3.bf16.msra.mxu1 %v10466_v57 }
 0xba4   :  { %9790 = vmatmul.mubr.msk.f32.gmra.mrb[104].mxu0 %vm220_vm1, %v12415_v63  ;;  %9807 = vmatmul.mubr.msk.f32.gmra.mrb[110].mxu1 %vm220_vm1, %v12415_v63 }
 0xba5   :  { %9792 = vmatprep.mubr.msk.f32.mxu0 %vm220_vm1, %v12427_v13  ;;  %9809 = vmatprep.mubr.msk.f32.mxu1 %vm220_vm1, %v12427_v13 }
 0xba6   :  { %10465 = vmatpush3.bf16.msra.mxu0 %v10462_v58  ;;  %10471 = vmatprep.subr.bf16.mxu1 %v10470_v59 }
 0xba7   :  { %10473 = vmatpush3.bf16.msra.mxu1 %v10470_v59 }
 0xba8   :  { %9793 = vmatmul.mubr.msk.f32.gmra.mrb[106].mxu0 %vm220_vm1, %v12429_v34  ;;  %9810 = vmatmul.mubr.msk.f32.gmra.mrb[112].mxu1 %vm220_vm1, %v12429_v34 }
 0xba9   :  { %9820 = vmatprep.mubr.msk.f32.mxu0 %vm220_vm1, %v12387_v23  ;;  %9837 = vmatprep.mubr.msk.f32.mxu1 %vm220_vm1, %v12387_v23 }
 0xbac   :  { %9821 = vmatmul.mubr.msk.f32.vlgmr.msra.gmra.mrb[108].mxu0 %vm220_vm1, %v12389_v22  ;;  %9838 = vmatmul.mubr.msk.f32.vlgmr.msra.gmra.mrb[114].mxu1 %vm220_vm1, %v12389_v22 }
 0xbad   :  { %9823 = vmatprep.mubr.msk.f32.mxu0 %vm220_vm1, %v12413_v12  ;;  %9840 = vmatprep.mubr.msk.f32.mxu1 %vm220_vm1, %v12413_v12  ;;  %v12653_v12 = vld [vmem:[%s13452_s9 + $0x4] ss:$0 sm:$0xff] }
 0xbb0   :  { %9824 = vmatmul.mubr.msk.f32.gmra.mrb[110].mxu0 %vm220_vm1, %v12415_v63  ;;  %9841 = vmatmul.mubr.msk.f32.gmra.mrb[116].mxu1 %vm220_vm1, %v12415_v63 }
 0xbb1   :  { %9826 = vmatprep.mubr.msk.f32.mxu0 %vm220_vm1, %v12427_v13  ;;  %9843 = vmatprep.mubr.msk.f32.mxu1 %vm220_vm1, %v12427_v13 }
 0xbb4   :  { %9827 = vmatmul.mubr.msk.f32.gmra.mrb[112].mxu0 %vm220_vm1, %v12429_v34  ;;  %9844 = vmatmul.mubr.msk.f32.gmra.mrb[118].mxu1 %vm220_vm1, %v12429_v34 }
 0xc3b   :  { %v9652_v23 = vpop.f32.mrb[78].mxu0  ;;  %v9669_v22 = vpop.f32.mrb[84].mxu1 }
 0xc3c   :  { %4339 = vst.msk [vmem:[#allocation2 + $0x8] sm:$0xff] %vm485_vm2, %v9652_v23  ;;  %4440 = vst.msk [vmem:[#allocation3 + $0x8] sm:$0xff] %vm485_vm2, %v9669_v22  ;;  %v4309_v48 = vpop.f32.mrb[79].mxu0  ;;  %v4410_v40 = vpop.f32.mrb[85].mxu1 }
 0xc3d   :  { %4338 = vst.msk [vmem:[#allocation2] sm:$0xff] %vm485_vm2, %v4309_v48  ;;  %4439 = vst.msk [vmem:[#allocation3] sm:$0xff] %vm485_vm2, %v4410_v40  ;;  %v8452_v40 = vld [vmem:[%s13453_s10 + $0x5] ss:$0 sm:$0xff] }
 0xc43   :  { %v9655_v63 = vpop.f32.mrb[80].mxu0  ;;  %v9672_v29 = vpop.f32.mrb[86].mxu1  ;;  %v5533_v7 = vld [vmem:[#allocation3 + $0x8] sm:$0xff] }
 0xc44   :  { %4341 = vst.msk [vmem:[#allocation2 + $0x18] sm:$0xff] %vm485_vm2, %v9655_v63  ;;  %4442 = vst.msk [vmem:[#allocation3 + $0x18] sm:$0xff] %vm485_vm2, %v9672_v29  ;;  %v4319_v45 = vpop.f32.mrb[81].mxu0  ;;  %v4420_v20 = vpop.f32.mrb[87].mxu1  ;;  %v5455_v53 = vld [vmem:[#allocation2] sm:$0xff]  ;;  %v5586_v13 = vadd.f32 %v8451_v31, %v5533_v7  ;;  %v5456_v57 = vld [vmem:[#allocation2 + $0x8] sm:$0xff] }
 0xc45   :  { %v5532_v47 = vld [vmem:[#allocation3] sm:$0xff]  ;;  %4340 = vst.msk [vmem:[#allocation2 + $0x10] sm:$0xff] %vm485_vm2, %v4319_v45  ;;  %4441 = vst.msk [vmem:[#allocation3 + $0x10] sm:$0xff] %vm485_vm2, %v4420_v20  ;;  %v5508_v34 = vadd.f32 %v12653_v12, %v5455_v53  ;;  %v5509_v3 = vadd.f32 %v12653_v12, %v5456_v57 }
 0xc46   :  { %v5585_v24 = vadd.f32 %v8451_v31, %v5532_v47 }
 0xc47   :  { %9858 = vmatprep.mubr.msk.f32.mxu0 %vm485_vm2, %v5508_v34 }
 0xc48   :  { %v10474_v35 = vpack.c.bf16 %v5586_v13, %v5585_v24 }
 0xc4a   :  { %10476 = vmatprep.subr.msk.bf16.mxu0 %vm11546_vm3, %v10474_v35 }
 0xc4b   :  { %10479 = vmatpush3.bf16.xpose.msk.msra.mxu0 %vm11546_vm3, %v10474_v35  ;;  %v9658_v51 = vpop.f32.mrb[82].mxu0  ;;  %v9675_v15 = vpop.f32.mrb[88].mxu1  ;;  %v5535_v21 = vld [vmem:[#allocation3 + $0x18] sm:$0xff] }
 0xc4c   :  { %4343 = vst.msk [vmem:[#allocation2 + $0x28] sm:$0xff] %vm485_vm2, %v9658_v51  ;;  %4444 = vst.msk [vmem:[#allocation3 + $0x28] sm:$0xff] %vm485_vm2, %v9675_v15  ;;  %v4329_v27 = vpop.f32.mrb[83].mxu0  ;;  %v4430_v28 = vpop.f32.mrb[89].mxu1  ;;  %v5534_v36 = vld [vmem:[#allocation3 + $0x10] sm:$0xff]  ;;  %v5588_v32 = vadd.f32 %v8451_v31, %v5535_v21  ;;  %v5458_v22 = vld [vmem:[#allocation2 + $0x18] sm:$0xff] }
 0xc4d   :  { %4342 = vst.msk [vmem:[#allocation2 + $0x20] sm:$0xff] %vm485_vm2, %v4329_v27  ;;  %4443 = vst.msk [vmem:[#allocation3 + $0x20] sm:$0xff] %vm485_vm2, %v4430_v28  ;;  %v5587_v38 = vadd.f32 %v8451_v31, %v5534_v36  ;;  %v5457_v25 = vld [vmem:[#allocation2 + $0x10] sm:$0xff]  ;;  %v5511_v29 = vadd.f32 %v12653_v12, %v5458_v22 }
 0xc4e   :  { %v5510_v23 = vadd.f32 %v12653_v12, %v5457_v25 }
 0xc4f   :  { %v9686_v37 = vpop.f32.mrb[84].mxu0  ;;  %v9703_v33 = vpop.f32.mrb[90].mxu1  ;;  %v10480_v6 = vpack.c.bf16 %v5588_v32, %v5587_v38 }
 0xc50   :  { %4541 = vst.msk [vmem:[#allocation4 + $0x8] sm:$0xff] %vm485_vm2, %v9686_v37  ;;  %4642 = vst.msk [vmem:[#allocation2 + $0x38] sm:$0xff] %vm485_vm2, %v9703_v33  ;;  %v4511_v61 = vpop.f32.mrb[85].mxu0  ;;  %v4612_v18 = vpop.f32.mrb[91].mxu1 }
 0xc51   :  { %4540 = vst.msk [vmem:[#allocation4] sm:$0xff] %vm485_vm2, %v4511_v61  ;;  %4641 = vst.msk [vmem:[#allocation2 + $0x30] sm:$0xff] %vm485_vm2, %v4612_v18  ;;  %10482 = vmatprep.subr.msk.bf16.mxu0 %vm11546_vm3, %v10480_v6 }
 0xc53   :  { %10485 = vmatpush3.bf16.xpose.msk.msra.mxu0 %vm11546_vm3, %v10480_v6  ;;  %v9689_v8 = vpop.f32.mrb[86].mxu0  ;;  %v9706_v10 = vpop.f32.mrb[92].mxu1  ;;  %v5537_v4 = vld [vmem:[#allocation3 + $0x28] sm:$0xff] }
 0xc54   :  { %4543 = vst.msk [vmem:[#allocation4 + $0x18] sm:$0xff] %vm485_vm2, %v9689_v8  ;;  %4644 = vst.msk [vmem:[#allocation2 + $0x48] sm:$0xff] %vm485_vm2, %v9706_v10  ;;  %v4521_v16 = vpop.f32.mrb[87].mxu0  ;;  %v4622_v5 = vpop.f32.mrb[93].mxu1  ;;  %v5536_v2 = vld [vmem:[#allocation3 + $0x20] sm:$0xff]  ;;  %v5590_v50 = vadd.f32 %v8451_v31, %v5537_v4  ;;  %v5460_v47 = vld [vmem:[#allocation2 + $0x28] sm:$0xff] }
 0xc55   :  { %4542 = vst.msk [vmem:[#allocation4 + $0x10] sm:$0xff] %vm485_vm2, %v4521_v16  ;;  %4643 = vst.msk [vmem:[#allocation2 + $0x40] sm:$0xff] %vm485_vm2, %v4622_v5  ;;  %v5589_v52 = vadd.f32 %v8451_v31, %v5536_v2  ;;  %v5459_v48 = vld [vmem:[#allocation2 + $0x20] sm:$0xff]  ;;  %v5513_v15 = vadd.f32 %v12653_v12, %v5460_v47 }
 0xc56   :  { %v5512_v53 = vadd.f32 %v12653_v12, %v5459_v48  ;;  %v8453_v5 = vld [vmem:[%s13453_s10 + $0x6] ss:$0 sm:$0xff] }
 0xc57   :  { %v9692_v9 = vpop.f32.mrb[88].mxu0  ;;  %v9709_v44 = vpop.f32.mrb[94].mxu1  ;;  %v10486_v11 = vpack.c.bf16 %v5590_v50, %v5589_v52  ;;  %v12741_v2 = vld [vmem:[%s13452_s9 + $0x6] ss:$0 sm:$0xff] }
 0xc58   :  { %4545 = vst.msk [vmem:[#allocation4 + $0x28] sm:$0xff] %vm485_vm2, %v9692_v9  ;;  %4646 = vst.msk [vmem:[#allocation2 + $0x58] sm:$0xff] %vm485_vm2, %v9709_v44  ;;  %v4531_v1 = vpop.f32.mrb[89].mxu0  ;;  %v4632_v46 = vpop.f32.mrb[95].mxu1  ;;  %v5461_v43 = vld [vmem:[#allocation2 + $0x30] sm:$0xff] }
 0xc59   :  { %4544 = vst.msk [vmem:[#allocation4 + $0x20] sm:$0xff] %vm485_vm2, %v4531_v1  ;;  %4645 = vst.msk [vmem:[#allocation2 + $0x50] sm:$0xff] %vm485_vm2, %v4632_v46  ;;  %10488 = vmatprep.subr.msk.bf16.mxu0 %vm11546_vm3, %v10486_v11  ;;  %v5514_v55 = vadd.f32 %v12684_v49, %v5461_v43 }
 0xc5b   :  { %10491 = vmatpush3.bf16.xpose.msk.msra.mxu0 %vm11546_vm3, %v10486_v11  ;;  %v9720_v60 = vpop.f32.mrb[90].mxu0  ;;  %v9737_v30 = vpop.f32.mrb[96].mxu1  ;;  %9879 = vmatprep.mubr.msk.f32.mxu1 %vm485_vm2, %v5514_v55 }
 0xc5c   :  { %4743 = vst.msk [vmem:[#allocation3 + $0x38] sm:$0xff] %vm485_vm2, %v9720_v60  ;;  %4844 = vst.msk [vmem:[#allocation4 + $0x38] sm:$0xff] %vm485_vm2, %v9737_v30  ;;  %v4713_v56 = vpop.f32.mrb[91].mxu0  ;;  %v4814_v17 = vpop.f32.mrb[97].mxu1 }
 0xc5d   :  { %4742 = vst.msk [vmem:[#allocation3 + $0x30] sm:$0xff] %vm485_vm2, %v4713_v56  ;;  %4843 = vst.msk [vmem:[#allocation4 + $0x30] sm:$0xff] %vm485_vm2, %v4814_v17 }
 0xc5f   :  { %v9723_v42 = vpop.f32.mrb[92].mxu0  ;;  %v9740_v58 = vpop.f32.mrb[98].mxu1 }
 0xc60   :  { %4745 = vst.msk [vmem:[#allocation3 + $0x48] sm:$0xff] %vm485_vm2, %v9723_v42  ;;  %4846 = vst.msk [vmem:[#allocation4 + $0x48] sm:$0xff] %vm485_vm2, %v9740_v58  ;;  %v4723_v19 = vpop.f32.mrb[93].mxu0  ;;  %v4824_v59 = vpop.f32.mrb[99].mxu1 }
 0xc61   :  { %4744 = vst.msk [vmem:[#allocation3 + $0x40] sm:$0xff] %vm485_vm2, %v4723_v19  ;;  %4845 = vst.msk [vmem:[#allocation4 + $0x40] sm:$0xff] %vm485_vm2, %v4824_v59 }
 0xc62   :  { %9859 = vmatmul.mubr.msk.f32.vlgmr.msra.gmra.mrb[114].mxu0 %vm485_vm2, %v5509_v3 }
 0xc63   :  { %9861 = vmatprep.mubr.msk.f32.mxu0 %vm485_vm2, %v5510_v23  ;;  %v9726_v31 = vpop.f32.mrb[94].mxu0  ;;  %v9743_v63 = vpop.f32.mrb[100].mxu1  ;;  %v5539_v7 = vld [vmem:[#allocation3 + $0x38] sm:$0xff] }
 0xc64   :  { %4747 = vst.msk [vmem:[#allocation3 + $0x58] sm:$0xff] %vm485_vm2, %v9726_v31  ;;  %4848 = vst.msk [vmem:[#allocation4 + $0x58] sm:$0xff] %vm485_vm2, %v9743_v63  ;;  %v4733_v45 = vpop.f32.mrb[95].mxu0  ;;  %v4834_v20 = vpop.f32.mrb[101].mxu1  ;;  %v5538_v13 = vld [vmem:[#allocation3 + $0x30] sm:$0xff]  ;;  %v5592_v34 = vadd.f32 %v8452_v40, %v5539_v7 }
 0xc65   :  { %4746 = vst.msk [vmem:[#allocation3 + $0x50] sm:$0xff] %vm485_vm2, %v4733_v45  ;;  %4847 = vst.msk [vmem:[#allocation4 + $0x50] sm:$0xff] %vm485_vm2, %v4834_v20  ;;  %v5591_v24 = vadd.f32 %v8452_v40, %v5538_v13 }
 0xc66   :  { %9862 = vmatmul.mubr.msk.f32.gmra.mrb[116].mxu0 %vm485_vm2, %v5511_v29 }
 0xc67   :  { %9864 = vmatprep.mubr.msk.f32.mxu0 %vm485_vm2, %v5512_v53  ;;  %v9754_v35 = vpop.f32.mrb[96].mxu0  ;;  %v9771_v51 = vpop.f32.mrb[102].mxu1  ;;  %v10492_v21 = vpack.c.bf16 %v5592_v34, %v5591_v24  ;;  %v5541_v27 = vld [vmem:[#allocation3 + $0x48] sm:$0xff]  ;;  %v5462_v34 = vld [vmem:[#allocation2 + $0x38] sm:$0xff] }
 0xc68   :  { %4945 = vst.msk [vmem:[#allocation2 + $0x68] sm:$0xff] %vm485_vm2, %v9754_v35  ;;  %5046 = vst.msk [vmem:[#allocation3 + $0x68] sm:$0xff] %vm485_vm2, %v9771_v51  ;;  %v4915_v28 = vpop.f32.mrb[97].mxu0  ;;  %v5016_v36 = vpop.f32.mrb[103].mxu1  ;;  %v5540_v32 = vld [vmem:[#allocation3 + $0x40] sm:$0xff]  ;;  %v5594_v38 = vadd.f32 %v8452_v40, %v5541_v27 }
 0xc69   :  { %4944 = vst.msk [vmem:[#allocation2 + $0x60] sm:$0xff] %vm485_vm2, %v4915_v28  ;;  %5045 = vst.msk [vmem:[#allocation3 + $0x60] sm:$0xff] %vm485_vm2, %v5016_v36  ;;  %10494 = vmatprep.subr.msk.bf16.mxu1 %vm11546_vm3, %v10492_v21  ;;  %v5593_v12 = vadd.f32 %v8452_v40, %v5540_v32  ;;  %v5463_v35 = vld [vmem:[#allocation2 + $0x40] sm:$0xff]  ;;  %v5515_v36 = vadd.f32 %v12684_v49, %v5462_v34 }
 0xc6a   :  { %9865 = vmatmul.mubr.msk.f32.gmra.mrb[118].mxu0 %vm485_vm2, %v5513_v15  ;;  %10497 = vmatpush3.bf16.xpose.msk.msra.mxu1 %vm11546_vm3, %v10492_v21  ;;  %v5609_v51 = vld [vmem:[#allocation4] sm:$0xff]  ;;  %v5610_v15 = vld [vmem:[#allocation4 + $0x8] sm:$0xff] }
 0xc6b   :  { %v9757_v37 = vpop.f32.mrb[98].mxu0  ;;  %v9774_v33 = vpop.f32.mrb[104].mxu1  ;;  %v10498_v6 = vpack.c.bf16 %v5594_v38, %v5593_v12  ;;  %v5543_v61 = vld [vmem:[#allocation3 + $0x58] sm:$0xff]  ;;  %v12778_v21 = vld [vmem:[%s13454_s11 + $0x4] ss:$0 sm:$0xff]  ;;  %v5516_v12 = vadd.f32 %v12684_v49, %v5463_v35 }
 0xc6c   :  { %4947 = vst.msk [vmem:[#allocation2 + $0x78] sm:$0xff] %vm485_vm2, %v9757_v37  ;;  %5048 = vst.msk [vmem:[#allocation3 + $0x78] sm:$0xff] %vm485_vm2, %v9774_v33  ;;  %v4925_v18 = vpop.f32.mrb[99].mxu0  ;;  %v5026_v8 = vpop.f32.mrb[105].mxu1  ;;  %v5542_v10 = vld [vmem:[#allocation3 + $0x50] sm:$0xff]  ;;  %v5596_v16 = vadd.f32 %v8452_v40, %v5543_v61  ;;  %v5464_v37 = vld [vmem:[#allocation2 + $0x48] sm:$0xff]  ;;  %v5663_v61 = vadd.f32 %v12778_v21, %v5610_v15 }
 0xc6d   :  { %4946 = vst.msk [vmem:[#allocation2 + $0x70] sm:$0xff] %vm485_vm2, %v4925_v18  ;;  %5047 = vst.msk [vmem:[#allocation3 + $0x70] sm:$0xff] %vm485_vm2, %v5026_v8  ;;  %10500 = vmatprep.subr.msk.bf16.mxu1 %vm11546_vm3, %v10498_v6  ;;  %v5595_v4 = vadd.f32 %v8452_v40, %v5542_v10  ;;  %v5465_v33 = vld [vmem:[#allocation2 + $0x50] sm:$0xff]  ;;  %v5517_v10 = vadd.f32 %v12684_v49, %v5464_v37 }
 0xc6f   :  { %v9760_v50 = vpop.f32.mrb[100].mxu0  ;;  %v9777_v52 = vpop.f32.mrb[106].mxu1  ;;  %v5545_v9 = vld [vmem:[#allocation3 + $0x68] sm:$0xff]  ;;  %v10504_v55 = vpack.c.bf16 %v5596_v16, %v5595_v4 }
 0xc70   :  { %4949 = vst.msk [vmem:[#allocation2 + $0x88] sm:$0xff] %vm485_vm2, %v9760_v50  ;;  %5050 = vst.msk [vmem:[#allocation3 + $0x88] sm:$0xff] %vm485_vm2, %v9777_v52  ;;  %v4935_v44 = vpop.f32.mrb[101].mxu0  ;;  %v5036_v11 = vpop.f32.mrb[107].mxu1  ;;  %v5467_v1 = vld [vmem:[#allocation2 + $0x60] sm:$0xff]  ;;  %v5598_v43 = vadd.f32 %v8453_v5, %v5545_v9  ;;  %v5466_v50 = vld [vmem:[#allocation2 + $0x58] sm:$0xff] }
 0xc71   :  { %v5544_v46 = vld [vmem:[#allocation3 + $0x60] sm:$0xff]  ;;  %4948 = vst.msk [vmem:[#allocation2 + $0x80] sm:$0xff] %vm485_vm2, %v4935_v44  ;;  %5049 = vst.msk [vmem:[#allocation3 + $0x80] sm:$0xff] %vm485_vm2, %v5036_v11  ;;  %v5520_v60 = vadd.f32 %v12741_v2, %v5467_v1 }
 0xc72   :  { %v5597_v30 = vadd.f32 %v8453_v5, %v5544_v46  ;;  %10503 = vmatpush3.bf16.xpose.msk.msra.mxu1 %vm11546_vm3, %v10498_v6  ;;  %v5662_v6 = vadd.f32 %v12778_v21, %v5609_v51  ;;  %v12802_v44 = vld [vmem:[%s13452_s9 + $0x7] ss:$0 sm:$0xff] }
 0xc73   :  { %v9788_v56 = vpop.f32.mrb[102].mxu0  ;;  %v9805_v17 = vpop.f32.mrb[108].mxu1  ;;  %10506 = vmatprep.subr.msk.bf16.mxu1 %vm11546_vm3, %v10504_v55  ;;  %9900 = vmatprep.mubr.msk.f32.mxu0 %vm485_vm2, %v5520_v60  ;;  %v5547_v25 = vld [vmem:[#allocation3 + $0x78] sm:$0xff]  ;;  %v8454_v11 = vld [vmem:[%s13453_s10 + $0x7] ss:$0 sm:$0xff]  ;;  %v5611_v60 = vld [vmem:[#allocation4 + $0x10] sm:$0xff] }
 0xc74   :  { %v10510_v57 = vpack.c.bf16 %v5598_v43, %v5597_v30  ;;  %5147 = vst.msk [vmem:[#allocation4 + $0x68] sm:$0xff] %vm485_vm2, %v9788_v56  ;;  %5248 = vst.msk [vmem:[#allocation2 + $0x98] sm:$0xff] %vm485_vm2, %v9805_v17  ;;  %v5117_v42 = vpop.f32.mrb[103].mxu0  ;;  %v5218_v58 = vpop.f32.mrb[109].mxu1  ;;  %v5546_v3 = vld [vmem:[#allocation3 + $0x70] sm:$0xff]  ;;  %v5600_v19 = vadd.f32 %v8453_v5, %v5547_v25  ;;  %v10546_v52 = vpack.c.bf16 %v5663_v61, %v5662_v6  ;;  %v5612_v30 = vld [vmem:[#allocation4 + $0x18] sm:$0xff] }
 0xc75   :  { %5146 = vst.msk [vmem:[#allocation4 + $0x60] sm:$0xff] %vm485_vm2, %v5117_v42  ;;  %5247 = vst.msk [vmem:[#allocation2 + $0x90] sm:$0xff] %vm485_vm2, %v5218_v58  ;;  %v5599_v59 = vadd.f32 %v8453_v5, %v5546_v3  ;;  %v5519_v43 = vadd.f32 %v12684_v49, %v5466_v50  ;;  %v5468_v25 = vld [vmem:[#allocation2 + $0x68] sm:$0xff]  ;;  %v5469_v3 = vld [vmem:[#allocation2 + $0x70] sm:$0xff] }
 0xc76   :  { %10512 = vmatprep.subr.msk.bf16.mxu0 %vm11546_vm3, %v10510_v57 }
 0xc77   :  { %10515 = vmatpush3.bf16.xpose.msk.msra.mxu0 %vm11546_vm3, %v10510_v57  ;;  %v9791_v23 = vpop.f32.mrb[104].mxu0  ;;  %v9808_v22 = vpop.f32.mrb[110].mxu1  ;;  %v10516_v48 = vpack.c.bf16 %v5600_v19, %v5599_v59  ;;  %v5549_v40 = vld [vmem:[#allocation3 + $0x88] sm:$0xff]  ;;  %v5664_v19 = vadd.f32 %v12778_v21, %v5611_v60  ;;  %v5665_v59 = vadd.f32 %v12778_v21, %v5612_v30  ;;  %v5620_v60 = vld [vmem:[#allocation4 + $0x58] sm:$0xff] }
 0xc78   :  { %5149 = vst.msk [vmem:[#allocation4 + $0x78] sm:$0xff] %vm485_vm2, %v9791_v23  ;;  %5250 = vst.msk [vmem:[#allocation2 + $0xa8] sm:$0xff] %vm485_vm2, %v9808_v22  ;;  %v5127_v31 = vpop.f32.mrb[105].mxu0  ;;  %v5228_v63 = vpop.f32.mrb[111].mxu1  ;;  %v5548_v29 = vld [vmem:[#allocation3 + $0x80] sm:$0xff]  ;;  %v5602_v45 = vadd.f32 %v8453_v5, %v5549_v40  ;;  %v5521_v23 = vadd.f32 %v12741_v2, %v5468_v25 }
 0xc79   :  { %5148 = vst.msk [vmem:[#allocation4 + $0x70] sm:$0xff] %vm485_vm2, %v5127_v31  ;;  %5249 = vst.msk [vmem:[#allocation2 + $0xa0] sm:$0xff] %vm485_vm2, %v5228_v63  ;;  %10518 = vmatprep.subr.msk.bf16.mxu0 %vm11546_vm3, %v10516_v48  ;;  %v5601_v7 = vadd.f32 %v8453_v5, %v5548_v29  ;;  %v5518_v5 = vadd.f32 %v12684_v49, %v5465_v33  ;;  %v5613_v40 = vld [vmem:[#allocation4 + $0x20] sm:$0xff]  ;;  %v5614_v31 = vld [vmem:[#allocation4 + $0x28] sm:$0xff]  ;;  %v5522_v63 = vadd.f32 %v12741_v2, %v5469_v3 }
 0xc7a   :  { %10509 = vmatpush3.bf16.xpose.msk.msra.mxu1 %vm11546_vm3, %v10504_v55  ;;  %v5470_v29 = vld [vmem:[#allocation2 + $0x78] sm:$0xff]  ;;  %v5667_v34 = vadd.f32 %v12778_v21, %v5614_v31  ;;  %v12864_v3 = vld [vmem:[%s13454_s11 + $0x7] ss:$0 sm:$0xff] }
 0xc7b   :  { %v9794_v20 = vpop.f32.mrb[106].mxu0  ;;  %v9811_v53 = vpop.f32.mrb[112].mxu1  ;;  %v10522_v24 = vpack.c.bf16 %v5602_v45, %v5601_v7  ;;  %v5523_v35 = vadd.f32 %v12741_v2, %v5470_v29 }
 0xc7c   :  { %5151 = vst.msk [vmem:[#allocation4 + $0x88] sm:$0xff] %vm485_vm2, %v9794_v20  ;;  %5252 = vst.msk [vmem:[#allocation2 + $0xb8] sm:$0xff] %vm485_vm2, %v9811_v53  ;;  %v5137_v47 = vpop.f32.mrb[107].mxu0  ;;  %v5238_v13 = vpop.f32.mrb[113].mxu1  ;;  %v5473_v9 = vld [vmem:[#allocation2 + $0x90] sm:$0xff]  ;;  %v5471_v53 = vld [vmem:[#allocation2 + $0x80] sm:$0xff] }
 0xc7d   :  { %5150 = vst.msk [vmem:[#allocation4 + $0x80] sm:$0xff] %vm485_vm2, %v5137_v47  ;;  %5251 = vst.msk [vmem:[#allocation2 + $0xb0] sm:$0xff] %vm485_vm2, %v5238_v13  ;;  %v5526_v57 = vadd.f32 %v12802_v44, %v5473_v9  ;;  %v10550_v47 = vpack.c.bf16 %v5665_v59, %v5664_v19  ;;  %v5666_v13 = vadd.f32 %v12778_v21, %v5613_v40  ;;  %v5618_v9 = vld [vmem:[#allocation4 + $0x48] sm:$0xff] }
 0xc7f   :  { %10521 = vmatpush3.bf16.xpose.msk.msra.mxu0 %vm11546_vm3, %v10516_v48  ;;  %v9822_v27 = vpop.f32.mrb[108].mxu0  ;;  %v9839_v28 = vpop.f32.mrb[114].mxu1  ;;  %v10554_v37 = vpack.c.bf16 %v5667_v34, %v5666_v13  ;;  %v12888_v13 = vld [vmem:[%s13496_s28] sm:$0xff] }
 0xc80   :  { %10524 = vmatprep.subr.msk.bf16.mxu0 %vm11546_vm3, %v10522_v24  ;;  %5349 = vst.msk [vmem:[#allocation3 + $0x98] sm:$0xff] %vm485_vm2, %v9822_v27  ;;  %5450 = vst.msk [vmem:[#allocation4 + $0x98] sm:$0xff] %vm485_vm2, %v9839_v28  ;;  %v5319_v32 = vpop.f32.mrb[109].mxu0  ;;  %v5420_v38 = vpop.f32.mrb[115].mxu1  ;;  %v5621_v27 = vld [vmem:[#allocation4 + $0x60] sm:$0xff]  ;;  %v5622_v28 = vld [vmem:[#allocation4 + $0x68] sm:$0xff] }
 0xc81   :  { %5348 = vst.msk [vmem:[#allocation3 + $0x90] sm:$0xff] %vm485_vm2, %v5319_v32  ;;  %5449 = vst.msk [vmem:[#allocation4 + $0x90] sm:$0xff] %vm485_vm2, %v5420_v38  ;;  %9880 = vmatmul.mubr.msk.f32.vlgmr.msra.gmra.mrb[120].mxu1 %vm485_vm2, %v5515_v36  ;;  %v5524_v36 = vadd.f32 %v12741_v2, %v5471_v53  ;;  %v5472_v32 = vld [vmem:[#allocation2 + $0x88] sm:$0xff] }
 0xc82   :  { %9882 = vmatprep.mubr.msk.f32.mxu1 %vm485_vm2, %v5516_v12  ;;  %v5525_v61 = vadd.f32 %v12741_v2, %v5472_v32  ;;  %v12880_v53 = vld [vmem:[%s13496_s28 + $0x8] sm:$0xff] }
 0xc83   :  { %v9825_v18 = vpop.f32.mrb[110].mxu0  ;;  %v9842_v8 = vpop.f32.mrb[116].mxu1 }
 0xc84   :  { %5351 = vst.msk [vmem:[#allocation3 + $0xa8] sm:$0xff] %vm485_vm2, %v9825_v18  ;;  %5452 = vst.msk [vmem:[#allocation4 + $0xa8] sm:$0xff] %vm485_vm2, %v9842_v8  ;;  %v5329_v4 = vpop.f32.mrb[111].mxu0  ;;  %v5430_v16 = vpop.f32.mrb[117].mxu1  ;;  %v5477_v25 = vld [vmem:[#allocation2 + $0xb0] sm:$0xff] }
 0xc85   :  { %5350 = vst.msk [vmem:[#allocation3 + $0xa0] sm:$0xff] %vm485_vm2, %v5329_v4  ;;  %5451 = vst.msk [vmem:[#allocation4 + $0xa0] sm:$0xff] %vm485_vm2, %v5430_v16  ;;  %9883 = vmatmul.mubr.msk.f32.gmra.mrb[122].mxu1 %vm485_vm2, %v5517_v10  ;;  %v5615_v10 = vld [vmem:[#allocation4 + $0x30] sm:$0xff]  ;;  %v5616_v4 = vld [vmem:[#allocation4 + $0x38] sm:$0xff]  ;;  %v5530_v59 = vadd.f32 %v12802_v44, %v5477_v25 }
 0xc86   :  { %9885 = vmatprep.mubr.msk.f32.mxu1 %vm485_vm2, %v5518_v5  ;;  %v8460_v16 = vld [vmem:[%s13454_s11 + $0x5] ss:$0 sm:$0xff] }
 0xc87   :  { %10527 = vmatpush3.bf16.xpose.msk.msra.mxu0 %vm11546_vm3, %v10522_v24  ;;  %v9828_v1 = vpop.f32.mrb[112].mxu0  ;;  %v9845_v46 = vpop.f32.mrb[118].mxu1  ;;  %v5551_v55 = vld [vmem:[#allocation3 + $0x98] sm:$0xff]  ;;  %v12833_v24 = vld [vmem:[%s13454_s11 + $0x6] ss:$0 sm:$0xff]  ;;  %v5668_v2 = vadd.f32 %v8460_v16, %v5615_v10  ;;  %v5669_v5 = vadd.f32 %v8460_v16, %v5616_v4  ;;  %v12920_v10 = vld [vmem:[%s13496_s28 + $0x28] sm:$0xff] }
 0xc88   :  { %10547 = vmatprep.subr.bf16.mxu0 %v10546_v52  ;;  %5353 = vst.msk [vmem:[#allocation3 + $0xb8] sm:$0xff] %vm485_vm2, %v9828_v1  ;;  %5454 = vst.msk [vmem:[#allocation4 + $0xb8] sm:$0xff] %vm485_vm2, %v9845_v46  ;;  %v5339_v56 = vpop.f32.mrb[113].mxu0  ;;  %v5440_v17 = vpop.f32.mrb[119].mxu1  ;;  %v5550_v42 = vld [vmem:[#allocation3 + $0x90] sm:$0xff]  ;;  %v5604_v58 = vadd.f32 %v8454_v11, %v5551_v55  ;;  %v5674_v33 = vadd.f32 %v12833_v24, %v5621_v27  ;;  %v5675_v6 = vadd.f32 %v12833_v24, %v5622_v28  ;;  %v5475_v1 = vld [vmem:[#allocation2 + $0xa0] sm:$0xff] }
 0xc89   :  { %5352 = vst.msk [vmem:[#allocation3 + $0xb0] sm:$0xff] %vm485_vm2, %v5339_v56  ;;  %5453 = vst.msk [vmem:[#allocation4 + $0xb0] sm:$0xff] %vm485_vm2, %v5440_v17  ;;  %9886 = vmatmul.mubr.msk.f32.gmra.mrb[124].mxu1 %vm485_vm2, %v5519_v43  ;;  %v5603_v49 = vadd.f32 %v8454_v11, %v5550_v42  ;;  %v10558_v50 = vpack.c.bf16 %v5669_v5, %v5668_v2  ;;  %v5671_v43 = vadd.f32 %v8460_v16, %v5618_v9  ;;  %v5619_v55 = vld [vmem:[#allocation4 + $0x50] sm:$0xff]  ;;  %v5476_v17 = vld [vmem:[#allocation2 + $0xa8] sm:$0xff] }
 0xc8a   :  { %9921 = vmatprep.mubr.msk.f32.mxu1 %vm485_vm2, %v5526_v57  ;;  %v12847_v8 = vpack.c.bf16 %v5675_v6, %v5674_v33  ;;  %v5528_v56 = vadd.f32 %v12802_v44, %v5475_v1  ;;  %v5672_v54 = vadd.f32 %v8460_v16, %v5619_v55  ;;  %v5673_v42 = vadd.f32 %v8460_v16, %v5620_v60 }
 0xc8b   :  { %v10528_v22 = vpack.c.bf16 %v5604_v58, %v5603_v49  ;;  %v5553_v48 = vld [vmem:[#allocation3 + $0xa8] sm:$0xff]  ;;  %v5627_v58 = vld [vmem:[#allocation4 + $0x90] sm:$0xff]  ;;  %v5628_v49 = vld [vmem:[#allocation4 + $0x98] sm:$0xff]  ;;  %v5529_v19 = vadd.f32 %v12802_v44, %v5476_v17 }
 0xc8c   :  { %v5552_v7 = vld [vmem:[#allocation3 + $0xa0] sm:$0xff]  ;;  %v5606_v45 = vadd.f32 %v8454_v11, %v5553_v48  ;;  %v5680_v48 = vadd.f32 %v12864_v3, %v5627_v58  ;;  %v5681_v40 = vadd.f32 %v12864_v3, %v5628_v49 }
 0xc8d   :  { %10530 = vmatprep.subr.msk.bf16.mxu1 %vm11546_vm3, %v10528_v22  ;;  %v5605_v20 = vadd.f32 %v8454_v11, %v5552_v7 }
 0xc8e   :  { %9901 = vmatmul.mubr.msk.f32.vlgmr.msra.gmra.mrb[120].mxu0 %vm485_vm2, %v5521_v23  ;;  %10533 = vmatpush3.bf16.xpose.msk.msra.mxu1 %vm11546_vm3, %v10528_v22  ;;  %v5478_v23 = vld [vmem:[#allocation2 + $0xb8] sm:$0xff]  ;;  %v10566_v22 = vpack.c.bf16 %v5673_v42, %v5672_v54 }
 0xc8f   :  { %9903 = vmatprep.mubr.msk.f32.mxu0 %vm485_vm2, %v5522_v63  ;;  %10549 = vmatpush3.bf16.msra.mxu0 %v10546_v52  ;;  %v10534_v51 = vpack.c.bf16 %v5606_v45, %v5605_v20  ;;  %v5555_v15 = vld [vmem:[#allocation3 + $0xb8] sm:$0xff]  ;;  %v5617_v52 = vld [vmem:[#allocation4 + $0x40] sm:$0xff]  ;;  %v5531_v31 = vadd.f32 %v12802_v44, %v5478_v23  ;;  %v12874_v63 = vpack.c.bf16 %v5681_v40, %v5680_v48 }
 0xc90   :  { %10551 = vmatprep.subr.bf16.mxu0 %v10550_v47  ;;  %v5554_v38 = vld [vmem:[#allocation3 + $0xb0] sm:$0xff]  ;;  %v5608_v12 = vadd.f32 %v8454_v11, %v5555_v15  ;;  %v5670_v46 = vadd.f32 %v8460_v16, %v5617_v52  ;;  %v12928_v16 = vld [vmem:[%s13496_s28 + $0x20] sm:$0xff] }
 0xc91   :  { %10536 = vmatprep.subr.msk.bf16.mxu1 %vm11546_vm3, %v10534_v51  ;;  %v5607_v21 = vadd.f32 %v8454_v11, %v5554_v38  ;;  %v5474_v11 = vld [vmem:[#allocation2 + $0x98] sm:$0xff] }
 0xc92   :  { %9904 = vmatmul.mubr.msk.f32.gmra.mrb[122].mxu0 %vm485_vm2, %v5523_v35  ;;  %v5527_v30 = vadd.f32 %v12802_v44, %v5474_v11  ;;  %v10562_v57 = vpack.c.bf16 %v5671_v43, %v5670_v46 }
 0xc93   :  { %9906 = vmatprep.mubr.msk.f32.mxu0 %vm485_vm2, %v5524_v36  ;;  %10553 = vmatpush3.bf16.msra.mxu0 %v10550_v47  ;;  %v10540_v18 = vpack.c.bf16 %v5608_v12, %v5607_v21  ;;  %v12900_v36 = vld [vmem:[%s13496_s28 + $0x18] sm:$0xff]  ;;  %v12908_v21 = vld [vmem:[%s13496_s28 + $0x10] sm:$0xff] }
 0xc94   :  { %10555 = vmatprep.subr.bf16.mxu0 %v10554_v37 }
 0xc96   :  { %9907 = vmatmul.mubr.msk.f32.gmra.mrb[124].mxu0 %vm485_vm2, %v5525_v61  ;;  %10539 = vmatpush3.bf16.xpose.msk.msra.mxu1 %vm11546_vm3, %v10534_v51 }
 0xc97   :  { %10557 = vmatpush3.bf16.msra.mxu0 %v10554_v37  ;;  %10542 = vmatprep.subr.msk.bf16.mxu1 %vm11546_vm3, %v10540_v18 }
 0xc98   :  { %10571 = vmatprep.subr.bf16.mxu0 %v12847_v8 }
 0xc9e   :  { %10545 = vmatpush3.bf16.xpose.msk.msra.mxu1 %vm11546_vm3, %v10540_v18 }
 0xc9f   :  { %10559 = vmatprep.subr.bf16.mxu1 %v10558_v50 }
 0xca5   :  { %9922 = vmatmul.mubr.msk.f32.vlgmr.msra.gmra.mrb[126].mxu1 %vm485_vm2, %v5527_v30 }
 0xca6   :  { %9924 = vmatprep.mubr.msk.f32.mxu1 %vm485_vm2, %v5528_v56  ;;  %10561 = vmatpush3.bf16.msra.mxu1 %v10558_v50 }
 0xca7   :  { %10563 = vmatprep.subr.bf16.mxu1 %v10562_v57 }
 0xca9   :  { %9925 = vmatmul.mubr.msk.f32.gmra.mrb[128].mxu1 %vm485_vm2, %v5529_v19 }
 0xcaa   :  { %9927 = vmatprep.mubr.msk.f32.mxu1 %vm485_vm2, %v5530_v59  ;;  %10565 = vmatpush3.bf16.msra.mxu1 %v10562_v57 }
 0xcab   :  { %10567 = vmatprep.subr.bf16.mxu1 %v10566_v22 }
 0xcad   :  { %9928 = vmatmul.mubr.msk.f32.gmra.mrb[130].mxu1 %vm485_vm2, %v5531_v31 }
 0xcae   :  { %10569 = vmatpush3.bf16.msra.mxu1 %v10566_v22 }
 0xcaf   :  { %10583 = vmatprep.subr.bf16.mxu1 %v12874_v63 }
 0xd35   :  { %v9860_v29 = vpop.f32.mrb[114].mxu0 }
 0xd36   :  { %v6211_v7 = vmul.f32 0.35355338, %v9860_v29  ;;  %v5788_v45 = vpop.f32.mrb[115].mxu0 }
 0xd37   :  { %v6210_v20 = vmul.f32 0.35355338, %v5788_v45 }
 0xd38   :  { %v12883_v47 = vadd.f32 %v12880_v53, %v6211_v7 }
 0xd39   :  { %v9863_v44 = vpop.f32.mrb[116].mxu0  ;;  %v12891_v34 = vadd.f32 %v12888_v13, %v6210_v20 }
 0xd3a   :  { %v6213_v35 = vmul.f32 0.35355338, %v9863_v44  ;;  %v5798_v51 = vpop.f32.mrb[117].mxu0  ;;  %v6261_v15 = vsel %vm2412_vm4, %v12883_v47, -inf }
 0xd3b   :  { %v6212_v27 = vmul.f32 0.35355338, %v5798_v51  ;;  %6262 = vmax.xlane.f32.xlu1 %v6261_v15  ;;  %v6258_v28 = vsel %vm2412_vm4, %v12891_v34, -inf }
 0xd3c   :  { %6259 = vmax.xlane.f32.xlu0 %v6258_v28  ;;  %v12903_v32 = vadd.f32 %v12900_v36, %v6213_v35 }
 0xd3d   :  { %v9866_v38 = vpop.f32.mrb[118].mxu0  ;;  %v12911_v12 = vadd.f32 %v12908_v21, %v6212_v27 }
 0xd3e   :  { %v6215_v37 = vmul.f32 0.35355338, %v9866_v38  ;;  %v5808_v33 = vpop.f32.mrb[119].mxu0  ;;  %v6267_v6 = vsel %vm2412_vm4, %v12903_v32, -inf }
 0xd3f   :  { %v6214_v61 = vmul.f32 0.35355338, %v5808_v33  ;;  %6268 = vmax.xlane.f32.xlu1 %v6267_v6  ;;  %v6264_v18 = vsel %vm2412_vm4, %v12911_v12, -inf }
 0xd40   :  { %6265 = vmax.xlane.f32.xlu0 %v6264_v18  ;;  %v12923_v4 = vadd.f32 %v12920_v10, %v6215_v37 }
 0xd41   :  { %v12931_v2 = vadd.f32 %v12928_v16, %v6214_v61 }
 0xd42   :  { %v6273_v5 = vsel %vm2412_vm4, %v12923_v4, -inf }
 0xd43   :  { %6274 = vmax.xlane.f32.xlu1 %v6273_v5  ;;  %v6270_v50 = vsel %vm2412_vm4, %v12931_v2, -inf }
 0xd44   :  { %6271 = vmax.xlane.f32.xlu0 %v6270_v50 }
 0xd54   :  { %v9881_v52 = vpop.f32.mrb[120].mxu1 }
 0xd55   :  { %v6217_v9 = vmul.f32 0.35355338, %v9881_v52  ;;  %v5919_v11 = vpop.f32.mrb[121].mxu1 }
 0xd56   :  { %v6216_v1 = vmul.f32 0.35355338, %v5919_v11 }
 0xd57   :  { %v12938_v46 = vadd.f32 %v12880_v53, %v6217_v9 }
 0xd58   :  { %v9884_v43 = vpop.f32.mrb[122].mxu1  ;;  %v12941_v55 = vadd.f32 %v12888_v13, %v6216_v1 }
 0xd59   :  { %v6219_v60 = vmul.f32 0.35355338, %v9884_v43  ;;  %v5929_v30 = vpop.f32.mrb[123].mxu1  ;;  %v6279_v56 = vsel %vm2412_vm4, %v12938_v46, -inf }
 0xd5a   :  { %v6218_v17 = vmul.f32 0.35355338, %v5929_v30  ;;  %6280 = vmax.xlane.f32.xlu1 %v6279_v56  ;;  %v6276_v57 = vsel %vm2412_vm4, %v12941_v55, -inf }
 0xd5b   :  { %6277 = vmax.xlane.f32.xlu0 %v6276_v57  ;;  %v12948_v25 = vadd.f32 %v12900_v36, %v6219_v60 }
 0xd5c   :  { %v9887_v54 = vpop.f32.mrb[124].mxu1  ;;  %v12951_v42 = vadd.f32 %v12908_v21, %v6218_v17 }
 0xd5d   :  { %v6221_v58 = vmul.f32 0.35355338, %v9887_v54  ;;  %v5939_v49 = vpop.f32.mrb[125].mxu1  ;;  %v6285_v19 = vsel %vm2412_vm4, %v12948_v25, -inf }
 0xd5e   :  { %v6220_v59 = vmul.f32 0.35355338, %v5939_v49  ;;  %6286 = vmax.xlane.f32.xlu1 %v6285_v19  ;;  %v6282_v23 = vsel %vm2412_vm4, %v12951_v42, -inf }
 0xd5f   :  { %6283 = vmax.xlane.f32.xlu0 %v6282_v23  ;;  %v12958_v22 = vadd.f32 %v12920_v10, %v6221_v58 }
 0xd60   :  { %v12961_v40 = vadd.f32 %v12928_v16, %v6220_v59 }
 0xd61   :  { %v9902_v48 = vpop.f32.mrb[120].mxu0  ;;  %v6291_v7 = vsel %vm2412_vm4, %v12958_v22, -inf }
 0xd62   :  { %v6223_v31 = vmul.f32 0.35355338, %v9902_v48  ;;  %v6050_v29 = vpop.f32.mrb[121].mxu0  ;;  %6292 = vmax.xlane.f32.xlu1 %v6291_v7  ;;  %v6288_v20 = vsel %vm2412_vm4, %v12961_v40, -inf }
 0xd63   :  { %v6222_v45 = vmul.f32 0.35355338, %v6050_v29  ;;  %6289 = vmax.xlane.f32.xlu0 %v6288_v20 }
 0xd64   :  { %v12968_v44 = vadd.f32 %v12880_v53, %v6223_v31 }
 0xd65   :  { %v9905_v35 = vpop.f32.mrb[122].mxu0  ;;  %v12971_v51 = vadd.f32 %v12888_v13, %v6222_v45 }
 0xd66   :  { %v6060_v15 = vpop.f32.mrb[123].mxu0  ;;  %v6297_v27 = vsel %vm2412_vm4, %v12968_v44, -inf  ;;  %v6225_v6 = vmul.f32 0.35355338, %v9905_v35 }
 0xd67   :  { %6298 = vmax.xlane.f32.xlu1 %v6297_v27  ;;  %v6294_v28 = vsel %vm2412_vm4, %v12971_v51, -inf  ;;  %v6224_v5 = vmul.f32 0.35355338, %v6060_v15 }
 0xd68   :  { %6295 = vmax.xlane.f32.xlu0 %v6294_v28  ;;  %v12988_v1 = vadd.f32 %v12900_v36, %v6225_v6 }
 0xd69   :  { %v12977_v38 = vpop.f32.mrb[124].mxu0  ;;  %v12993_v56 = vadd.f32 %v12908_v21, %v6224_v5 }
 0xd6a   :  { %v12979_v37 = vpop.f32.mrb[125].mxu0  ;;  %v6303_v58 = vsel %vm2412_vm4, %v12988_v1, -inf }
 0xd6b   :  { %v6300_v19 = vsel %vm2412_vm4, %v12993_v56, -inf }
 0xd78   :  { %v9923_v33 = vpop.f32.mrb[126].mxu1 }
 0xd79   :  { %v6229_v61 = vmul.f32 0.35355338, %v9923_v33  ;;  %v6181_v18 = vpop.f32.mrb[127].mxu1 }
 0xd7a   :  { %v6228_v50 = vmul.f32 0.35355338, %v6181_v18 }
 0xd7b   :  { %v12982_v52 = vadd.f32 %v12880_v53, %v6229_v61 }
 0xd7c   :  { %v12985_v9 = vadd.f32 %v12888_v13, %v6228_v50  ;;  %v9926_v11 = vpop.f32.mrb[128].mxu1 }
 0xd7d   :  { %v6231_v43 = vmul.f32 0.35355338, %v9926_v11  ;;  %v6191_v60 = vpop.f32.mrb[129].mxu1  ;;  %v6315_v30 = vsel %vm2412_vm4, %v12982_v52, -inf }
 0xd7e   :  { %v6230_v17 = vmul.f32 0.35355338, %v6191_v60  ;;  %6316 = vmax.xlane.f32.xlu1 %v6315_v30  ;;  %v6312_v53 = vsel %vm2412_vm4, %v12985_v9, -inf }
 0xd7f   :  { %6313 = vmax.xlane.f32.xlu0 %v6312_v53  ;;  %v13000_v57 = vadd.f32 %v12900_v36, %v6231_v43 }
 0xd80   :  { %v12997_v13 = vpop.f32.mrb[130].mxu1  ;;  %v13007_v49 = vadd.f32 %v12908_v21, %v6230_v17 }
 0xd81   :  { %v13002_v54 = vpop.f32.mrb[131].mxu1  ;;  %v6321_v59 = vsel %vm2412_vm4, %v13000_v57, -inf }
 0xd82   :  { %6304 = vmax.xlane.f32.xlu1 %v6303_v58  ;;  %v6318_v36 = vsel %vm2412_vm4, %v13007_v49, -inf }
 0xd83   :  { %6301 = vmax.xlane.f32.xlu0 %v6300_v19 }
 0xd86   :  { %6322 = vmax.xlane.f32.xlu1 %v6321_v59 }
 0xd87   :  { %6319 = vmax.xlane.f32.xlu0 %v6318_v36 }
 0xdc8   :  { %v6263_v23 = vpop.xlane.xlu1 %6262 }
 0xdc9   :  { %v6331_v48 = vsub.f32 %v12883_v47, %v6263_v23  ;;  %v6260_v31 = vpop.xlane.xlu0 %6259 }
 0xdca   :  { %v6330_v21 = vsub.f32 %v12891_v34, %v6260_v31 }
 0xdcb   :  { %v6356_v29 = vmul.f32 1.442695, %v6331_v48 }
 0xdcc   :  { %v6354_v7 = vmul.f32 1.442695, %v6330_v21  ;;  %v6269_v45 = vpop.xlane.xlu1 %6268 }
 0xdcd   :  { %10778 = vpow2.f32 %v6356_v29  ;;  %v6333_v20 = vsub.f32 %v12903_v32, %v6269_v45  ;;  %v6266_v35 = vpop.xlane.xlu0 %6265 }
 0xdce   :  { %10780 = vpow2.f32 %v6354_v7  ;;  %v6332_v15 = vsub.f32 %v12911_v12, %v6266_v35 }
 0xdcf   :  { %v6360_v27 = vmul.f32 1.442695, %v6333_v20 }
 0xdd0   :  { %v6358_v28 = vmul.f32 1.442695, %v6332_v15  ;;  %v6275_v33 = vpop.xlane.xlu1 %6274 }
 0xdd1   :  { %10782 = vpow2.f32 %v6360_v27  ;;  %v6335_v6 = vsub.f32 %v12923_v4, %v6275_v33  ;;  %v6272_v47 = vpop.xlane.xlu0 %6271 }
 0xdd2   :  { %10784 = vpow2.f32 %v6358_v28  ;;  %v6334_v34 = vsub.f32 %v12931_v2, %v6272_v47 }
 0xdd3   :  { %v6364_v61 = vmul.f32 1.442695, %v6335_v6 }
 0xdd4   :  { %v6362_v18 = vmul.f32 1.442695, %v6334_v34 }
 0xdd5   :  { %10786 = vpow2.f32 %v6364_v61 }
 0xdd6   :  { %10788 = vpow2.f32 %v6362_v18 }
 0xdd7   :  { %v13021_v5 = vpop.eup %10778 }
 0xdd8   :  { %v13023_v32 = vpop.eup %10780  ;;  %v6405_v12 = vsel %vm2412_vm4, %v13021_v5, 0.0 }
 0xdd9   :  { %6406 = vadd.xlane.f32.xlu1 %v6405_v12  ;;  %v6402_v50 = vsel %vm2412_vm4, %v13023_v32, 0.0 }
 0xdda   :  { %6403 = vadd.xlane.f32.xlu0 %v6402_v50 }
 0xddb   :  { %v13029_v4 = vpop.eup %10782 }
 0xddc   :  { %v13031_v11 = vpop.eup %10784  ;;  %v6411_v2 = vsel %vm2412_vm4, %v13029_v4, 0.0 }
 0xddd   :  { %6412 = vadd.xlane.f32.xlu1 %v6411_v2  ;;  %v6408_v43 = vsel %vm2412_vm4, %v13031_v11, 0.0 }
 0xdde   :  { %6409 = vadd.xlane.f32.xlu0 %v6408_v43 }
 0xddf   :  { %v13037_v60 = vpop.eup %10786 }
 0xde0   :  { %v13039_v30 = vpop.eup %10788  ;;  %v6417_v17 = vsel %vm2412_vm4, %v13037_v60, 0.0 }
 0xde1   :  { %6418 = vadd.xlane.f32.xlu1 %v6417_v17  ;;  %v6414_v53 = vsel %vm2412_vm4, %v13039_v30, 0.0 }
 0xde2   :  { %6415 = vadd.xlane.f32.xlu0 %v6414_v53 }
 0xde7   :  { %v6281_v58 = vpop.xlane.xlu1 %6280 }
 0xde8   :  { %v6337_v19 = vsub.f32 %v12938_v46, %v6281_v58  ;;  %v6278_v59 = vpop.xlane.xlu0 %6277 }
 0xde9   :  { %v6336_v36 = vsub.f32 %v12941_v55, %v6278_v59 }
 0xdea   :  { %v6368_v23 = vmul.f32 1.442695, %v6337_v19 }
 0xdeb   :  { %v6366_v48 = vmul.f32 1.442695, %v6336_v36  ;;  %v6287_v31 = vpop.xlane.xlu1 %6286 }
 0xdec   :  { %10790 = vpow2.f32 %v6368_v23  ;;  %v6339_v21 = vsub.f32 %v12948_v25, %v6287_v31  ;;  %v6284_v29 = vpop.xlane.xlu0 %6283 }
 0xded   :  { %10792 = vpow2.f32 %v6366_v48  ;;  %v6338_v7 = vsub.f32 %v12951_v42, %v6284_v29 }
 0xdee   :  { %v6372_v45 = vmul.f32 1.442695, %v6339_v21 }
 0xdef   :  { %v6370_v20 = vmul.f32 1.442695, %v6338_v7  ;;  %v6293_v35 = vpop.xlane.xlu1 %6292 }
 0xdf0   :  { %10794 = vpow2.f32 %v6372_v45  ;;  %v6341_v15 = vsub.f32 %v12958_v22, %v6293_v35  ;;  %v6290_v46 = vpop.xlane.xlu0 %6289 }
 0xdf1   :  { %10796 = vpow2.f32 %v6370_v20  ;;  %v6340_v55 = vsub.f32 %v12961_v40, %v6290_v46 }
 0xdf2   :  { %v6376_v27 = vmul.f32 1.442695, %v6341_v15 }
 0xdf3   :  { %v6374_v28 = vmul.f32 1.442695, %v6340_v55 }
 0xdf4   :  { %v6299_v33 = vpop.xlane.xlu1 %6298  ;;  %10798 = vpow2.f32 %v6376_v27 }
 0xdf5   :  { %v6343_v25 = vsub.f32 %v12968_v44, %v6299_v33  ;;  %v6296_v6 = vpop.xlane.xlu0 %6295  ;;  %10800 = vpow2.f32 %v6374_v28 }
 0xdf6   :  { %v6342_v42 = vsub.f32 %v12971_v51, %v6296_v6  ;;  %v13053_v47 = vpop.eup %10790 }
 0xdf7   :  { %v6380_v34 = vmul.f32 1.442695, %v6343_v25  ;;  %v13055_v61 = vpop.eup %10792  ;;  %v6423_v18 = vsel %vm2412_vm4, %v13053_v47, 0.0 }
 0xdf8   :  { %v6378_v22 = vmul.f32 1.442695, %v6342_v42  ;;  %6424 = vadd.xlane.f32.xlu1 %v6423_v18  ;;  %v6420_v40 = vsel %vm2412_vm4, %v13055_v61, 0.0  ;;  %v6226_v18 = vmul.f32 0.35355338, %v12979_v37 }
 0xdf9   :  { %10802 = vpow2.f32 %v6380_v34  ;;  %6421 = vadd.xlane.f32.xlu0 %v6420_v40  ;;  %v6232_v37 = vmul.f32 0.35355338, %v13002_v54 }
 0xdfa   :  { %10804 = vpow2.f32 %v6378_v22  ;;  %v13061_v44 = vpop.eup %10794 }
 0xdfb   :  { %v13063_v12 = vpop.eup %10796  ;;  %v6429_v51 = vsel %vm2412_vm4, %v13061_v44, 0.0 }
 0xdfc   :  { %6430 = vadd.xlane.f32.xlu1 %v6429_v51  ;;  %v6426_v50 = vsel %vm2412_vm4, %v13063_v12, 0.0 }
 0xdfd   :  { %6427 = vadd.xlane.f32.xlu0 %v6426_v50 }
 0xdfe   :  { %v13069_v2 = vpop.eup %10798 }
 0xdff   :  { %v13071_v43 = vpop.eup %10800  ;;  %v6435_v17 = vsel %vm2412_vm4, %v13069_v2, 0.0 }
 0xe00   :  { %6436 = vadd.xlane.f32.xlu1 %v6435_v17  ;;  %v6432_v53 = vsel %vm2412_vm4, %v13071_v43, 0.0 }
 0xe01   :  { %6433 = vadd.xlane.f32.xlu0 %v6432_v53  ;;  %v6233_v53 = vmul.f32 0.35355338, %v12997_v13  ;;  %v13131_v13 = vadd.f32 %v12928_v16, %v6232_v37 }
 0xe03   :  { %v13077_v58 = vpop.eup %10802 }
 0xe04   :  { %v13079_v19 = vpop.eup %10804  ;;  %v6441_v59 = vsel %vm2412_vm4, %v13077_v58, 0.0 }
 0xe05   :  { %6442 = vadd.xlane.f32.xlu1 %v6441_v59  ;;  %v6438_v36 = vsel %vm2412_vm4, %v13079_v19, 0.0  ;;  %v13120_v59 = vadd.f32 %v12928_v16, %v6226_v18 }
 0xe06   :  { %6439 = vadd.xlane.f32.xlu0 %v6438_v36 }
 0xe0b   :  { %v6317_v23 = vpop.xlane.xlu1 %6316 }
 0xe0c   :  { %v6349_v48 = vsub.f32 %v12982_v52, %v6317_v23  ;;  %v6314_v31 = vpop.xlane.xlu0 %6313  ;;  %v13126_v23 = vadd.f32 %v12920_v10, %v6233_v53 }
 0xe0d   :  { %v6348_v21 = vsub.f32 %v12985_v9, %v6314_v31  ;;  %v6306_v31 = vsel %vm2412_vm4, %v13120_v59, -inf }
 0xe0e   :  { %v6392_v29 = vmul.f32 1.442695, %v6349_v48  ;;  %v6327_v54 = vsel %vm2412_vm4, %v13126_v23, -inf }
 0xe0f   :  { %v6390_v7 = vmul.f32 1.442695, %v6348_v21  ;;  %v6305_v45 = vpop.xlane.xlu1 %6304  ;;  %v6324_v21 = vsel %vm2412_vm4, %v13131_v13, -inf }
 0xe10   :  { %10806 = vpow2.f32 %v6392_v29  ;;  %v6345_v20 = vsub.f32 %v12988_v1, %v6305_v45  ;;  %v6302_v35 = vpop.xlane.xlu0 %6301 }
 0xe11   :  { %10808 = vpow2.f32 %v6390_v7  ;;  %v6344_v15 = vsub.f32 %v12993_v56, %v6302_v35  ;;  %v5623_v35 = vld [vmem:[#allocation4 + $0x70] sm:$0xff] }
 0xe12   :  { %v6384_v46 = vmul.f32 1.442695, %v6345_v20 }
 0xe13   :  { %v6382_v55 = vmul.f32 1.442695, %v6344_v15  ;;  %v6323_v27 = vpop.xlane.xlu1 %6322  ;;  %v5624_v15 = vld [vmem:[#allocation4 + $0x78] sm:$0xff] }
 0xe14   :  { %10810 = vpow2.f32 %v6384_v46  ;;  %v6351_v28 = vsub.f32 %v13000_v57, %v6323_v27  ;;  %v6320_v52 = vpop.xlane.xlu0 %6319  ;;  %v5676_v27 = vadd.f32 %v12833_v24, %v5623_v35  ;;  %v5632_v35 = vld [vmem:[#allocation4 + $0xb8] sm:$0xff] }
 0xe15   :  { %10812 = vpow2.f32 %v6382_v55  ;;  %v6350_v9 = vsub.f32 %v13007_v49, %v6320_v52  ;;  %v6227_v49 = vmul.f32 0.35355338, %v12977_v38 }
 0xe16   :  { %v6396_v33 = vmul.f32 1.442695, %v6351_v28  ;;  %v5677_v28 = vadd.f32 %v12833_v24, %v5624_v15 }
 0xe17   :  { %v6394_v25 = vmul.f32 1.442695, %v6350_v9  ;;  %v13114_v17 = vadd.f32 %v12920_v10, %v6227_v49  ;;  %v5625_v9 = vld [vmem:[#allocation4 + $0x80] sm:$0xff] }
 0xe18   :  { %10814 = vpow2.f32 %v6396_v33  ;;  %v5626_v33 = vld [vmem:[#allocation4 + $0x88] sm:$0xff]  ;;  %v10574_v49 = vpack.c.bf16 %v5677_v28, %v5676_v27 }
 0xe19   :  { %10816 = vpow2.f32 %v6394_v25  ;;  %v6309_v48 = vsel %vm2412_vm4, %v13114_v17, -inf  ;;  %v5679_v18 = vadd.f32 %v12833_v24, %v5626_v33 }
 0xe1a   :  { %v13091_v6 = vpop.eup %10806 }
 0xe1b   :  { %v13093_v1 = vpop.eup %10808  ;;  %v6459_v56 = vsel %vm2412_vm4, %v13091_v6, 0.0 }
 0xe1c   :  { %6460 = vadd.xlane.f32.xlu1 %v6459_v56  ;;  %v6456_v42 = vsel %vm2412_vm4, %v13093_v1, 0.0 }
 0xe1d   :  { %6457 = vadd.xlane.f32.xlu0 %v6456_v42 }
 0xe1e   :  { %v13099_v57 = vpop.eup %10810 }
 0xe1f   :  { %v13101_v34 = vpop.eup %10812  ;;  %v6447_v22 = vsel %vm2412_vm4, %v13099_v57, 0.0 }
 0xe20   :  { %6448 = vadd.xlane.f32.xlu1 %v6447_v22  ;;  %v6444_v40 = vsel %vm2412_vm4, %v13101_v34, 0.0  ;;  %v5678_v22 = vadd.f32 %v12833_v24, %v5625_v9 }
 0xe21   :  { %6445 = vadd.xlane.f32.xlu0 %v6444_v40 }
 0xe22   :  { %v13109_v51 = vpop.eup %10814 }
 0xe23   :  { %v13111_v50 = vpop.eup %10816  ;;  %v6465_v38 = vsel %vm2412_vm4, %v13109_v51, 0.0 }
 0xe24   :  { %6466 = vadd.xlane.f32.xlu1 %v6465_v38  ;;  %v6462_v36 = vsel %vm2412_vm4, %v13111_v50, 0.0  ;;  %v10578_v38 = vpack.c.bf16 %v5679_v18, %v5678_v22 }
 0xe25   :  { %6463 = vadd.xlane.f32.xlu0 %v6462_v36 }
 0xe28   :  { %6310 = vmax.xlane.f32.xlu1 %v6309_v48 }
 0xe29   :  { %6307 = vmax.xlane.f32.xlu0 %v6306_v31 }
 0xe2c   :  { %6328 = vmax.xlane.f32.xlu1 %v6327_v54  ;;  %v5630_v54 = vld [vmem:[#allocation4 + $0xa8] sm:$0xff] }
 0xe2d   :  { %6325 = vmax.xlane.f32.xlu0 %v6324_v21 }
 0xe66   :  { %v6407_v10 = vpop.xlane.xlu1 %6406 }
 0xe67   :  { %10818 = vrcp.f32 %v6407_v10  ;;  %v6404_v29 = vpop.xlane.xlu0 %6403 }
 0xe68   :  { %10820 = vrcp.f32 %v6404_v29 }
 0xe6a   :  { %v6413_v7 = vpop.xlane.xlu1 %6412 }
 0xe6b   :  { %10822 = vrcp.f32 %v6413_v7  ;;  %v6410_v16 = vpop.xlane.xlu0 %6409  ;;  %v5683_v7 = vadd.f32 %v12864_v3, %v5630_v54 }
 0xe6c   :  { %10824 = vrcp.f32 %v6410_v16 }
 0xe6e   :  { %v6419_v45 = vpop.xlane.xlu1 %6418 }
 0xe6f   :  { %10826 = vrcp.f32 %v6419_v45  ;;  %v6416_v20 = vpop.xlane.xlu0 %6415 }
 0xe70   :  { %10828 = vrcp.f32 %v6416_v20  ;;  %v5631_v20 = vld [vmem:[#allocation4 + $0xb0] sm:$0xff] }
 0xe71   :  { %v10819_v46 = vpop.eup %10818  ;;  %v5684_v28 = vadd.f32 %v12864_v3, %v5631_v20  ;;  %v8536_v20 = vld [vmem:[%s13455_s12 + $0x28] sm:$0xff] }
 0xe72   :  { %v10821_v55 = vpop.eup %10820  ;;  %v6499_v25 = vmul.f32 %v10819_v46, %v13021_v5 }
 0xe73   :  { %v6498_v52 = vmul.f32 %v10821_v55, %v13023_v32 }
 0xe75   :  { %v10823_v56 = vpop.eup %10822  ;;  %9942 = vmatprep.mubr.msk.f32.mxu0 %vm2412_vm4, %v6498_v52  ;;  %v5685_v52 = vadd.f32 %v12864_v3, %v5632_v35  ;;  %v8537_v35 = vld [vmem:[%s13455_s12 + $0x30] sm:$0xff] }
 0xe76   :  { %v10825_v42 = vpop.eup %10824  ;;  %9943 = vmatmul.mubr.msk.f32.vlgmr.msra.gmra.mrb[126].mxu0 %vm2412_vm4, %v6499_v25  ;;  %v6501_v32 = vmul.f32 %v10823_v56, %v13029_v4 }
 0xe77   :  { %10573 = vmatpush3.bf16.msra.mxu0 %v12847_v8  ;;  %v6500_v40 = vmul.f32 %v10825_v42, %v13031_v11  ;;  %v10590_v25 = vpack.c.bf16 %v5685_v52, %v5684_v28 }
 0xe78   :  { %10575 = vmatprep.subr.bf16.mxu0 %v10574_v49 }
 0xe79   :  { %v10827_v53 = vpop.eup %10826  ;;  %9945 = vmatprep.mubr.msk.f32.mxu0 %vm2412_vm4, %v6500_v40 }
 0xe7a   :  { %v10829_v5 = vpop.eup %10828  ;;  %9946 = vmatmul.mubr.msk.f32.gmra.mrb[128].mxu0 %vm2412_vm4, %v6501_v32  ;;  %v6503_v24 = vmul.f32 %v10827_v53, %v13037_v60 }
 0xe7b   :  { %10577 = vmatpush3.bf16.msra.mxu0 %v10574_v49  ;;  %v6502_v37 = vmul.f32 %v10829_v5, %v13039_v30  ;;  %v5629_v30 = vld [vmem:[#allocation4 + $0xa0] sm:$0xff] }
 0xe7c   :  { %10579 = vmatprep.subr.bf16.mxu0 %v10578_v38  ;;  %v5682_v29 = vadd.f32 %v12864_v3, %v5629_v30 }
 0xe7d   :  { %9948 = vmatprep.mubr.msk.f32.mxu0 %vm2412_vm4, %v6502_v37 }
 0xe7e   :  { %9949 = vmatmul.mubr.msk.f32.gmra.mrb[130].mxu0 %vm2412_vm4, %v6503_v24  ;;  %v10586_v27 = vpack.c.bf16 %v5683_v7, %v5682_v29 }
 0xe7f   :  { %10581 = vmatpush3.bf16.msra.mxu0 %v10578_v38 }
 0xe85   :  { %v6425_v8 = vpop.xlane.xlu1 %6424 }
 0xe86   :  { %10830 = vrcp.f32 %v6425_v8  ;;  %v6422_v4 = vpop.xlane.xlu0 %6421 }
 0xe87   :  { %10832 = vrcp.f32 %v6422_v4 }
 0xe89   :  { %v6431_v11 = vpop.xlane.xlu1 %6430 }
 0xe8a   :  { %10834 = vrcp.f32 %v6431_v11  ;;  %v6428_v36 = vpop.xlane.xlu0 %6427 }
 0xe8b   :  { %10836 = vrcp.f32 %v6428_v36 }
 0xe8d   :  { %v6437_v48 = vpop.xlane.xlu1 %6436 }
 0xe8e   :  { %10838 = vrcp.f32 %v6437_v48  ;;  %v6434_v31 = vpop.xlane.xlu0 %6433 }
 0xe8f   :  { %10840 = vrcp.f32 %v6434_v31 }
 0xe90   :  { %v10831_v60 = vpop.eup %10830 }
 0xe91   :  { %v10833_v21 = vpop.eup %10832  ;;  %v6505_v15 = vmul.f32 %v10831_v60, %v13053_v47 }
 0xe92   :  { %v6443_v10 = vpop.xlane.xlu1 %6442  ;;  %v6504_v45 = vmul.f32 %v10833_v21, %v13055_v61 }
 0xe93   :  { %10842 = vrcp.f32 %v6443_v10  ;;  %v6440_v16 = vpop.xlane.xlu0 %6439 }
 0xe94   :  { %10844 = vrcp.f32 %v6440_v16  ;;  %v10835_v46 = vpop.eup %10834  ;;  %9963 = vmatprep.mubr.msk.f32.mxu1 %vm2412_vm4, %v6504_v45 }
 0xe95   :  { %v10837_v55 = vpop.eup %10836  ;;  %9964 = vmatmul.mubr.msk.f32.vlgmr.msra.gmra.mrb[132].mxu1 %vm2412_vm4, %v6505_v15  ;;  %v6507_v9 = vmul.f32 %v10835_v46, %v13061_v44  ;;  %v8538_v15 = vld [vmem:[%s13455_s12 + $0x38] sm:$0xff] }
 0xe96   :  { %10585 = vmatpush3.bf16.msra.mxu1 %v12874_v63  ;;  %v6506_v61 = vmul.f32 %v10837_v55, %v13063_v12 }
 0xe97   :  { %10587 = vmatprep.subr.bf16.mxu1 %v10586_v27 }
 0xe98   :  { %v10839_v47 = vpop.eup %10838  ;;  %9966 = vmatprep.mubr.msk.f32.mxu1 %vm2412_vm4, %v6506_v61 }
 0xe99   :  { %v10841_v33 = vpop.eup %10840  ;;  %9967 = vmatmul.mubr.msk.f32.gmra.mrb[134].mxu1 %vm2412_vm4, %v6507_v9  ;;  %v6509_v3 = vmul.f32 %v10839_v47, %v13069_v2 }
 0xe9a   :  { %10589 = vmatpush3.bf16.msra.mxu1 %v10586_v27  ;;  %v6508_v56 = vmul.f32 %v10841_v33, %v13071_v43 }
 0xe9b   :  { %10591 = vmatprep.subr.bf16.mxu1 %v10590_v25 }
 0xe9c   :  { %9969 = vmatprep.mubr.msk.f32.mxu1 %vm2412_vm4, %v6508_v56 }
 0xe9d   :  { %v10843_v42 = vpop.eup %10842  ;;  %9970 = vmatmul.mubr.msk.f32.gmra.mrb[136].mxu1 %vm2412_vm4, %v6509_v3 }
 0xe9e   :  { %v10845_v63 = vpop.eup %10844  ;;  %10593 = vmatpush3.bf16.msra.mxu1 %v10590_v25  ;;  %v6511_v12 = vmul.f32 %v10843_v42, %v13077_v58 }
 0xe9f   :  { %v6510_v44 = vmul.f32 %v10845_v63, %v13079_v19  ;;  %10025 = vmatprep.subr.mxu1 %v8536_v20 }
 0xea1   :  { %9984 = vmatprep.mubr.msk.f32.mxu0 %vm2412_vm4, %v6510_v44 }
 0xea2   :  { %9985 = vmatmul.mubr.msk.f32.vlgmr.msra.gmra.mrb[132].mxu0 %vm2412_vm4, %v6511_v12 }
 0xea9   :  { %v6461_v49 = vpop.xlane.xlu1 %6460 }
 0xeaa   :  { %10846 = vrcp.f32 %v6461_v49  ;;  %v6458_v43 = vpop.xlane.xlu0 %6457 }
 0xeab   :  { %10848 = vrcp.f32 %v6458_v43 }
 0xead   :  { %v6449_v2 = vpop.xlane.xlu1 %6448 }
 0xeae   :  { %10850 = vrcp.f32 %v6449_v2  ;;  %v6446_v22 = vpop.xlane.xlu0 %6445 }
 0xeaf   :  { %10852 = vrcp.f32 %v6446_v22 }
 0xeb1   :  { %v6467_v18 = vpop.xlane.xlu1 %6466 }
 0xeb2   :  { %10854 = vrcp.f32 %v6467_v18  ;;  %v6464_v40 = vpop.xlane.xlu0 %6463 }
 0xeb3   :  { %10856 = vrcp.f32 %v6464_v40 }
 0xeb4   :  { %v10847_v32 = vpop.eup %10846 }
 0xeb5   :  { %v10849_v19 = vpop.eup %10848  ;;  %v6311_v53 = vpop.xlane.xlu1 %6310  ;;  %v6517_v37 = vmul.f32 %v10847_v32, %v13091_v6 }
 0xeb6   :  { %v6347_v58 = vsub.f32 %v13114_v17, %v6311_v53  ;;  %v6308_v5 = vpop.xlane.xlu0 %6307  ;;  %v6516_v38 = vmul.f32 %v10849_v19, %v13093_v1 }
 0xeb7   :  { %v6346_v24 = vsub.f32 %v13120_v59, %v6308_v5 }
 0xeb8   :  { %v10851_v8 = vpop.eup %10850  ;;  %v6388_v4 = vmul.f32 1.442695, %v6347_v58  ;;  %10005 = vmatprep.mubr.msk.f32.mxu1 %vm2412_vm4, %v6516_v38 }
 0xeb9   :  { %v10853_v11 = vpop.eup %10852  ;;  %v6386_v36 = vmul.f32 1.442695, %v6346_v24  ;;  %10006 = vmatmul.mubr.msk.f32.vlgmr.msra.gmra.mrb[138].mxu1 %vm2412_vm4, %v6517_v37  ;;  %v6329_v48 = vpop.xlane.xlu1 %6328  ;;  %v6513_v1 = vmul.f32 %v10851_v8, %v13099_v57 }
 0xeba   :  { %10858 = vpow2.f32 %v6388_v4  ;;  %v6353_v31 = vsub.f32 %v13126_v23, %v6329_v48  ;;  %v6326_v17 = vpop.xlane.xlu0 %6325  ;;  %v6512_v30 = vmul.f32 %v10853_v11, %v13101_v34  ;;  %10026 = vmatpush3.msra.mxu1 %v8536_v20 }
 0xebb   :  { %10860 = vpow2.f32 %v6386_v36  ;;  %v6352_v6 = vsub.f32 %v13131_v13, %v6326_v17  ;;  %10047 = vmatprep.subr.mxu1 %v8538_v15 }
 0xebc   :  { %v10855_v59 = vpop.eup %10854  ;;  %v6400_v54 = vmul.f32 1.442695, %v6353_v31  ;;  %9987 = vmatprep.mubr.msk.f32.mxu0 %vm2412_vm4, %v6512_v30 }
 0xebd   :  { %v10857_v60 = vpop.eup %10856  ;;  %v6398_v21 = vmul.f32 1.442695, %v6352_v6  ;;  %9988 = vmatmul.mubr.msk.f32.gmra.mrb[134].mxu0 %vm2412_vm4, %v6513_v1  ;;  %v6519_v23 = vmul.f32 %v10855_v59, %v13109_v51  ;;  %v8535_v51 = vld [vmem:[%s13455_s12 + $0x20] sm:$0xff] }
 0xebe   :  { %10862 = vpow2.f32 %v6400_v54  ;;  %v6518_v10 = vmul.f32 %v10857_v60, %v13111_v50  ;;  %10014 = vmatprep.subr.mxu0 %v8535_v51 }
 0xebf   :  { %10864 = vpow2.f32 %v6398_v21  ;;  %10015 = vmatpush3.msra.mxu0 %v8535_v51 }
 0xec0   :  { %10008 = vmatprep.mubr.msk.f32.mxu1 %vm2412_vm4, %v6518_v10  ;;  %10036 = vmatprep.subr.mxu0 %v8537_v35 }
 0xec1   :  { %10009 = vmatmul.mubr.msk.f32.gmra.mrb[140].mxu1 %vm2412_vm4, %v6519_v23 }
 0xec4   :  { %v10859_v34 = vpop.eup %10858 }
 0xec5   :  { %v10861_v57 = vpop.eup %10860  ;;  %v6453_v13 = vsel %vm2412_vm4, %v10859_v34, 0.0 }
 0xec6   :  { %6454 = vadd.xlane.f32.xlu1 %v6453_v13  ;;  %v6450_v29 = vsel %vm2412_vm4, %v10861_v57, 0.0 }
 0xec7   :  { %6451 = vadd.xlane.f32.xlu0 %v6450_v29 }
 0xec8   :  { %v10863_v7 = vpop.eup %10862 }
 0xec9   :  { %v10865_v16 = vpop.eup %10864  ;;  %v6471_v45 = vsel %vm2412_vm4, %v10863_v7, 0.0 }
 0xeca   :  { %6472 = vadd.xlane.f32.xlu1 %v6471_v45  ;;  %v6468_v50 = vsel %vm2412_vm4, %v10865_v16, 0.0 }
 0xecb   :  { %6469 = vadd.xlane.f32.xlu0 %v6468_v50 }
 0xf49   :  { %v9944_v46 = vpop.f32.mrb[126].mxu0 }
 0xf4a   :  { %v6606_v55 = vpop.f32.mrb[127].mxu0 }
 0xf4d   :  { %v9947_v27 = vpop.f32.mrb[128].mxu0 }
 0xf4e   :  { %v6616_v28 = vpop.f32.mrb[129].mxu0 }
 0xf51   :  { %v9950_v52 = vpop.f32.mrb[130].mxu0 }
 0xf52   :  { %v6626_v61 = vpop.f32.mrb[131].mxu0 }
 0xf53   :  { %v6455_v9 = vpop.xlane.xlu1 %6454 }
 0xf54   :  { %10866 = vrcp.f32 %v6455_v9  ;;  %v6452_v47 = vpop.xlane.xlu0 %6451 }
 0xf55   :  { %10868 = vrcp.f32 %v6452_v47 }
 0xf57   :  { %v6473_v33 = vpop.xlane.xlu1 %6472 }
 0xf58   :  { %10870 = vrcp.f32 %v6473_v33  ;;  %v6470_v25 = vpop.xlane.xlu0 %6469 }
 0xf59   :  { %10872 = vrcp.f32 %v6470_v25 }
 0xf5e   :  { %v10867_v56 = vpop.eup %10866 }
 0xf5f   :  { %v10869_v3 = vpop.eup %10868  ;;  %v6515_v63 = vmul.f32 %v10867_v56, %v10859_v34 }
 0xf60   :  { %v6514_v42 = vmul.f32 %v10869_v3, %v10861_v57 }
 0xf62   :  { %v10871_v44 = vpop.eup %10870  ;;  %9990 = vmatprep.mubr.msk.f32.mxu0 %vm2412_vm4, %v6514_v42 }
 0xf63   :  { %v10873_v12 = vpop.eup %10872  ;;  %9991 = vmatmul.mubr.msk.f32.gmra.mrb[136].mxu0 %vm2412_vm4, %v6515_v63  ;;  %v6521_v43 = vmul.f32 %v10871_v44, %v10863_v7 }
 0xf64   :  { %10016 = vmatprep.mubr.msk.f32.mxu0 %vm485_vm2, %v6606_v55  ;;  %v6520_v49 = vmul.f32 %v10873_v12, %v10865_v16 }
 0xf66   :  { %10011 = vmatprep.mubr.msk.f32.mxu1 %vm2412_vm4, %v6520_v49 }
 0xf67   :  { %10012 = vmatmul.mubr.msk.f32.gmra.mrb[142].mxu1 %vm2412_vm4, %v6521_v43  ;;  %10017 = vmatmul.mubr.msk.f32.vlgmr.msra.gmra.mrb[138].mxu0 %vm485_vm2, %v9944_v46 }
 0xf68   :  { %v9965_v2 = vpop.f32.mrb[132].mxu1  ;;  %10019 = vmatprep.mubr.msk.f32.mxu0 %vm485_vm2, %v6616_v28  ;;  %10037 = vmatpush3.msra.mxu0 %v8537_v35 }
 0xf69   :  { %v6719_v22 = vpop.f32.mrb[133].mxu1 }
 0xf6a   :  { %10027 = vmatprep.mubr.msk.f32.mxu1 %vm485_vm2, %v6719_v22 }
 0xf6b   :  { %10020 = vmatmul.mubr.msk.f32.gmra.mrb[140].mxu0 %vm485_vm2, %v9947_v27  ;;  %10028 = vmatmul.mubr.msk.f32.vlgmr.msra.gmra.mrb[144].mxu1 %vm485_vm2, %v9965_v2 }
 0xf6c   :  { %v9968_v18 = vpop.f32.mrb[134].mxu1  ;;  %10022 = vmatprep.mubr.msk.f32.mxu0 %vm485_vm2, %v6626_v61  ;;  %10048 = vmatpush3.msra.mxu1 %v8538_v15 }
 0xf6d   :  { %v6729_v40 = vpop.f32.mrb[135].mxu1 }
 0xf6e   :  { %10030 = vmatprep.mubr.msk.f32.mxu1 %vm485_vm2, %v6729_v40 }
 0xf6f   :  { %10023 = vmatmul.mubr.msk.f32.gmra.mrb[142].mxu0 %vm485_vm2, %v9950_v52  ;;  %10031 = vmatmul.mubr.msk.f32.gmra.mrb[146].mxu1 %vm485_vm2, %v9968_v18  ;;  %v13260_v18 = vld [vmem:[%s13456_s13 + $0x1] ss:$0 sm:$0xff] }
 0xf70   :  { %v9971_v32 = vpop.f32.mrb[136].mxu1 }
 0xf71   :  { %v6739_v19 = vpop.f32.mrb[137].mxu1 }
 0xf72   :  { %10033 = vmatprep.mubr.msk.f32.mxu1 %vm485_vm2, %v6739_v19 }
 0xf73   :  { %10034 = vmatmul.mubr.msk.f32.gmra.mrb[148].mxu1 %vm485_vm2, %v9971_v32 }
 0xf75   :  { %v9986_v53 = vpop.f32.mrb[132].mxu0 }
 0xf76   :  { %v6832_v58 = vpop.f32.mrb[133].mxu0 }
 0xf77   :  { %10038 = vmatprep.mubr.msk.f32.mxu0 %vm485_vm2, %v6832_v58 }
 0xf78   :  { %10039 = vmatmul.mubr.msk.f32.vlgmr.msra.gmra.mrb[144].mxu0 %vm485_vm2, %v9986_v53 }
 0xf8c   :  { %v10007_v5 = vpop.f32.mrb[138].mxu1 }
 0xf8d   :  { %v6945_v38 = vpop.f32.mrb[139].mxu1 }
 0xf8e   :  { %10049 = vmatprep.mubr.msk.f32.mxu1 %vm485_vm2, %v6945_v38 }
 0xf8f   :  { %10050 = vmatmul.mubr.msk.f32.vlgmr.msra.gmra.mrb[150].mxu1 %vm485_vm2, %v10007_v5 }
 0xf90   :  { %v9989_v37 = vpop.f32.mrb[134].mxu0 }
 0xf91   :  { %v6842_v24 = vpop.f32.mrb[135].mxu0 }
 0xf92   :  { %10041 = vmatprep.mubr.msk.f32.mxu0 %vm485_vm2, %v6842_v24 }
 0xf93   :  { %10042 = vmatmul.mubr.msk.f32.gmra.mrb[146].mxu0 %vm485_vm2, %v9989_v37 }
 0xf94   :  { %v10010_v8 = vpop.f32.mrb[140].mxu1 }
 0xf95   :  { %v6955_v4 = vpop.f32.mrb[141].mxu1 }
 0xf96   :  { %10052 = vmatprep.mubr.msk.f32.mxu1 %vm485_vm2, %v6955_v4 }
 0xf97   :  { %10053 = vmatmul.mubr.msk.f32.gmra.mrb[152].mxu1 %vm485_vm2, %v10010_v8 }
0x1036   :  { %v9992_v11 = vpop.f32.mrb[136].mxu0 }
0x1037   :  { %v6852_v36 = vpop.f32.mrb[137].mxu0 }
0x1038   :  { %10044 = vmatprep.mubr.msk.f32.mxu0 %vm485_vm2, %v6852_v36 }
0x1039   :  { %10045 = vmatmul.mubr.msk.f32.gmra.mrb[148].mxu0 %vm485_vm2, %v9992_v11 }
0x103a   :  { %v10013_v48 = vpop.f32.mrb[142].mxu1  ;;  %v10018_v31 = vpop.f32.mrb[138].mxu0 }
0x103b   :  { %v6965_v17 = vpop.f32.mrb[143].mxu1  ;;  %v7063_v30 = vpop.f32.mrb[139].mxu0  ;;  %v7438_v59 = vsel %vm220_vm1, %v10018_v31, 0.0 }
0x103c   :  { %10055 = vmatprep.mubr.msk.f32.mxu1 %vm485_vm2, %v6965_v17  ;;  %v7431_v10 = vsel %vm220_vm1, %v7063_v30, 0.0 }
0x103d   :  { %10056 = vmatmul.mubr.msk.f32.gmra.mrb[154].mxu1 %vm485_vm2, %v10013_v48 }
0x103e   :  { %v10021_v6 = vpop.f32.mrb[140].mxu0  ;;  %v10029_v1 = vpop.f32.mrb[144].mxu1 }
0x103f   :  { %v7439_v54 = vsel %vm220_vm1, %v10029_v1, 0.0  ;;  %v7073_v60 = vpop.f32.mrb[141].mxu0  ;;  %v7176_v21 = vpop.f32.mrb[145].mxu1  ;;  %v7452_v7 = vsel %vm220_vm1, %v10021_v6, 0.0 }
0x1040   :  { %v7440_v23 = vadd.f32 %v7439_v54, %v7438_v59  ;;  %v7432_v34 = vsel %vm220_vm1, %v7176_v21, 0.0  ;;  %v7445_v51 = vsel %vm220_vm1, %v7073_v60, 0.0 }
0x1041   :  { %v7433_v57 = vadd.f32 %v7432_v34, %v7431_v10 }
0x1042   :  { %v10024_v13 = vpop.f32.mrb[142].mxu0  ;;  %v10032_v29 = vpop.f32.mrb[146].mxu1 }
0x1043   :  { %v7453_v16 = vsel %vm220_vm1, %v10032_v29, 0.0  ;;  %v7083_v45 = vpop.f32.mrb[143].mxu0  ;;  %v7186_v50 = vpop.f32.mrb[147].mxu1  ;;  %v7466_v55 = vsel %vm220_vm1, %v10024_v13, 0.0 }
0x1044   :  { %v7454_v20 = vadd.f32 %v7453_v16, %v7452_v7  ;;  %v7446_v35 = vsel %vm220_vm1, %v7186_v50, 0.0  ;;  %v7459_v52 = vsel %vm220_vm1, %v7083_v45, 0.0 }
0x1045   :  { %v7447_v15 = vadd.f32 %v7446_v35, %v7445_v51 }
0x1046   :  { %v10035_v46 = vpop.f32.mrb[148].mxu1 }
0x1047   :  { %v7467_v27 = vsel %vm220_vm1, %v10035_v46, 0.0  ;;  %v7196_v28 = vpop.f32.mrb[149].mxu1 }
0x1048   :  { %v13248_v61 = vadd.f32 %v7467_v27, %v7466_v55  ;;  %v7460_v9 = vsel %vm220_vm1, %v7196_v28, 0.0 }
0x1049   :  { %v13251_v47 = vadd.f32 %v7460_v9, %v7459_v52 }
0x104b   :  { %v10040_v33 = vpop.f32.mrb[144].mxu0 }
0x104c   :  { %v7441_v25 = vsel %vm220_vm1, %v10040_v33, 0.0  ;;  %v7289_v56 = vpop.f32.mrb[145].mxu0 }
0x104d   :  { %v7442_v3 = vadd.f32 %v7441_v25, %v7440_v23  ;;  %v7434_v42 = vsel %vm220_vm1, %v7289_v56, 0.0 }
0x104e   :  { %v7435_v63 = vadd.f32 %v7434_v42, %v7433_v57 }
0x1062   :  { %v10051_v44 = vpop.f32.mrb[150].mxu1 }
0x1063   :  { %v7443_v12 = vsel %vm220_vm1, %v10051_v44, 0.0  ;;  %v7402_v49 = vpop.f32.mrb[151].mxu1 }
0x1064   :  { %v7444_v43 = vadd.f32 %v7443_v12, %v7442_v3  ;;  %v7436_v2 = vsel %vm220_vm1, %v7402_v49, 0.0 }
0x1065   :  { %v7437_v22 = vadd.f32 %v7436_v2, %v7435_v63 }
0x1066   :  { %v7474_v40 = vadd.f32 %v7444_v43, %v12267_v14  ;;  %v10043_v32 = vpop.f32.mrb[146].mxu0 }
0x1067   :  { %v7473_v19 = vadd.f32 %v7437_v22, %v12269_v41  ;;  %v7455_v53 = vsel %vm220_vm1, %v10043_v32, 0.0  ;;  %v7299_v58 = vpop.f32.mrb[147].mxu0  ;;  %v8569_v32 = vld [vmem:[%s13459_s16 + $0x20] sm:$0xff] }
0x1068   :  { %v7456_v5 = vadd.f32 %v7455_v53, %v7454_v20  ;;  %v7448_v38 = vsel %vm220_vm1, %v7299_v58, 0.0  ;;  %v7488_v37 = vadd.f32 %v13260_v18, %v7474_v40 }
0x1069   :  { %v13268_v24 = vadd.f32 %v13260_v18, %v7473_v19  ;;  %v7449_v8 = vadd.f32 %v7448_v38, %v7447_v15 }
0x106a   :  { %v10054_v4 = vpop.f32.mrb[152].mxu1  ;;  %v7500_v11 = vsel %vm220_vm1, %v7488_v37, 0.0 }
0x106b   :  { %v7457_v14 = vsel %vm220_vm1, %v10054_v4, 0.0  ;;  %7501 = vadd.xlane.f32.xlu1 %v7500_v11  ;;  %v7412_v36 = vpop.f32.mrb[153].mxu1  ;;  %v7497_v41 = vsel %vm220_vm1, %v13268_v24, 0.0 }
0x106c   :  { %v7458_v48 = vadd.f32 %v7457_v14, %v7456_v5  ;;  %v7450_v31 = vsel %vm220_vm1, %v7412_v36, 0.0  ;;  %7498 = vadd.xlane.f32.xlu0 %v7497_v41 }
0x106d   :  { %v7451_v17 = vadd.f32 %v7450_v31, %v7449_v8 }
0x106e   :  { %v7476_v30 = vadd.f32 %v7458_v48, %v12277_v62 }
0x106f   :  { %v7475_v6 = vadd.f32 %v7451_v17, %v12279_v0 }
0x1070   :  { %v13278_v1 = vadd.f32 %v13260_v18, %v7476_v30  ;;  %v13333_v30 = vld [vmem:[%s13457_s14 + $0x1] ss:$0 sm:$0xff] }
0x1071   :  { %v7489_v59 = vadd.f32 %v13260_v18, %v7475_v6 }
0x1072   :  { %v7506_v54 = vsel %vm220_vm1, %v13278_v1, 0.0 }
0x1073   :  { %7507 = vadd.xlane.f32.xlu1 %v7506_v54  ;;  %v7503_v60 = vsel %vm220_vm1, %v7489_v59, 0.0 }
0x1074   :  { %7504 = vadd.xlane.f32.xlu0 %v7503_v60  ;;  %v13340_v60 = vld [vmem:[%s13458_s15 + $0x1] ss:$0 sm:$0xff] }
0x10f8   :  { %v7502_v21 = vpop.xlane.xlu1 %7501 }
0x10f9   :  { %v7516_v10 = vmul.f32 0.03125, %v7502_v21  ;;  %v7499_v23 = vpop.xlane.xlu0 %7498 }
0x10fa   :  { %v7515_v34 = vmul.f32 0.03125, %v7499_v23 }
0x10fb   :  { %v13284_v57 = vsub.f32 %v7488_v37, %v7516_v10 }
0x10fc   :  { %v13287_v62 = vsub.f32 %v13268_v24, %v7515_v34 }
0x10fd   :  { %v7528_v0 = vmul.f32 %v13284_v57, %v13284_v57 }
0x10fe   :  { %v7527_v13 = vmul.f32 %v13287_v62, %v13287_v62 }
0x10ff   :  { %v7536_v29 = vsel %vm220_vm1, %v7528_v0, 0.0 }
0x1100   :  { %7537 = vadd.xlane.f32.xlu1 %v7536_v29  ;;  %v7508_v7 = vpop.xlane.xlu1 %7507  ;;  %v7533_v16 = vsel %vm220_vm1, %v7527_v13, 0.0 }
0x1101   :  { %v7518_v45 = vmul.f32 0.03125, %v7508_v7  ;;  %7534 = vadd.xlane.f32.xlu0 %v7533_v16  ;;  %v7505_v50 = vpop.xlane.xlu0 %7504 }
0x1102   :  { %v7517_v51 = vmul.f32 0.03125, %v7505_v50 }
0x1103   :  { %v13296_v20 = vsub.f32 %v13278_v1, %v7518_v45 }
0x1104   :  { %v13298_v35 = vsub.f32 %v7489_v59, %v7517_v51 }
0x1105   :  { %v7530_v15 = vmul.f32 %v13296_v20, %v13296_v20 }
0x1106   :  { %v7529_v46 = vmul.f32 %v13298_v35, %v13298_v35 }
0x1107   :  { %v7542_v55 = vsel %vm220_vm1, %v7530_v15, 0.0 }
0x1108   :  { %7543 = vadd.xlane.f32.xlu1 %v7542_v55  ;;  %v7539_v27 = vsel %vm220_vm1, %v7529_v46, 0.0 }
0x1109   :  { %7540 = vadd.xlane.f32.xlu0 %v7539_v27 }
0x110c   :  { %v10046_v28 = vpop.f32.mrb[148].mxu0 }
0x110d   :  { %v7469_v52 = vsel %vm220_vm1, %v10046_v28, 0.0  ;;  %v7309_v9 = vpop.f32.mrb[149].mxu0 }
0x110e   :  { %v7470_v33 = vadd.f32 %v7469_v52, %v13248_v61  ;;  %v7462_v25 = vsel %vm220_vm1, %v7309_v9, 0.0  ;;  %v8581_v9 = vld [vmem:[%s13461_s18 + $0x40] sm:$0xff] }
0x110f   :  { %v7463_v56 = vadd.f32 %v7462_v25, %v13251_v47 }
0x1110   :  { %v10057_v3 = vpop.f32.mrb[154].mxu1 }
0x1111   :  { %v7471_v42 = vsel %vm220_vm1, %v10057_v3, 0.0  ;;  %v7422_v63 = vpop.f32.mrb[155].mxu1  ;;  %v8584_v3 = vld [vmem:[%s13461_s18 + $0x58] sm:$0xff] }
0x1112   :  { %v7472_v44 = vadd.f32 %v7471_v42, %v7470_v33  ;;  %v7464_v12 = vsel %vm220_vm1, %v7422_v63, 0.0  ;;  %v8582_v33 = vld [vmem:[%s13461_s18 + $0x48] sm:$0xff]  ;;  %v8585_v63 = vld [vmem:[%s13461_s18 + $0x60] sm:$0xff] }
0x1113   :  { %v7465_v49 = vadd.f32 %v7464_v12, %v7463_v56  ;;  %v10602_v25 = vpack.c.bf16 %v8582_v33, %v8581_v9  ;;  %v8583_v56 = vld [vmem:[%s13461_s18 + $0x50] sm:$0xff] }
0x1114   :  { %v7478_v43 = vadd.f32 %v7472_v44, %v12287_v26  ;;  %v8570_v26 = vld [vmem:[%s13459_s16 + $0x28] sm:$0xff]  ;;  %v10606_v42 = vpack.c.bf16 %v8584_v3, %v8583_v56 }
0x1115   :  { %v7477_v2 = vadd.f32 %v7465_v49, %v12289_v39  ;;  %v10594_v19 = vpack.c.bf16 %v8570_v26, %v8569_v32  ;;  %v8571_v39 = vld [vmem:[%s13459_s16 + $0x30] sm:$0xff]  ;;  %10603 = vmatprep.subr.bf16.mxu1 %v10602_v25  ;;  %v8586_v44 = vld [vmem:[%s13461_s18 + $0x68] sm:$0xff] }
0x1116   :  { %v7492_v22 = vadd.f32 %v13260_v18, %v7478_v43  ;;  %10605 = vmatpush3.bf16.msra.mxu1 %v10602_v25  ;;  %v10610_v12 = vpack.c.bf16 %v8586_v44, %v8585_v63  ;;  %v8587_v49 = vld [vmem:[%s13461_s18 + $0x70] sm:$0xff]  ;;  %v8588_v43 = vld [vmem:[%s13461_s18 + $0x78] sm:$0xff] }
0x1117   :  { %v7491_v61 = vadd.f32 %v13260_v18, %v7477_v2  ;;  %10595 = vmatprep.subr.bf16.mxu0 %v10594_v19  ;;  %v8572_v18 = vld [vmem:[%s13459_s16 + $0x38] sm:$0xff]  ;;  %10607 = vmatprep.subr.bf16.mxu1 %v10606_v42  ;;  %v10614_v2 = vpack.c.bf16 %v8588_v43, %v8587_v49 }
0x1118   :  { %v7512_v40 = vsel %vm220_vm1, %v7492_v22, 0.0  ;;  %10597 = vmatpush3.bf16.msra.mxu0 %v10594_v19  ;;  %v10598_v53 = vpack.c.bf16 %v8572_v18, %v8571_v39 }
0x1119   :  { %7513 = vadd.xlane.f32.xlu1 %v7512_v40  ;;  %v7509_v47 = vsel %vm220_vm1, %v7491_v61, 0.0 }
0x111a   :  { %7510 = vadd.xlane.f32.xlu0 %v7509_v47  ;;  %10599 = vmatprep.subr.bf16.mxu0 %v10598_v53 }
0x111b   :  { %10609 = vmatpush3.bf16.msra.mxu1 %v10606_v42 }
0x111c   :  { %10601 = vmatpush3.bf16.msra.mxu0 %v10598_v53  ;;  %10611 = vmatprep.subr.bf16.mxu1 %v10610_v12 }
0x111f   :  { %10613 = vmatpush3.bf16.msra.mxu1 %v10610_v12 }
0x1120   :  { %10615 = vmatprep.subr.bf16.mxu1 %v10614_v2 }
0x1123   :  { %10617 = vmatpush3.bf16.msra.mxu1 %v10614_v2 }
0x118d   :  { %v7538_v58 = vpop.xlane.xlu1 %7537 }
0x118e   :  { %v7552_v5 = vmul.f32 0.03125, %v7538_v58  ;;  %v7535_v38 = vpop.xlane.xlu0 %7534 }
0x118f   :  { %v7551_v37 = vmul.f32 0.03125, %v7535_v38 }
0x1190   :  { %v7558_v8 = vadd.f32 1e-05, %v7552_v5 }
0x1191   :  { %v7557_v4 = vadd.f32 1e-05, %v7551_v37 }
0x1192   :  { %10874 = vrsqrt.f32 %v7558_v8  ;;  %v8574_v8 = vld [vmem:[%s13460_s17 + $0x1] ss:$0 sm:$0xff] }
0x1193   :  { %10876 = vrsqrt.f32 %v7557_v4 }
0x1195   :  { %v7544_v11 = vpop.xlane.xlu1 %7543 }
0x1196   :  { %v7554_v14 = vmul.f32 0.03125, %v7544_v11  ;;  %v7541_v36 = vpop.xlane.xlu0 %7540 }
0x1197   :  { %v7553_v41 = vmul.f32 0.03125, %v7541_v36 }
0x1198   :  { %v7560_v48 = vadd.f32 1e-05, %v7554_v14 }
0x1199   :  { %v7559_v31 = vadd.f32 1e-05, %v7553_v41 }
0x119a   :  { %10878 = vrsqrt.f32 %v7560_v48 }
0x119b   :  { %10880 = vrsqrt.f32 %v7559_v31 }
0x119c   :  { %v10875_v17 = vpop.eup %10874 }
0x119d   :  { %v10877_v6 = vpop.eup %10876  ;;  %v7570_v59 = vmul.f32 %v10875_v17, %v13284_v57 }
0x119e   :  { %v7569_v54 = vmul.f32 %v10877_v6, %v13287_v62 }
0x119f   :  { %v7582_v21 = vmul.f32 %v13333_v30, %v7570_v59 }
0x11a0   :  { %v7581_v10 = vmul.f32 %v13333_v30, %v7569_v54 }
0x11a1   :  { %v7594_v34 = vadd.f32 %v13340_v60, %v7582_v21 }
0x11a2   :  { %v7593_v23 = vadd.f32 %v13340_v60, %v7581_v10 }
0x11a4   :  { %v10879_v0 = vpop.eup %10878  ;;  %10066 = vmatprep.mubr.msk.f32.mxu0 %vm220_vm1, %v7593_v23 }
0x11a5   :  { %v10881_v13 = vpop.eup %10880  ;;  %10067 = vmatmul.mubr.msk.f32.vlgmr.msra.gmra.mrb[150].mxu0 %vm220_vm1, %v7594_v34  ;;  %v7572_v57 = vmul.f32 %v10879_v0, %v13296_v20 }
0x11a6   :  { %v7514_v62 = vpop.xlane.xlu1 %7513  ;;  %v7571_v29 = vmul.f32 %v10881_v13, %v13298_v35 }
0x11a7   :  { %v7520_v7 = vmul.f32 0.03125, %v7514_v62  ;;  %v7511_v16 = vpop.xlane.xlu0 %7510  ;;  %v7584_v45 = vmul.f32 %v13333_v30, %v7572_v57 }
0x11a8   :  { %v7519_v50 = vmul.f32 0.03125, %v7511_v16  ;;  %v7583_v51 = vmul.f32 %v13333_v30, %v7571_v29 }
0x11a9   :  { %v7526_v15 = vsub.f32 %v7492_v22, %v7520_v7  ;;  %v7596_v27 = vadd.f32 %v13340_v60, %v7584_v45 }
0x11aa   :  { %v7525_v46 = vsub.f32 %v7491_v61, %v7519_v50  ;;  %v7595_v55 = vadd.f32 %v13340_v60, %v7583_v51 }
0x11ab   :  { %v7532_v28 = vmul.f32 %v7526_v15, %v7526_v15 }
0x11ac   :  { %10069 = vmatprep.mubr.msk.f32.mxu0 %vm220_vm1, %v7595_v55  ;;  %v7531_v20 = vmul.f32 %v7525_v46, %v7525_v46 }
0x11ad   :  { %10070 = vmatmul.mubr.msk.f32.gmra.mrb[152].mxu0 %vm220_vm1, %v7596_v27  ;;  %v7548_v35 = vsel %vm220_vm1, %v7532_v28, 0.0 }
0x11ae   :  { %7549 = vadd.xlane.f32.xlu1 %v7548_v35  ;;  %v7545_v52 = vsel %vm220_vm1, %v7531_v20, 0.0 }
0x11af   :  { %7546 = vadd.xlane.f32.xlu0 %v7545_v52 }
0x123b   :  { %v7550_v22 = vpop.xlane.xlu1 %7549 }
0x123c   :  { %v7556_v61 = vmul.f32 0.03125, %v7550_v22  ;;  %v7547_v40 = vpop.xlane.xlu0 %7546 }
0x123d   :  { %v7555_v47 = vmul.f32 0.03125, %v7547_v40 }
0x123e   :  { %v7562_v32 = vadd.f32 1e-05, %v7556_v61 }
0x123f   :  { %v7561_v26 = vadd.f32 1e-05, %v7555_v47 }
0x1240   :  { %10882 = vrsqrt.f32 %v7562_v32 }
0x1241   :  { %10884 = vrsqrt.f32 %v7561_v26 }
0x124a   :  { %v10883_v19 = vpop.eup %10882 }
0x124b   :  { %v10885_v39 = vpop.eup %10884  ;;  %v7574_v18 = vmul.f32 %v10883_v19, %v7526_v15 }
0x124c   :  { %v7573_v53 = vmul.f32 %v10885_v39, %v7525_v46 }
0x124d   :  { %v7586_v58 = vmul.f32 %v13333_v30, %v7574_v18 }
0x124e   :  { %v7585_v5 = vmul.f32 %v13333_v30, %v7573_v53 }
0x124f   :  { %v7598_v37 = vadd.f32 %v13340_v60, %v7586_v58 }
0x1250   :  { %v7597_v38 = vadd.f32 %v13340_v60, %v7585_v5 }
0x1252   :  { %10072 = vmatprep.mubr.msk.f32.mxu0 %vm220_vm1, %v7597_v38 }
0x1253   :  { %10073 = vmatmul.mubr.msk.f32.gmra.mrb[154].mxu0 %vm220_vm1, %v7598_v37 }
0x1278   :  { %v10068_v4 = vpop.f32.mrb[150].mxu0 }
0x1279   :  { %v7702_v11 = vadd.f32 %v10068_v4, %v8574_v8  ;;  %v7696_v14 = vpop.f32.mrb[151].mxu0 }
0x127a   :  { %v7697_v36 = vadd.f32 %v8574_v8, %v7696_v14 }
0x127b   :  { %v7732_v41 = vmul.f32 0.044715, %v7702_v11  ;;  %v7726_v35 = vmul.f32 0.5, %v7702_v11 }
0x127c   :  { %v7731_v48 = vmul.f32 0.044715, %v7697_v36  ;;  %v7725_v28 = vmul.f32 0.5, %v7697_v36 }
0x127d   :  { %v7738_v31 = vmul.f32 %v7732_v41, %v7702_v11 }
0x127e   :  { %v7737_v17 = vmul.f32 %v7731_v48, %v7697_v36 }
0x127f   :  { %v7744_v30 = vmul.f32 %v7738_v31, %v7702_v11  ;;  %v8596_v31 = vld [vmem:[%s13462_s19 + $0x1] ss:$0 sm:$0xff] }
0x1280   :  { %v7743_v6 = vmul.f32 %v7737_v17, %v7697_v36  ;;  %v10071_v59 = vpop.f32.mrb[152].mxu0 }
0x1281   :  { %v7750_v54 = vadd.f32 %v7744_v30, %v7702_v11  ;;  %v7712_v60 = vadd.f32 %v10071_v59, %v8574_v8  ;;  %v7706_v21 = vpop.f32.mrb[153].mxu0 }
0x1282   :  { %v7749_v10 = vadd.f32 %v7743_v6, %v7697_v36  ;;  %v7707_v23 = vadd.f32 %v8574_v8, %v7706_v21 }
0x1283   :  { %v7756_v34 = vmul.f32 0.7978845, %v7750_v54  ;;  %v7734_v0 = vmul.f32 0.044715, %v7712_v60  ;;  %v7728_v63 = vmul.f32 0.5, %v7712_v60 }
0x1284   :  { %v7733_v13 = vmul.f32 0.044715, %v7707_v23  ;;  %v7755_v57 = vmul.f32 0.7978845, %v7749_v10  ;;  %v7727_v3 = vmul.f32 0.5, %v7707_v23 }
0x1285   :  { %10886 = vtanh.f32 %v7756_v34  ;;  %v7740_v62 = vmul.f32 %v7734_v0, %v7712_v60 }
0x1286   :  { %v7739_v29 = vmul.f32 %v7733_v13, %v7707_v23  ;;  %10888 = vtanh.f32 %v7755_v57 }
0x1287   :  { %v7746_v7 = vmul.f32 %v7740_v62, %v7712_v60 }
0x1288   :  { %v7745_v16 = vmul.f32 %v7739_v29, %v7707_v23 }
0x1289   :  { %v7752_v45 = vadd.f32 %v7746_v7, %v7712_v60 }
0x128a   :  { %v7751_v50 = vadd.f32 %v7745_v16, %v7707_v23 }
0x128b   :  { %v7758_v51 = vmul.f32 0.7978845, %v7752_v45 }
0x128c   :  { %v7757_v15 = vmul.f32 0.7978845, %v7751_v50  ;;  %v7911_v50 = vld [vmem:[%s13465_s22] sm:$0xff] }
0x128d   :  { %10890 = vtanh.f32 %v7758_v51  ;;  %v7912_v51 = vld [vmem:[%s13465_s22 + $0x8] sm:$0xff] }
0x128e   :  { %10892 = vtanh.f32 %v7757_v15  ;;  %v10619_v15 = vpack.c.bf16 %v7912_v51, %v7911_v50 }
0x128f   :  { %v10887_v46 = vpop.eup %10886 }
0x1290   :  { %v10889_v55 = vpop.eup %10888  ;;  %v7768_v27 = vadd.f32 1.0, %v10887_v46  ;;  %v10932_v46 = vmov 0.0|0.0  }
0x1291   :  { %v7767_v20 = vadd.f32 1.0, %v10889_v55  ;;  %10618 = vmatprep.subr.bf16.mxu0 %v10932_v46  ;;  %v7913_v55 = vld [vmem:[%s13465_s22 + $0x10] sm:$0xff] }
0x1292   :  { %v7774_v9 = vmul.f32 %v7768_v27, %v7726_v35  ;;  %10620 = vmatpush3.bf16.msra.mxu0 %v10619_v15  ;;  %v7914_v27 = vld [vmem:[%s13465_s22 + $0x18] sm:$0xff] }
0x1293   :  { %v7773_v52 = vmul.f32 %v7767_v20, %v7725_v28  ;;  %10621 = vmatprep.subr.bf16.mxu0 %v10932_v46  ;;  %v10622_v28 = vpack.c.bf16 %v7914_v27, %v7913_v55  ;;  %v10934_v20 = vmov 0.0  }
0x1294   :  { %10108 = vmatprep.mubr.msk.f32.mxu0 %vm10933_vm6, %v10934_v20 }
0x1295   :  { %10091 = vmatprep.mubr.msk.f32.mxu1 %vm98_vm0, %v7773_v52 }
0x1296   :  { %10092 = vmatmul.mubr.msk.f32.vlgmr.msra.gmra.mrb[156].mxu1 %vm98_vm0, %v7774_v9  ;;  %10623 = vmatpush3.bf16.msra.mxu0 %v10622_v28 }
0x1297   :  { %v10891_v33 = vpop.eup %10890  ;;  %10624 = vmatprep.subr.bf16.mxu0 %v10932_v46 }
0x1298   :  { %v10893_v25 = vpop.eup %10892  ;;  %v7770_v56 = vadd.f32 1.0, %v10891_v33 }
0x1299   :  { %v7769_v42 = vadd.f32 1.0, %v10893_v25 }
0x129a   :  { %v7776_v12 = vmul.f32 %v7770_v56, %v7728_v63 }
0x129b   :  { %v7775_v44 = vmul.f32 %v7769_v42, %v7727_v3  ;;  %v7909_v42 = vld [vmem:[%s13463_s20] sm:$0x1] }
0x129d   :  { %10094 = vmatprep.mubr.msk.f32.mxu1 %vm98_vm0, %v7775_v44  ;;  %v7910_v44 = vld [vmem:[%s13464_s21] sm:$0x1]  ;;  %s10935_s21 = smov [#allocation5]  }
0x129e   :  { %10095 = vmatmul.mubr.msk.f32.gmra.mrb[158].mxu1 %vm98_vm0, %v7776_v12  ;;  %s8102_s25 = sshll.u32 %s10935_s21, 4  ;;  %s8103_s25 = int_to_ptr.vmem [resolvable:$true] %s8102_s25 }
0x129f   :  { %s10908_s11 = scalar_lea.vmem %s8103_s25, 32  ;;  %p10913_p1 = scmp.lt.s32.totalorder %s8103_s25, %s8103_s25 }
0x12a0   :  { %p10909_p0 = scmp.ne.s32.totalorder %s8103_s25, %s10908_s11  ;;  %p10914_p2 = scmp.lt.s32.totalorder %s10908_s11, %s10908_s11 }
0x12a2   :  { %p10915_p3 = por %p10914_p2, %p10913_p1 }
0x12a4   :  { %p10916_p4 = pnand %p10915_p3, %p10909_p0 }
0x1326   :  { %v10074_v49 = vpop.f32.mrb[154].mxu0 }
0x1327   :  { %v7722_v43 = vadd.f32 %v10074_v49, %v8574_v8  ;;  %v7716_v2 = vpop.f32.mrb[155].mxu0 }
0x1328   :  { %v7717_v22 = vadd.f32 %v8574_v8, %v7716_v2 }
0x1329   :  { %v7736_v61 = vmul.f32 0.044715, %v7722_v43  ;;  %v7730_v14 = vmul.f32 0.5, %v7722_v43 }
0x132a   :  { %v7735_v40 = vmul.f32 0.044715, %v7717_v22  ;;  %v7729_v4 = vmul.f32 0.5, %v7717_v22 }
0x132b   :  { %v7742_v47 = vmul.f32 %v7736_v61, %v7722_v43 }
0x132c   :  { %v7741_v32 = vmul.f32 %v7735_v40, %v7717_v22  ;;  %v7915_v40 = vld [vmem:[%s13466_s23] sm:$0x1] }
0x132d   :  { %v7748_v26 = vmul.f32 %v7742_v47, %v7722_v43 }
0x132e   :  { %v7747_v19 = vmul.f32 %v7741_v32, %v7717_v22 }
0x132f   :  { %v7754_v39 = vadd.f32 %v7748_v26, %v7722_v43 }
0x1330   :  { %v7753_v18 = vadd.f32 %v7747_v19, %v7717_v22 }
0x1331   :  { %v7760_v53 = vmul.f32 0.7978845, %v7754_v39 }
0x1332   :  { %v7759_v58 = vmul.f32 0.7978845, %v7753_v18 }
0x1333   :  { %10894 = vtanh.f32 %v7760_v53 }
0x1334   :  { %10896 = vtanh.f32 %v7759_v58 }
0x133d   :  { %v10895_v5 = vpop.eup %10894 }
0x133e   :  { %v10897_v38 = vpop.eup %10896  ;;  %v7772_v37 = vadd.f32 1.0, %v10895_v5 }
0x133f   :  { %v7771_v11 = vadd.f32 1.0, %v10897_v38 }
0x1340   :  { %v7778_v8 = vmul.f32 %v7772_v37, %v7730_v14 }
0x1341   :  { %v7777_v36 = vmul.f32 %v7771_v11, %v7729_v4 }
0x1343   :  { %10097 = vmatprep.mubr.msk.f32.mxu1 %vm98_vm0, %v7777_v36 }
0x1344   :  { %10098 = vmatmul.mubr.msk.f32.gmra.mrb[160].mxu1 %vm98_vm0, %v7778_v8 }
0x1369   :  { %v10093_v41 = vpop.f32.mrb[156].mxu1 }
0x136a   :  { %v7872_v48 = vpop.f32.mrb[157].mxu1 }
0x136b   :  { %v7897_v17 = vadd.f32 %v7872_v48, %v13268_v24 }
0x136d   :  { %v7907_v30 = vadd.f32 %v8596_v31, %v7897_v17 }
0x136f   :  { %v7917_v6 = vsel %vm7916_vm5, %v7907_v30, 0.0 }
0x1370   :  { %7918 = vadd.xlane.f32.xlu0 %v7917_v6 }
0x1371   :  { %v10096_v59 = vpop.f32.mrb[158].mxu1 }
0x1372   :  { %v7898_v54 = vadd.f32 %v10096_v59, %v13278_v1  ;;  %v7881_v60 = vpop.f32.mrb[159].mxu1 }
0x1374   :  { %v7908_v21 = vadd.f32 %v8596_v31, %v7898_v54 }
0x1376   :  { %v8007_v10 = vsel %vm7916_vm5, %v7908_v21, 0.0 }
0x1377   :  { %8008 = vadd.xlane.f32.xlu1 %v8007_v10 }
0x13fd   :  { %v7919_v23 = vpop.xlane.xlu0 %7918 }
0x13fe   :  { %v7920_v34 = vmul.f32 0.03125, %v7919_v23 }
0x1400   :  { %v7921_v0 = vsub.f32 %v7907_v30, %v7920_v34 }
0x1402   :  { %v7922_v13 = vmul.f32 %v7921_v0, %v7921_v0 }
0x1404   :  { %v8009_v57 = vpop.xlane.xlu1 %8008  ;;  %v7923_v24 = vsel %vm7916_vm5, %v7922_v13, 0.0 }
0x1405   :  { %v8010_v62 = vmul.f32 0.03125, %v8009_v57  ;;  %7924 = vadd.xlane.f32.xlu0 %v7923_v24 }
0x1407   :  { %v8011_v29 = vsub.f32 %v7908_v21, %v8010_v62 }
0x1409   :  { %v8012_v7 = vmul.f32 %v8011_v29, %v8011_v29 }
0x140b   :  { %v8013_v16 = vsel %vm7916_vm5, %v8012_v7, 0.0 }
0x140c   :  { %8014 = vadd.xlane.f32.xlu1 %v8013_v16 }
0x1417   :  { %v10099_v1 = vpop.f32.mrb[160].mxu1 }
0x1418   :  { %v7890_v45 = vpop.f32.mrb[161].mxu1 }
0x1492   :  { %v7925_v35 = vpop.xlane.xlu0 %7924 }
0x1493   :  { %v7926_v52 = vmul.f32 0.03125, %v7925_v35 }
0x1495   :  { %v7927_v9 = vadd.f32 1e-05, %v7926_v52 }
0x1497   :  { %10898 = vrsqrt.f32 %v7927_v9 }
0x1499   :  { %v8015_v33 = vpop.xlane.xlu1 %8014 }
0x149a   :  { %v8016_v25 = vmul.f32 0.03125, %v8015_v33 }
0x149c   :  { %v8017_v56 = vadd.f32 1e-05, %v8016_v25 }
0x149e   :  { %10900 = vrsqrt.f32 %v8017_v56 }
0x14a1   :  { %v10899_v3 = vpop.eup %10898 }
0x14a2   :  { %v7929_v63 = vmul.f32 %v10899_v3, %v7921_v0 }
0x14a4   :  { %v7930_v12 = vmul.f32 %v7929_v63, %v7909_v42 }
0x14a6   :  { %v7931_v49 = vadd.f32 %v7930_v12, %v7910_v44 }
0x14a8   :  { %v10901_v43 = vpop.eup %10900  ;;  %10109 = vmatmul.mubr.msk.f32.vlgmr.msra.gmra.mrb[156].mxu0 %vm220_vm1, %v7931_v49 }
0x14a9   :  { %v8019_v2 = vmul.f32 %v10901_v43, %v8011_v29  ;;  %10626 = vmatpush3.bf16.msra.mxu0 %v10619_v15  ;;  %10119 = vmatprep.mubr.msk.f32.mxu0 %vm10933_vm6, %v10934_v20 }
0x14aa   :  { %10627 = vmatprep.subr.bf16.mxu0 %v10932_v46 }
0x14ab   :  { %v8020_v22 = vmul.f32 %v8019_v2, %v7909_v42 }
0x14ad   :  { %10629 = vmatpush3.bf16.msra.mxu0 %v10622_v28  ;;  %v8021_v61 = vadd.f32 %v8020_v22, %v7910_v44 }
0x14b0   :  { %10120 = vmatmul.mubr.msk.f32.vlgmr.msra.gmra.mrb[158].mxu0 %vm220_vm1, %v8021_v61 }
0x157b   :  { %v8001_v47 = vpop.f32.mrb[156].mxu0 }
0x157c   :  { %v8002_v32 = vadd.f32 %v8001_v47, %v7915_v40  ;;  %v10110_v26 = vpop.f32.mrb[157].mxu0 }
0x157e   :  { %8006 = vst.msk [vmem:[#allocation5] sm:$0x1] %vm8005_vm7, %v8002_v32 }
0x1583   :  { %v8091_v19 = vpop.f32.mrb[158].mxu0 }
0x1584   :  { %v8092_v39 = vadd.f32 %v8091_v19, %v7915_v40  ;;  %v10121_v18 = vpop.f32.mrb[159].mxu0 }
0x1586   :  { %8095 = vst.msk [vmem:[#allocation5 + $0x1] sm:$0x1] %vm8005_vm7, %v8092_v39 }
0x1587   :  { %10919 = shalt.err (!%p10916_p4)
}
0x1588   :  { %s10920_s12 = scalar_lea.hbm %s13467_s24, 32 }
0x1589   :  { %p10921_p5 = scmp.ne.s32.totalorder %s13467_s24, %s10920_s12  ;;  %p10924_p6 = scmp.lt.u32.totalorder %s10920_s12, %s13467_s24 }
0x158b   :  { %p10926_p7 = pnand %p10924_p6, %p10921_p5 }
0x158d   :  { %10929 = shalt.err (!%p10926_p7)
}
0x158e   :  { %8105 = dma.vmem_to_hbm [thread:$0]  %s8103_s25, 32, %s13467_s24, [#allocation6]  }
0x158f   :  { %10930 = dma.done.wait [#allocation6], 32  }
0x1590   :  { %10931 = vsyncadd [#allocation6], 4294967264 }
0x1591   :  { %8109 = vsyncpa [#allocation6], 1 }

</bundles_post_ra>
